<compile_context>
chip_gen: v7x
topology: tpu7x:2x2x1
jax: 0.10.0
libtpu: 0.0.40
codegen_flags: <defaults>
</compile_context>

<pallas_src>
import math
import functools

import numpy as np
import jax
import jax.numpy as jnp
from jax import lax
from jax.experimental import pallas as pl
from jax.experimental.pallas import tpu as pltpu

LN_EPS = 1e-5          # torch.nn.LayerNorm default
MASK_FILL = -1e9       # torch masked_fill value in the reference module


def _layer_norm(x, gamma, beta):
    # x: (R, D) f32; gamma/beta: (1, D).  Biased variance, same as nn.LayerNorm.
    mean = jnp.mean(x, axis=-1, keepdims=True)
    xc = x - mean
    var = jnp.mean(xc * xc, axis=-1, keepdims=True)
    return xc * lax.rsqrt(var + LN_EPS) * gamma + beta


def _decoder_block_kernel(d_model, num_heads, has_tgt_mask, has_src_mask, cdt, *refs):
    it = iter(refs)
    x_ref = next(it)                  # (Bb, S, D)   f32
    enc_ref = next(it)                # (Bb, Se, D)  f32
    tgt_bias_ref = next(it) if has_tgt_mask else None   # (Bb, S, S)  additive bias f32
    src_bias_ref = next(it) if has_src_mask else None   # (Bb, S, Se) additive bias f32
    (wqkv_ref, bqkv_ref, wo1_ref, bo1_ref, g1_ref, be1_ref,
     wq2_ref, bq2_ref, wkv2_ref, bkv2_ref, wo2_ref, bo2_ref, g2_ref, be2_ref,
     w1_ref, b1_ref, w2_ref, b2_ref, g3_ref, be3_ref, o_ref) = tuple(it)

    D = d_model
    H = num_heads
    dk = D // H
    Bb, S, _ = x_ref.shape
    Se = enc_ref.shape[1]

    # Flatten the batch block into the matmul M dimension: (Bb*S, D).
    x = x_ref[...].reshape(Bb * S, D)            # f32
    enc = enc_ref[...].reshape(Bb * Se, D)       # f32
    x_c = x.astype(cdt)
    enc_c = enc.astype(cdt)

    def split_heads(t2d, seq):
        # (Bb*seq, D) f32 -> (Bb*H, seq, dk) bf16 ; one relayout per tensor.
        t = t2d.astype(cdt).reshape(Bb, seq, H, dk)
        return jnp.transpose(t, (0, 2, 1, 3)).reshape(Bb * H, seq, dk)

    def attend(q2d, k2d, v2d, bias_ref, sq, sk):
        # Scale already folded into the Q projection weights -> no "* scale" here.
        q3 = split_heads(q2d, sq)
        k3 = split_heads(k2d, sk)
        v3 = split_heads(v2d, sk)
        # scores[b*h, i, j] = sum_d q3[bh, i, d] * k3[bh, j, d]  (no explicit k.T)
        scores = lax.dot_general(q3, k3, (((2,), (2,)), ((0,), (0,))),
                                 preferred_element_type=jnp.float32)   # (Bb*H, sq, sk)
        if bias_ref is not None:
            bias = bias_ref[...]                                       # (Bb, sq, sk)
            scores = (scores.reshape(Bb, H, sq, sk) + bias[:, None, :, :]
                      ).reshape(Bb * H, sq, sk)
        m = jnp.max(scores, axis=-1, keepdims=True)
        e = jnp.exp(scores - m)
        denom = jnp.sum(e, axis=-1, keepdims=True)
        p = e * pl.reciprocal(denom, approx=True)        # EUP reciprocal + cheap multiply
        ctx = lax.dot_general(p.astype(cdt), v3, (((2,), (1,)), ((0,), (0,))),
                              preferred_element_type=jnp.float32)      # (Bb*H, sq, dk)
        # Cast before the combine-heads relayout to halve store/relayout bandwidth.
        ctx = ctx.astype(cdt).reshape(Bb, H, sq, dk)
        return jnp.transpose(ctx, (0, 2, 1, 3)).reshape(Bb * sq, D)    # (Bb*sq, D) bf16

    # ---------------- self-attention (fused QKV projection) ----------------
    qkv = jnp.dot(x_c, wqkv_ref[...], preferred_element_type=jnp.float32) + bqkv_ref[...]
    ctx1 = attend(qkv[:, :D], qkv[:, D:2 * D], qkv[:, 2 * D:], tgt_bias_ref, S, S)
    attn1 = jnp.dot(ctx1, wo1_ref[...], preferred_element_type=jnp.float32) + bo1_ref[...]
    x1 = _layer_norm(x + attn1, g1_ref[...], be1_ref[...])

    # ---------------- cross-attention (fused KV projection of enc_output) --
    q2 = jnp.dot(x1.astype(cdt), wq2_ref[...],
                 preferred_element_type=jnp.float32) + bq2_ref[...]
    kv2 = jnp.dot(enc_c, wkv2_ref[...],
                  preferred_element_type=jnp.float32) + bkv2_ref[...]
    ctx2 = attend(q2, kv2[:, :D], kv2[:, D:], src_bias_ref, S, Se)
    attn2 = jnp.dot(ctx2, wo2_ref[...], preferred_element_type=jnp.float32) + bo2_ref[...]
    x2 = _layer_norm(x1 + attn2, g2_ref[...], be2_ref[...])

    # ---------------- feed-forward (fc1 -> ReLU -> fc2) --------------------
    h1 = jnp.dot(x2.astype(cdt), w1_ref[...],
                 preferred_element_type=jnp.float32) + b1_ref[...]
    h1 = jnp.maximum(h1, 0.0).astype(cdt)        # cast as produced (vst / VMEM relief)
    ff = jnp.dot(h1, w2_ref[...], preferred_element_type=jnp.float32) + b2_ref[...]
    x3 = _layer_norm(x2 + ff, g3_ref[...], be3_ref[...])

    o_ref[...] = x3.reshape(Bb, S, D).astype(o_ref.dtype)


def decoder_block_forward(x, enc_output, params, *, num_heads,
                          tgt_mask=None, src_mask=None,
                          compute_dtype=jnp.bfloat16, block_b=None):
    """x: (B, S, D), enc_output: (B, Se, D) float32; masks (B, S, S) / (B, S, Se) or None."""
    B, S, D = x.shape
    Be, Se, De = enc_output.shape
    assert Be == B and De == D and D % num_heads == 0
    d_ff = params["w1"].shape[1]
    cdt = compute_dtype
    has_t = tgt_mask is not None
    has_s = src_mask is not None

    # ---- host-side weight folds (free): fuse QKV / KV, fold 1/sqrt(dk) into Q ----
    scale = 1.0 / math.sqrt(D // num_heads)
    w_qkv = jnp.concatenate([params["wq1"] * scale, params["wk1"], params["wv1"]],
                            axis=1).astype(cdt)
    b_qkv = jnp.concatenate([params["bq1"] * scale, params["bk1"], params["bv1"]], axis=1)
    w_kv2 = jnp.concatenate([params["wk2"], params["wv2"]], axis=1).astype(cdt)
    b_kv2 = jnp.concatenate([params["bk2"], params["bv2"]], axis=1)
    wq2 = (params["wq2"] * scale).astype(cdt)
    bq2 = params["bq2"] * scale

    weight_list = [
        w_qkv, b_qkv,
        params["wo1"].astype(cdt), params["bo1"], params["g1"], params["be1"],
        wq2, bq2, w_kv2, b_kv2,
        params["wo2"].astype(cdt), params["bo2"], params["g2"], params["be2"],
        params["w1"].astype(cdt), params["b1"], params["w2"].astype(cdt), params["b2"],
        params["g3"], params["be3"],
    ]
    weight_bytes = sum(int(a.size) * a.dtype.itemsize for a in weight_list)

    # ---- additive mask biases (host side): bias = (1 - mask) * MASK_FILL ----
    tgt_bias = ((1.0 - tgt_mask.astype(jnp.float32)) * MASK_FILL) if has_t else None
    src_bias = ((1.0 - src_mask.astype(jnp.float32)) * MASK_FILL) if has_s else None

    # ---- generation-aware VMEM budget and batch-block selection ----
    try:
        vmem_phys = int(pltpu.get_tpu_info().vmem_capacity_bytes)
    except Exception:
        vmem_phys = 128 * 2 ** 20
    vmem_cap = int(vmem_phys * 3 // 4)           # headroom for compiler-internal scratch

    def budget(bb):
        rows = bb * S
        # Pipelined (double-buffered) per-step HBM<->VMEM blocks: x, enc, out, masks.
        io = 4 * bb * (S * D + Se * D + S * D)
        io += 4 * bb * ((S * S if has_t else 0) + (S * Se if has_s else 0))
        # In-kernel temporaries (f32 accumulators dominate).
        temps = 4 * (rows * 3 * D + bb * Se * 2 * D          # fused QKV / KV projections
                     + 2 * bb * num_heads * S * max(S, Se)   # scores + probs
                     + rows * d_ff                           # FFN hidden
                     + 6 * rows * D)                         # residuals / LN temporaries
        return weight_bytes + 2 * io + temps                 # weights are single-copy

    if block_b is None:
        block_b = 1
        for bb in (d for d in range(1, B + 1) if B % d == 0):
            if bb * S <= 2048 and budget(bb) <= vmem_cap:
                block_b = bb
        # Keep >= 2 grid steps (v7x megacore) when the half-size tile is still MXU-friendly.
        if B // block_b == 1 and block_b % 2 == 0 and (block_b // 2) * S >= 256:
            block_b //= 2
    assert B % block_b == 0, "block_b must divide the batch size"
    grid = (B // block_b,)

    vmem_limit = int(max(32 * 2 ** 20, min(vmem_cap, budget(block_b) + (8 << 20))))

    # ---- operands / BlockSpecs ----
    inputs = [x, enc_output]
    in_specs = [pl.BlockSpec((block_b, S, D), lambda b: (b, 0, 0)),
                pl.BlockSpec((block_b, Se, D), lambda b: (b, 0, 0))]
    if has_t:
        inputs.append(tgt_bias)
        in_specs.append(pl.BlockSpec((block_b, S, S), lambda b: (b, 0, 0)))
    if has_s:
        inputs.append(src_bias)
        in_specs.append(pl.BlockSpec((block_b, S, Se), lambda b: (b, 0, 0)))

    # Grid-invariant weights: whole-array VMEM operands (single copy, no double buffer).
    vmem_full = pl.BlockSpec(memory_space=pltpu.MemorySpace.VMEM)
    in_specs += [vmem_full] * len(weight_list)
    inputs += weight_list

    # ---- advisory cost estimate ----
    flops = 2 * B * (S * D * 3 * D + S * D * D               # self-attn: QKV, Wo
                     + 2 * S * S * D                         # self-attn: scores, P@V
                     + S * D * D + Se * D * 2 * D            # cross-attn: Q, fused KV
                     + 2 * S * Se * D + S * D * D            # cross-attn: scores, P@V, Wo
                     + 2 * S * D * d_ff)                     # FFN
    transcendentals = B * num_heads * (S * S + S * Se)
    bytes_accessed = (sum(int(a.size) * a.dtype.itemsize for a in inputs)
                      + B * S * D * 4)

    kernel = functools.partial(_decoder_block_kernel, D, num_heads, has_t, has_s, cdt)

    return pl.pallas_call(
        kernel,
        out_shape=jax.ShapeDtypeStruct((B, S, D), x.dtype),
        grid_spec=pltpu.PrefetchScalarGridSpec(
            num_scalar_prefetch=0,
            grid=grid,
            in_specs=in_specs,
            out_specs=pl.BlockSpec((block_b, S, D), lambda b: (b, 0, 0)),
        ),
        compiler_params=pltpu.CompilerParams(
            dimension_semantics=("parallel",),
            vmem_limit_bytes=vmem_limit),
        cost_estimate=pl.CostEstimate(flops=int(flops),
                                      transcendentals=int(transcendentals),
                                      bytes_accessed=int(bytes_accessed)),
    )(*inputs)


def init_params(key, d_model, num_heads, d_ff):
    ks = jax.random.split(key, 20)
    s = 0.1
    n = jax.random.normal
    p = {
        # self-attention
        "wq1": s * n(ks[0], (d_model, d_model), jnp.float32),
        "bq1": s * n(ks[1], (1, d_model), jnp.float32),
        "wk1": s * n(ks[2], (d_model, d_model), jnp.float32),
        "bk1": s * n(ks[3], (1, d_model), jnp.float32),
        "wv1": s * n(ks[4], (d_model, d_model), jnp.float32),
        "bv1": s * n(ks[5], (1, d_model), jnp.float32),
        "wo1": s * n(ks[6], (d_model, d_model), jnp.float32),
        "bo1": s * n(ks[7], (1, d_model), jnp.float32),
        # cross-attention
        "wq2": s * n(ks[8], (d_model, d_model), jnp.float32),
        "bq2": s * n(ks[9], (1, d_model), jnp.float32),
        "wk2": s * n(ks[10], (d_model, d_model), jnp.float32),
        "bk2": s * n(ks[11], (1, d_model), jnp.float32),
        "wv2": s * n(ks[12], (d_model, d_model), jnp.float32),
        "bv2": s * n(ks[13], (1, d_model), jnp.float32),
        "wo2": s * n(ks[14], (d_model, d_model), jnp.float32),
        "bo2": s * n(ks[15], (1, d_model), jnp.float32),
        # feed-forward
        "w1": s * n(ks[16], (d_model, d_ff), jnp.float32),
        "b1": s * n(ks[17], (1, d_ff), jnp.float32),
        "w2": s * n(ks[18], (d_ff, d_model), jnp.float32),
        "b2": s * n(ks[19], (1, d_model), jnp.float32),
        # LayerNorms (PyTorch init: ones / zeros)
        "g1": jnp.ones((1, d_model), jnp.float32), "be1": jnp.zeros((1, d_model), jnp.float32),
        "g2": jnp.ones((1, d_model), jnp.float32), "be2": jnp.zeros((1, d_model), jnp.float32),
        "g3": jnp.ones((1, d_model), jnp.float32), "be3": jnp.zeros((1, d_model), jnp.float32),
    }
    return p


def decoder_block_reference(x, enc, params, *, num_heads,
                            tgt_mask=None, src_mask=None, compute_dtype=None):
    """Pure-JAX reference mirroring the PyTorch DecoderBlock (masked_fill semantics).
    If compute_dtype is set, matmul operands are cast like the kernel (f32 accumulation)."""
    B, S, D = x.shape
    dk = D // num_heads

    def cast(a):
        return a.astype(compute_dtype) if compute_dtype is not None else a

    def lin(a, w, b):
        return jnp.dot(cast(a), cast(w), preferred_element_type=jnp.float32) + b

    def ln(a, g, b):
        m = jnp.mean(a, axis=-1, keepdims=True)
        va = jnp.mean((a - m) ** 2, axis=-1, keepdims=True)
        return (a - m) / jnp.sqrt(va + LN_EPS) * g + b

    def mha(q_in, kv_in, wq, bq, wk, bk, wv, bv, wo, bo, mask):
        Sq, Sk = q_in.shape[1], kv_in.shape[1]
        q = lin(q_in, wq, bq).reshape(B, Sq, num_heads, dk).transpose(0, 2, 1, 3)
        k = lin(kv_in, wk, bk).reshape(B, Sk, num_heads, dk).transpose(0, 2, 1, 3)
        v = lin(kv_in, wv, bv).reshape(B, Sk, num_heads, dk).transpose(0, 2, 1, 3)
        scores = jnp.einsum("bhqd,bhkd->bhqk", cast(q), cast(k),
                            preferred_element_type=jnp.float32) / math.sqrt(dk)
        if mask is not None:
            scores = jnp.where(mask[:, None, :, :] == 0, MASK_FILL, scores)
        p = jax.nn.softmax(scores, axis=-1)
        ctx = jnp.einsum("bhqk,bhkd->bhqd", cast(p), cast(v),
                         preferred_element_type=jnp.float32)
        ctx = ctx.transpose(0, 2, 1, 3).reshape(B, Sq, D)
        return lin(ctx, wo, bo)

    sa = mha(x, x, params["wq1"], params["bq1"], params["wk1"], params["bk1"],
             params["wv1"], params["bv1"], params["wo1"], params["bo1"], tgt_mask)
    x1 = ln(x + sa, params["g1"], params["be1"])
    ca = mha(x1, enc, params["wq2"], params["bq2"], params["wk2"], params["bk2"],
             params["wv2"], params["bv2"], params["wo2"], params["bo2"], src_mask)
    x2 = ln(x1 + ca, params["g2"], params["be2"])
    ff = lin(jnp.maximum(lin(x2, params["w1"], params["b1"]), 0.0),
             params["w2"], params["b2"])
    return ln(x2 + ff, params["g3"], params["be3"])


if __name__ == "__main__":
    B, S_DEC, S_ENC, D, H, DFF = 2, 16, 24, 128, 4, 256

    key = jax.random.PRNGKey(0)
    kx, ke, kp = jax.random.split(key, 3)
    x = jax.random.normal(kx, (B, S_DEC, D), jnp.float32)
    enc = jax.random.normal(ke, (B, S_ENC, D), jnp.float32)
    params = init_params(kp, D, H, DFF)

    # Causal target mask (B, S, S) and a per-batch source padding mask (B, S, Se).
    tgt_mask = jnp.broadcast_to(jnp.tril(jnp.ones((S_DEC, S_DEC), jnp.float32)),
                                (B, S_DEC, S_DEC))
    valid_enc = jnp.array([S_ENC, S_ENC - 8])
    src_mask = (jnp.arange(S_ENC)[None, :] < valid_enc[:, None]).astype(jnp.float32)
    src_mask = jnp.broadcast_to(src_mask[:, None, :], (B, S_DEC, S_ENC))

    out = decoder_block_forward(x, enc, params, num_heads=H,
                                tgt_mask=tgt_mask, src_mask=src_mask,
                                compute_dtype=jnp.bfloat16)
    out = jax.block_until_ready(out)

    ref = decoder_block_reference(x, enc, params, num_heads=H,
                                  tgt_mask=tgt_mask, src_mask=src_mask,
                                  compute_dtype=jnp.bfloat16)
    np.testing.assert_allclose(np.asarray(out), np.asarray(ref), rtol=2e-2, atol=2e-2)

    print("KERNEL_OK")
</pallas_src>

<mosaic_0001>
module attributes {stable_mosaic.version = 11 : i64} {
  func.func @_decoder_block_kernel(%arg0: i32, %arg1: memref<2x16x128xf32, #tpu.memory_space<vmem>>, %arg2: memref<2x24x128xf32, #tpu.memory_space<vmem>>, %arg3: memref<2x16x16xf32, #tpu.memory_space<vmem>>, %arg4: memref<2x16x24xf32, #tpu.memory_space<vmem>>, %arg5: memref<128x384xbf16, #tpu.memory_space<vmem>>, %arg6: memref<1x384xf32, #tpu.memory_space<vmem>>, %arg7: memref<128x128xbf16, #tpu.memory_space<vmem>>, %arg8: memref<1x128xf32, #tpu.memory_space<vmem>>, %arg9: memref<1x128xf32, #tpu.memory_space<vmem>>, %arg10: memref<1x128xf32, #tpu.memory_space<vmem>>, %arg11: memref<128x128xbf16, #tpu.memory_space<vmem>>, %arg12: memref<1x128xf32, #tpu.memory_space<vmem>>, %arg13: memref<128x256xbf16, #tpu.memory_space<vmem>>, %arg14: memref<1x256xf32, #tpu.memory_space<vmem>>, %arg15: memref<128x128xbf16, #tpu.memory_space<vmem>>, %arg16: memref<1x128xf32, #tpu.memory_space<vmem>>, %arg17: memref<1x128xf32, #tpu.memory_space<vmem>>, %arg18: memref<1x128xf32, #tpu.memory_space<vmem>>, %arg19: memref<128x256xbf16, #tpu.memory_space<vmem>>, %arg20: memref<1x256xf32, #tpu.memory_space<vmem>>, %arg21: memref<256x128xbf16, #tpu.memory_space<vmem>>, %arg22: memref<1x128xf32, #tpu.memory_space<vmem>>, %arg23: memref<1x128xf32, #tpu.memory_space<vmem>>, %arg24: memref<1x128xf32, #tpu.memory_space<vmem>>, %arg25: memref<2x16x128xf32, #tpu.memory_space<vmem>>) attributes {dimension_semantics = [#tpu.dimension_semantics<parallel>], iteration_bounds = array<i64: 1>, scalar_prefetch = 0 : i64, scratch_operands = 0 : i64, tpu.core_type = #tpu.core_type<tc>, window_params = [{transform_indices = @transform_0, window_bounds = array<i64: 2, 16, 128>}, {transform_indices = @transform_1, window_bounds = array<i64: 2, 24, 128>}, {transform_indices = @transform_2, window_bounds = array<i64: 2, 16, 16>}, {transform_indices = @transform_3, window_bounds = array<i64: 2, 16, 24>}, {pipeline_mode = #tpu.pipeline_mode<synchronous>, transform_indices = @transform_4, window_bounds = array<i64: 128, 384>}, {pipeline_mode = #tpu.pipeline_mode<synchronous>, transform_indices = @transform_5, window_bounds = array<i64: 1, 384>}, {pipeline_mode = #tpu.pipeline_mode<synchronous>, transform_indices = @transform_6, window_bounds = array<i64: 128, 128>}, {pipeline_mode = #tpu.pipeline_mode<synchronous>, transform_indices = @transform_7, window_bounds = array<i64: 1, 128>}, {pipeline_mode = #tpu.pipeline_mode<synchronous>, transform_indices = @transform_8, window_bounds = array<i64: 1, 128>}, {pipeline_mode = #tpu.pipeline_mode<synchronous>, transform_indices = @transform_9, window_bounds = array<i64: 1, 128>}, {pipeline_mode = #tpu.pipeline_mode<synchronous>, transform_indices = @transform_10, window_bounds = array<i64: 128, 128>}, {pipeline_mode = #tpu.pipeline_mode<synchronous>, transform_indices = @transform_11, window_bounds = array<i64: 1, 128>}, {pipeline_mode = #tpu.pipeline_mode<synchronous>, transform_indices = @transform_12, window_bounds = array<i64: 128, 256>}, {pipeline_mode = #tpu.pipeline_mode<synchronous>, transform_indices = @transform_13, window_bounds = array<i64: 1, 256>}, {pipeline_mode = #tpu.pipeline_mode<synchronous>, transform_indices = @transform_14, window_bounds = array<i64: 128, 128>}, {pipeline_mode = #tpu.pipeline_mode<synchronous>, transform_indices = @transform_15, window_bounds = array<i64: 1, 128>}, {pipeline_mode = #tpu.pipeline_mode<synchronous>, transform_indices = @transform_16, window_bounds = array<i64: 1, 128>}, {pipeline_mode = #tpu.pipeline_mode<synchronous>, transform_indices = @transform_17, window_bounds = array<i64: 1, 128>}, {pipeline_mode = #tpu.pipeline_mode<synchronous>, transform_indices = @transform_18, window_bounds = array<i64: 128, 256>}, {pipeline_mode = #tpu.pipeline_mode<synchronous>, transform_indices = @transform_19, window_bounds = array<i64: 1, 256>}, {pipeline_mode = #tpu.pipeline_mode<synchronous>, transform_indices = @transform_20, window_bounds = array<i64: 256, 128>}, {pipeline_mode = #tpu.pipeline_mode<synchronous>, transform_indices = @transform_21, window_bounds = array<i64: 1, 128>}, {pipeline_mode = #tpu.pipeline_mode<synchronous>, transform_indices = @transform_22, window_bounds = array<i64: 1, 128>}, {pipeline_mode = #tpu.pipeline_mode<synchronous>, transform_indices = @transform_23, window_bounds = array<i64: 1, 128>}, {transform_indices = @transform_24, window_bounds = array<i64: 2, 16, 128>}]} {
    %c0 = arith.constant 0 : index
    %c0_0 = arith.constant 0 : index
    %c0_1 = arith.constant 0 : index
    %0 = vector.load %arg1[%c0, %c0_0, %c0_1] : memref<2x16x128xf32, #tpu.memory_space<vmem>>, vector<2x16x128xf32>
    %1 = vector.shape_cast %0 : vector<2x16x128xf32> to vector<32x128xf32>
    %c0_2 = arith.constant 0 : index
    %c0_3 = arith.constant 0 : index
    %c0_4 = arith.constant 0 : index
    %2 = vector.load %arg2[%c0_2, %c0_3, %c0_4] : memref<2x24x128xf32, #tpu.memory_space<vmem>>, vector<2x24x128xf32>
    %3 = vector.shape_cast %2 : vector<2x24x128xf32> to vector<48x128xf32>
    %4 = arith.truncf %1 : vector<32x128xf32> to vector<32x128xbf16>
    %5 = arith.truncf %3 : vector<48x128xf32> to vector<48x128xbf16>
    %c0_5 = arith.constant 0 : index
    %c0_6 = arith.constant 0 : index
    %6 = vector.load %arg5[%c0_5, %c0_6] : memref<128x384xbf16, #tpu.memory_space<vmem>>, vector<128x384xbf16>
    %cst = arith.constant dense<0.000000e+00> : vector<32x384xf32>
    %7 = tpu.matmul %4, %6, %cst {dimension_numbers = #tpu.dot_dimension_numbers<[1], [0], [0], [1], [0, 0, 1, 1], [], []>} : vector<32x128xbf16>, vector<128x384xbf16>, vector<32x384xf32> -> vector<32x384xf32>
    %c0_7 = arith.constant 0 : index
    %c0_8 = arith.constant 0 : index
    %8 = vector.load %arg6[%c0_7, %c0_8] : memref<1x384xf32, #tpu.memory_space<vmem>>, vector<1x384xf32>
    %9 = vector.broadcast %8 : vector<1x384xf32> to vector<32x384xf32>
    %10 = arith.addf %7, %9 : vector<32x384xf32>
    %11 = vector.extract_strided_slice %10 {offsets = [0, 0], sizes = [32, 128], strides = [1, 1]} : vector<32x384xf32> to vector<32x128xf32>
    %12 = vector.extract_strided_slice %10 {offsets = [0, 128], sizes = [32, 128], strides = [1, 1]} : vector<32x384xf32> to vector<32x128xf32>
    %13 = vector.extract_strided_slice %10 {offsets = [0, 256], sizes = [32, 128], strides = [1, 1]} : vector<32x384xf32> to vector<32x128xf32>
    %14 = arith.truncf %11 : vector<32x128xf32> to vector<32x128xbf16>
    %15 = vector.shape_cast %14 : vector<32x128xbf16> to vector<2x16x4x32xbf16>
    %16 = tpu.transpose %15, [0, 2, 1, 3] : vector<2x16x4x32xbf16> -> vector<2x4x16x32xbf16>
    %17 = vector.shape_cast %16 : vector<2x4x16x32xbf16> to vector<8x16x32xbf16>
    %18 = arith.truncf %12 : vector<32x128xf32> to vector<32x128xbf16>
    %19 = vector.shape_cast %18 : vector<32x128xbf16> to vector<2x16x4x32xbf16>
    %20 = tpu.transpose %19, [0, 2, 1, 3] : vector<2x16x4x32xbf16> -> vector<2x4x16x32xbf16>
    %21 = vector.shape_cast %20 : vector<2x4x16x32xbf16> to vector<8x16x32xbf16>
    %22 = arith.truncf %13 : vector<32x128xf32> to vector<32x128xbf16>
    %23 = vector.shape_cast %22 : vector<32x128xbf16> to vector<2x16x4x32xbf16>
    %24 = tpu.transpose %23, [0, 2, 1, 3] : vector<2x16x4x32xbf16> -> vector<2x4x16x32xbf16>
    %25 = vector.shape_cast %24 : vector<2x4x16x32xbf16> to vector<8x16x32xbf16>
    %cst_9 = arith.constant dense<0.000000e+00> : vector<8x16x16xf32>
    %26 = tpu.matmul %17, %21, %cst_9 {dimension_numbers = #tpu.dot_dimension_numbers<[2], [2], [1], [1], [0, 0, 0, 1, 1, 1], [0], [0]>} : vector<8x16x32xbf16>, vector<8x16x32xbf16>, vector<8x16x16xf32> -> vector<8x16x16xf32>
    %c0_10 = arith.constant 0 : index
    %c0_11 = arith.constant 0 : index
    %c0_12 = arith.constant 0 : index
    %27 = vector.load %arg3[%c0_10, %c0_11, %c0_12] : memref<2x16x16xf32, #tpu.memory_space<vmem>>, vector<2x16x16xf32>
    %28 = vector.shape_cast %26 : vector<8x16x16xf32> to vector<2x4x16x16xf32>
    %29 = vector.shape_cast %27 : vector<2x16x16xf32> to vector<2x1x16x16xf32>
    %30 = vector.broadcast %29 : vector<2x1x16x16xf32> to vector<2x4x16x16xf32>
    %31 = arith.addf %28, %30 : vector<2x4x16x16xf32>
    %32 = vector.shape_cast %31 : vector<2x4x16x16xf32> to vector<8x16x16xf32>
    %cst_13 = arith.constant dense<0xFF800000> : vector<8x16xf32>
    %33 = vector.multi_reduction <maximumf>, %32, %cst_13 [2] : vector<8x16x16xf32> to vector<8x16xf32>
    %34 = vector.shape_cast %33 : vector<8x16xf32> to vector<8x16x1xf32>
    %35 = vector.broadcast %34 : vector<8x16x1xf32> to vector<8x16x16xf32>
    %36 = arith.subf %32, %35 : vector<8x16x16xf32>
    %37 = math.exp %36 : vector<8x16x16xf32>
    %cst_14 = arith.constant dense<0.000000e+00> : vector<8x16xf32>
    %38 = vector.multi_reduction <add>, %37, %cst_14 [2] : vector<8x16x16xf32> to vector<8x16xf32>
    %39 = vector.shape_cast %38 : vector<8x16xf32> to vector<8x16x1xf32>
    %40 = tpu.reciprocal %39 {approx = true} : vector<8x16x1xf32> -> vector<8x16x1xf32>
    %41 = vector.broadcast %40 : vector<8x16x1xf32> to vector<8x16x16xf32>
    %42 = arith.mulf %37, %41 : vector<8x16x16xf32>
    %43 = arith.truncf %42 : vector<8x16x16xf32> to vector<8x16x16xbf16>
    %cst_15 = arith.constant dense<0.000000e+00> : vector<8x16x32xf32>
    %44 = tpu.matmul %43, %25, %cst_15 {dimension_numbers = #tpu.dot_dimension_numbers<[2], [1], [1], [2], [0, 0, 0, 1, 1, 2], [0], [0]>} : vector<8x16x16xbf16>, vector<8x16x32xbf16>, vector<8x16x32xf32> -> vector<8x16x32xf32>
    %45 = arith.truncf %44 : vector<8x16x32xf32> to vector<8x16x32xbf16>
    %46 = vector.shape_cast %45 : vector<8x16x32xbf16> to vector<2x4x16x32xbf16>
    %47 = tpu.transpose %46, [0, 2, 1, 3] : vector<2x4x16x32xbf16> -> vector<2x16x4x32xbf16>
    %48 = vector.shape_cast %47 : vector<2x16x4x32xbf16> to vector<32x128xbf16>
    %c0_16 = arith.constant 0 : index
    %c0_17 = arith.constant 0 : index
    %49 = vector.load %arg7[%c0_16, %c0_17] : memref<128x128xbf16, #tpu.memory_space<vmem>>, vector<128x128xbf16>
    %cst_18 = arith.constant dense<0.000000e+00> : vector<32x128xf32>
    %50 = tpu.matmul %48, %49, %cst_18 {dimension_numbers = #tpu.dot_dimension_numbers<[1], [0], [0], [1], [0, 0, 1, 1], [], []>} : vector<32x128xbf16>, vector<128x128xbf16>, vector<32x128xf32> -> vector<32x128xf32>
    %c0_19 = arith.constant 0 : index
    %c0_20 = arith.constant 0 : index
    %51 = vector.load %arg8[%c0_19, %c0_20] : memref<1x128xf32, #tpu.memory_space<vmem>>, vector<1x128xf32>
    %52 = vector.broadcast %51 : vector<1x128xf32> to vector<32x128xf32>
    %53 = arith.addf %50, %52 : vector<32x128xf32>
    %54 = arith.addf %1, %53 : vector<32x128xf32>
    %c0_21 = arith.constant 0 : index
    %c0_22 = arith.constant 0 : index
    %55 = vector.load %arg9[%c0_21, %c0_22] : memref<1x128xf32, #tpu.memory_space<vmem>>, vector<1x128xf32>
    %c0_23 = arith.constant 0 : index
    %c0_24 = arith.constant 0 : index
    %56 = vector.load %arg10[%c0_23, %c0_24] : memref<1x128xf32, #tpu.memory_space<vmem>>, vector<1x128xf32>
    %cst_25 = arith.constant dense<0.000000e+00> : vector<32xf32>
    %57 = vector.multi_reduction <add>, %54, %cst_25 [1] : vector<32x128xf32> to vector<32xf32>
    %58 = vector.shape_cast %57 : vector<32xf32> to vector<32x1xf32>
    %cst_26 = arith.constant 1.280000e+02 : f32
    %59 = vector.broadcast %cst_26 : f32 to vector<32x1xf32>
    %60 = arith.divf %58, %59 : vector<32x1xf32>
    %61 = vector.broadcast %60 : vector<32x1xf32> to vector<32x128xf32>
    %62 = arith.subf %54, %61 : vector<32x128xf32>
    %63 = arith.mulf %62, %62 : vector<32x128xf32>
    %cst_27 = arith.constant dense<0.000000e+00> : vector<32xf32>
    %64 = vector.multi_reduction <add>, %63, %cst_27 [1] : vector<32x128xf32> to vector<32xf32>
    %65 = vector.shape_cast %64 : vector<32xf32> to vector<32x1xf32>
    %cst_28 = arith.constant 1.280000e+02 : f32
    %66 = vector.broadcast %cst_28 : f32 to vector<32x1xf32>
    %67 = arith.divf %65, %66 : vector<32x1xf32>
    %cst_29 = arith.constant 9.99999974E-6 : f32
    %68 = vector.broadcast %cst_29 : f32 to vector<32x1xf32>
    %69 = arith.addf %67, %68 : vector<32x1xf32>
    %70 = math.rsqrt %69 : vector<32x1xf32>
    %71 = vector.broadcast %70 : vector<32x1xf32> to vector<32x128xf32>
    %72 = arith.mulf %62, %71 : vector<32x128xf32>
    %73 = vector.broadcast %55 : vector<1x128xf32> to vector<32x128xf32>
    %74 = arith.mulf %72, %73 : vector<32x128xf32>
    %75 = vector.broadcast %56 : vector<1x128xf32> to vector<32x128xf32>
    %76 = arith.addf %74, %75 : vector<32x128xf32>
    %77 = arith.truncf %76 : vector<32x128xf32> to vector<32x128xbf16>
    %c0_30 = arith.constant 0 : index
    %c0_31 = arith.constant 0 : index
    %78 = vector.load %arg11[%c0_30, %c0_31] : memref<128x128xbf16, #tpu.memory_space<vmem>>, vector<128x128xbf16>
    %cst_32 = arith.constant dense<0.000000e+00> : vector<32x128xf32>
    %79 = tpu.matmul %77, %78, %cst_32 {dimension_numbers = #tpu.dot_dimension_numbers<[1], [0], [0], [1], [0, 0, 1, 1], [], []>} : vector<32x128xbf16>, vector<128x128xbf16>, vector<32x128xf32> -> vector<32x128xf32>
    %c0_33 = arith.constant 0 : index
    %c0_34 = arith.constant 0 : index
    %80 = vector.load %arg12[%c0_33, %c0_34] : memref<1x128xf32, #tpu.memory_space<vmem>>, vector<1x128xf32>
    %81 = vector.broadcast %80 : vector<1x128xf32> to vector<32x128xf32>
    %82 = arith.addf %79, %81 : vector<32x128xf32>
    %c0_35 = arith.constant 0 : index
    %c0_36 = arith.constant 0 : index
    %83 = vector.load %arg13[%c0_35, %c0_36] : memref<128x256xbf16, #tpu.memory_space<vmem>>, vector<128x256xbf16>
    %cst_37 = arith.constant dense<0.000000e+00> : vector<48x256xf32>
    %84 = tpu.matmul %5, %83, %cst_37 {dimension_numbers = #tpu.dot_dimension_numbers<[1], [0], [0], [1], [0, 0, 1, 1], [], []>} : vector<48x128xbf16>, vector<128x256xbf16>, vector<48x256xf32> -> vector<48x256xf32>
    %c0_38 = arith.constant 0 : index
    %c0_39 = arith.constant 0 : index
    %85 = vector.load %arg14[%c0_38, %c0_39] : memref<1x256xf32, #tpu.memory_space<vmem>>, vector<1x256xf32>
    %86 = vector.broadcast %85 : vector<1x256xf32> to vector<48x256xf32>
    %87 = arith.addf %84, %86 : vector<48x256xf32>
    %88 = vector.extract_strided_slice %87 {offsets = [0, 0], sizes = [48, 128], strides = [1, 1]} : vector<48x256xf32> to vector<48x128xf32>
    %89 = vector.extract_strided_slice %87 {offsets = [0, 128], sizes = [48, 128], strides = [1, 1]} : vector<48x256xf32> to vector<48x128xf32>
    %90 = arith.truncf %82 : vector<32x128xf32> to vector<32x128xbf16>
    %91 = vector.shape_cast %90 : vector<32x128xbf16> to vector<2x16x4x32xbf16>
    %92 = tpu.transpose %91, [0, 2, 1, 3] : vector<2x16x4x32xbf16> -> vector<2x4x16x32xbf16>
    %93 = vector.shape_cast %92 : vector<2x4x16x32xbf16> to vector<8x16x32xbf16>
    %94 = arith.truncf %88 : vector<48x128xf32> to vector<48x128xbf16>
    %95 = vector.shape_cast %94 : vector<48x128xbf16> to vector<2x24x4x32xbf16>
    %96 = tpu.transpose %95, [0, 2, 1, 3] : vector<2x24x4x32xbf16> -> vector<2x4x24x32xbf16>
    %97 = vector.shape_cast %96 : vector<2x4x24x32xbf16> to vector<8x24x32xbf16>
    %98 = arith.truncf %89 : vector<48x128xf32> to vector<48x128xbf16>
    %99 = vector.shape_cast %98 : vector<48x128xbf16> to vector<2x24x4x32xbf16>
    %100 = tpu.transpose %99, [0, 2, 1, 3] : vector<2x24x4x32xbf16> -> vector<2x4x24x32xbf16>
    %101 = vector.shape_cast %100 : vector<2x4x24x32xbf16> to vector<8x24x32xbf16>
    %cst_40 = arith.constant dense<0.000000e+00> : vector<8x16x24xf32>
    %102 = tpu.matmul %93, %97, %cst_40 {dimension_numbers = #tpu.dot_dimension_numbers<[2], [2], [1], [1], [0, 0, 0, 1, 1, 1], [0], [0]>} : vector<8x16x32xbf16>, vector<8x24x32xbf16>, vector<8x16x24xf32> -> vector<8x16x24xf32>
    %c0_41 = arith.constant 0 : index
    %c0_42 = arith.constant 0 : index
    %c0_43 = arith.constant 0 : index
    %103 = vector.load %arg4[%c0_41, %c0_42, %c0_43] : memref<2x16x24xf32, #tpu.memory_space<vmem>>, vector<2x16x24xf32>
    %104 = vector.shape_cast %102 : vector<8x16x24xf32> to vector<2x4x16x24xf32>
    %105 = vector.shape_cast %103 : vector<2x16x24xf32> to vector<2x1x16x24xf32>
    %106 = vector.broadcast %105 : vector<2x1x16x24xf32> to vector<2x4x16x24xf32>
    %107 = arith.addf %104, %106 : vector<2x4x16x24xf32>
    %108 = vector.shape_cast %107 : vector<2x4x16x24xf32> to vector<8x16x24xf32>
    %cst_44 = arith.constant dense<0xFF800000> : vector<8x16xf32>
    %109 = vector.multi_reduction <maximumf>, %108, %cst_44 [2] : vector<8x16x24xf32> to vector<8x16xf32>
    %110 = vector.shape_cast %109 : vector<8x16xf32> to vector<8x16x1xf32>
    %111 = vector.broadcast %110 : vector<8x16x1xf32> to vector<8x16x24xf32>
    %112 = arith.subf %108, %111 : vector<8x16x24xf32>
    %113 = math.exp %112 : vector<8x16x24xf32>
    %cst_45 = arith.constant dense<0.000000e+00> : vector<8x16xf32>
    %114 = vector.multi_reduction <add>, %113, %cst_45 [2] : vector<8x16x24xf32> to vector<8x16xf32>
    %115 = vector.shape_cast %114 : vector<8x16xf32> to vector<8x16x1xf32>
    %116 = tpu.reciprocal %115 {approx = true} : vector<8x16x1xf32> -> vector<8x16x1xf32>
    %117 = vector.broadcast %116 : vector<8x16x1xf32> to vector<8x16x24xf32>
    %118 = arith.mulf %113, %117 : vector<8x16x24xf32>
    %119 = arith.truncf %118 : vector<8x16x24xf32> to vector<8x16x24xbf16>
    %cst_46 = arith.constant dense<0.000000e+00> : vector<8x16x32xf32>
    %120 = tpu.matmul %119, %101, %cst_46 {dimension_numbers = #tpu.dot_dimension_numbers<[2], [1], [1], [2], [0, 0, 0, 1, 1, 2], [0], [0]>} : vector<8x16x24xbf16>, vector<8x24x32xbf16>, vector<8x16x32xf32> -> vector<8x16x32xf32>
    %121 = arith.truncf %120 : vector<8x16x32xf32> to vector<8x16x32xbf16>
    %122 = vector.shape_cast %121 : vector<8x16x32xbf16> to vector<2x4x16x32xbf16>
    %123 = tpu.transpose %122, [0, 2, 1, 3] : vector<2x4x16x32xbf16> -> vector<2x16x4x32xbf16>
    %124 = vector.shape_cast %123 : vector<2x16x4x32xbf16> to vector<32x128xbf16>
    %c0_47 = arith.constant 0 : index
    %c0_48 = arith.constant 0 : index
    %125 = vector.load %arg15[%c0_47, %c0_48] : memref<128x128xbf16, #tpu.memory_space<vmem>>, vector<128x128xbf16>
    %cst_49 = arith.constant dense<0.000000e+00> : vector<32x128xf32>
    %126 = tpu.matmul %124, %125, %cst_49 {dimension_numbers = #tpu.dot_dimension_numbers<[1], [0], [0], [1], [0, 0, 1, 1], [], []>} : vector<32x128xbf16>, vector<128x128xbf16>, vector<32x128xf32> -> vector<32x128xf32>
    %c0_50 = arith.constant 0 : index
    %c0_51 = arith.constant 0 : index
    %127 = vector.load %arg16[%c0_50, %c0_51] : memref<1x128xf32, #tpu.memory_space<vmem>>, vector<1x128xf32>
    %128 = vector.broadcast %127 : vector<1x128xf32> to vector<32x128xf32>
    %129 = arith.addf %126, %128 : vector<32x128xf32>
    %130 = arith.addf %76, %129 : vector<32x128xf32>
    %c0_52 = arith.constant 0 : index
    %c0_53 = arith.constant 0 : index
    %131 = vector.load %arg17[%c0_52, %c0_53] : memref<1x128xf32, #tpu.memory_space<vmem>>, vector<1x128xf32>
    %c0_54 = arith.constant 0 : index
    %c0_55 = arith.constant 0 : index
    %132 = vector.load %arg18[%c0_54, %c0_55] : memref<1x128xf32, #tpu.memory_space<vmem>>, vector<1x128xf32>
    %cst_56 = arith.constant dense<0.000000e+00> : vector<32xf32>
    %133 = vector.multi_reduction <add>, %130, %cst_56 [1] : vector<32x128xf32> to vector<32xf32>
    %134 = vector.shape_cast %133 : vector<32xf32> to vector<32x1xf32>
    %cst_57 = arith.constant 1.280000e+02 : f32
    %135 = vector.broadcast %cst_57 : f32 to vector<32x1xf32>
    %136 = arith.divf %134, %135 : vector<32x1xf32>
    %137 = vector.broadcast %136 : vector<32x1xf32> to vector<32x128xf32>
    %138 = arith.subf %130, %137 : vector<32x128xf32>
    %139 = arith.mulf %138, %138 : vector<32x128xf32>
    %cst_58 = arith.constant dense<0.000000e+00> : vector<32xf32>
    %140 = vector.multi_reduction <add>, %139, %cst_58 [1] : vector<32x128xf32> to vector<32xf32>
    %141 = vector.shape_cast %140 : vector<32xf32> to vector<32x1xf32>
    %cst_59 = arith.constant 1.280000e+02 : f32
    %142 = vector.broadcast %cst_59 : f32 to vector<32x1xf32>
    %143 = arith.divf %141, %142 : vector<32x1xf32>
    %cst_60 = arith.constant 9.99999974E-6 : f32
    %144 = vector.broadcast %cst_60 : f32 to vector<32x1xf32>
    %145 = arith.addf %143, %144 : vector<32x1xf32>
    %146 = math.rsqrt %145 : vector<32x1xf32>
    %147 = vector.broadcast %146 : vector<32x1xf32> to vector<32x128xf32>
    %148 = arith.mulf %138, %147 : vector<32x128xf32>
    %149 = vector.broadcast %131 : vector<1x128xf32> to vector<32x128xf32>
    %150 = arith.mulf %148, %149 : vector<32x128xf32>
    %151 = vector.broadcast %132 : vector<1x128xf32> to vector<32x128xf32>
    %152 = arith.addf %150, %151 : vector<32x128xf32>
    %153 = arith.truncf %152 : vector<32x128xf32> to vector<32x128xbf16>
    %c0_61 = arith.constant 0 : index
    %c0_62 = arith.constant 0 : index
    %154 = vector.load %arg19[%c0_61, %c0_62] : memref<128x256xbf16, #tpu.memory_space<vmem>>, vector<128x256xbf16>
    %cst_63 = arith.constant dense<0.000000e+00> : vector<32x256xf32>
    %155 = tpu.matmul %153, %154, %cst_63 {dimension_numbers = #tpu.dot_dimension_numbers<[1], [0], [0], [1], [0, 0, 1, 1], [], []>} : vector<32x128xbf16>, vector<128x256xbf16>, vector<32x256xf32> -> vector<32x256xf32>
    %c0_64 = arith.constant 0 : index
    %c0_65 = arith.constant 0 : index
    %156 = vector.load %arg20[%c0_64, %c0_65] : memref<1x256xf32, #tpu.memory_space<vmem>>, vector<1x256xf32>
    %157 = vector.broadcast %156 : vector<1x256xf32> to vector<32x256xf32>
    %158 = arith.addf %155, %157 : vector<32x256xf32>
    %cst_66 = arith.constant 0.000000e+00 : f32
    %159 = vector.broadcast %cst_66 : f32 to vector<32x256xf32>
    %160 = arith.maximumf %158, %159 : vector<32x256xf32>
    %161 = arith.truncf %160 : vector<32x256xf32> to vector<32x256xbf16>
    %c0_67 = arith.constant 0 : index
    %c0_68 = arith.constant 0 : index
    %162 = vector.load %arg21[%c0_67, %c0_68] : memref<256x128xbf16, #tpu.memory_space<vmem>>, vector<256x128xbf16>
    %cst_69 = arith.constant dense<0.000000e+00> : vector<32x128xf32>
    %163 = tpu.matmul %161, %162, %cst_69 {dimension_numbers = #tpu.dot_dimension_numbers<[1], [0], [0], [1], [0, 0, 1, 1], [], []>} : vector<32x256xbf16>, vector<256x128xbf16>, vector<32x128xf32> -> vector<32x128xf32>
    %c0_70 = arith.constant 0 : index
    %c0_71 = arith.constant 0 : index
    %164 = vector.load %arg22[%c0_70, %c0_71] : memref<1x128xf32, #tpu.memory_space<vmem>>, vector<1x128xf32>
    %165 = vector.broadcast %164 : vector<1x128xf32> to vector<32x128xf32>
    %166 = arith.addf %163, %165 : vector<32x128xf32>
    %167 = arith.addf %152, %166 : vector<32x128xf32>
    %c0_72 = arith.constant 0 : index
    %c0_73 = arith.constant 0 : index
    %168 = vector.load %arg23[%c0_72, %c0_73] : memref<1x128xf32, #tpu.memory_space<vmem>>, vector<1x128xf32>
    %c0_74 = arith.constant 0 : index
    %c0_75 = arith.constant 0 : index
    %169 = vector.load %arg24[%c0_74, %c0_75] : memref<1x128xf32, #tpu.memory_space<vmem>>, vector<1x128xf32>
    %cst_76 = arith.constant dense<0.000000e+00> : vector<32xf32>
    %170 = vector.multi_reduction <add>, %167, %cst_76 [1] : vector<32x128xf32> to vector<32xf32>
    %171 = vector.shape_cast %170 : vector<32xf32> to vector<32x1xf32>
    %cst_77 = arith.constant 1.280000e+02 : f32
    %172 = vector.broadcast %cst_77 : f32 to vector<32x1xf32>
    %173 = arith.divf %171, %172 : vector<32x1xf32>
    %174 = vector.broadcast %173 : vector<32x1xf32> to vector<32x128xf32>
    %175 = arith.subf %167, %174 : vector<32x128xf32>
    %176 = arith.mulf %175, %175 : vector<32x128xf32>
    %cst_78 = arith.constant dense<0.000000e+00> : vector<32xf32>
    %177 = vector.multi_reduction <add>, %176, %cst_78 [1] : vector<32x128xf32> to vector<32xf32>
    %178 = vector.shape_cast %177 : vector<32xf32> to vector<32x1xf32>
    %cst_79 = arith.constant 1.280000e+02 : f32
    %179 = vector.broadcast %cst_79 : f32 to vector<32x1xf32>
    %180 = arith.divf %178, %179 : vector<32x1xf32>
    %cst_80 = arith.constant 9.99999974E-6 : f32
    %181 = vector.broadcast %cst_80 : f32 to vector<32x1xf32>
    %182 = arith.addf %180, %181 : vector<32x1xf32>
    %183 = math.rsqrt %182 : vector<32x1xf32>
    %184 = vector.broadcast %183 : vector<32x1xf32> to vector<32x128xf32>
    %185 = arith.mulf %175, %184 : vector<32x128xf32>
    %186 = vector.broadcast %168 : vector<1x128xf32> to vector<32x128xf32>
    %187 = arith.mulf %185, %186 : vector<32x128xf32>
    %188 = vector.broadcast %169 : vector<1x128xf32> to vector<32x128xf32>
    %189 = arith.addf %187, %188 : vector<32x128xf32>
    %190 = vector.shape_cast %189 : vector<32x128xf32> to vector<2x16x128xf32>
    %c0_81 = arith.constant 0 : index
    %c0_82 = arith.constant 0 : index
    %c0_83 = arith.constant 0 : index
    %191 = vector.load %arg25[%c0_81, %c0_82, %c0_83] : memref<2x16x128xf32, #tpu.memory_space<vmem>>, vector<2x16x128xf32>
    tpu.vector_store %arg25[%c0_81, %c0_82, %c0_83], %190 {strides = array<i32>} : memref<2x16x128xf32, #tpu.memory_space<vmem>>, vector<2x16x128xf32>,
    return
  }
  func.func @transform_0(%arg0: i32) -> (i32, i32, i32) {
    %c0_i32 = arith.constant 0 : i32
    %c0_i32_0 = arith.constant 0 : i32
    %c0_i32_1 = arith.constant 0 : i32
    return %arg0, %c0_i32, %c0_i32_0 : i32, i32, i32
  }
  func.func @transform_1(%arg0: i32) -> (i32, i32, i32) {
    %c0_i32 = arith.constant 0 : i32
    %c0_i32_0 = arith.constant 0 : i32
    %c0_i32_1 = arith.constant 0 : i32
    return %arg0, %c0_i32, %c0_i32_0 : i32, i32, i32
  }
  func.func @transform_2(%arg0: i32) -> (i32, i32, i32) {
    %c0_i32 = arith.constant 0 : i32
    %c0_i32_0 = arith.constant 0 : i32
    %c0_i32_1 = arith.constant 0 : i32
    return %arg0, %c0_i32, %c0_i32_0 : i32, i32, i32
  }
  func.func @transform_3(%arg0: i32) -> (i32, i32, i32) {
    %c0_i32 = arith.constant 0 : i32
    %c0_i32_0 = arith.constant 0 : i32
    %c0_i32_1 = arith.constant 0 : i32
    return %arg0, %c0_i32, %c0_i32_0 : i32, i32, i32
  }
  func.func @transform_4(%arg0: i32) -> (i32, i32) {
    %c0_i32 = arith.constant 0 : i32
    %c0_i32_0 = arith.constant 0 : i32
    %c0_i32_1 = arith.constant 0 : i32
    return %c0_i32, %c0_i32_0 : i32, i32
  }
  func.func @transform_5(%arg0: i32) -> (i32, i32) {
    %c0_i32 = arith.constant 0 : i32
    %c0_i32_0 = arith.constant 0 : i32
    %c0_i32_1 = arith.constant 0 : i32
    return %c0_i32, %c0_i32_0 : i32, i32
  }
  func.func @transform_6(%arg0: i32) -> (i32, i32) {
    %c0_i32 = arith.constant 0 : i32
    %c0_i32_0 = arith.constant 0 : i32
    %c0_i32_1 = arith.constant 0 : i32
    return %c0_i32, %c0_i32_0 : i32, i32
  }
  func.func @transform_7(%arg0: i32) -> (i32, i32) {
    %c0_i32 = arith.constant 0 : i32
    %c0_i32_0 = arith.constant 0 : i32
    %c0_i32_1 = arith.constant 0 : i32
    return %c0_i32, %c0_i32_0 : i32, i32
  }
  func.func @transform_8(%arg0: i32) -> (i32, i32) {
    %c0_i32 = arith.constant 0 : i32
    %c0_i32_0 = arith.constant 0 : i32
    %c0_i32_1 = arith.constant 0 : i32
    return %c0_i32, %c0_i32_0 : i32, i32
  }
  func.func @transform_9(%arg0: i32) -> (i32, i32) {
    %c0_i32 = arith.constant 0 : i32
    %c0_i32_0 = arith.constant 0 : i32
    %c0_i32_1 = arith.constant 0 : i32
    return %c0_i32, %c0_i32_0 : i32, i32
  }
  func.func @transform_10(%arg0: i32) -> (i32, i32) {
    %c0_i32 = arith.constant 0 : i32
    %c0_i32_0 = arith.constant 0 : i32
    %c0_i32_1 = arith.constant 0 : i32
    return %c0_i32, %c0_i32_0 : i32, i32
  }
  func.func @transform_11(%arg0: i32) -> (i32, i32) {
    %c0_i32 = arith.constant 0 : i32
    %c0_i32_0 = arith.constant 0 : i32
    %c0_i32_1 = arith.constant 0 : i32
    return %c0_i32, %c0_i32_0 : i32, i32
  }
  func.func @transform_12(%arg0: i32) -> (i32, i32) {
    %c0_i32 = arith.constant 0 : i32
    %c0_i32_0 = arith.constant 0 : i32
    %c0_i32_1 = arith.constant 0 : i32
    return %c0_i32, %c0_i32_0 : i32, i32
  }
  func.func @transform_13(%arg0: i32) -> (i32, i32) {
    %c0_i32 = arith.constant 0 : i32
    %c0_i32_0 = arith.constant 0 : i32
    %c0_i32_1 = arith.constant 0 : i32
    return %c0_i32, %c0_i32_0 : i32, i32
  }
  func.func @transform_14(%arg0: i32) -> (i32, i32) {
    %c0_i32 = arith.constant 0 : i32
    %c0_i32_0 = arith.constant 0 : i32
    %c0_i32_1 = arith.constant 0 : i32
    return %c0_i32, %c0_i32_0 : i32, i32
  }
  func.func @transform_15(%arg0: i32) -> (i32, i32) {
    %c0_i32 = arith.constant 0 : i32
    %c0_i32_0 = arith.constant 0 : i32
    %c0_i32_1 = arith.constant 0 : i32
    return %c0_i32, %c0_i32_0 : i32, i32
  }
  func.func @transform_16(%arg0: i32) -> (i32, i32) {
    %c0_i32 = arith.constant 0 : i32
    %c0_i32_0 = arith.constant 0 : i32
    %c0_i32_1 = arith.constant 0 : i32
    return %c0_i32, %c0_i32_0 : i32, i32
  }
  func.func @transform_17(%arg0: i32) -> (i32, i32) {
    %c0_i32 = arith.constant 0 : i32
    %c0_i32_0 = arith.constant 0 : i32
    %c0_i32_1 = arith.constant 0 : i32
    return %c0_i32, %c0_i32_0 : i32, i32
  }
  func.func @transform_18(%arg0: i32) -> (i32, i32) {
    %c0_i32 = arith.constant 0 : i32
    %c0_i32_0 = arith.constant 0 : i32
    %c0_i32_1 = arith.constant 0 : i32
    return %c0_i32, %c0_i32_0 : i32, i32
  }
  func.func @transform_19(%arg0: i32) -> (i32, i32) {
    %c0_i32 = arith.constant 0 : i32
    %c0_i32_0 = arith.constant 0 : i32
    %c0_i32_1 = arith.constant 0 : i32
    return %c0_i32, %c0_i32_0 : i32, i32
  }
  func.func @transform_20(%arg0: i32) -> (i32, i32) {
    %c0_i32 = arith.constant 0 : i32
    %c0_i32_0 = arith.constant 0 : i32
    %c0_i32_1 = arith.constant 0 : i32
    return %c0_i32, %c0_i32_0 : i32, i32
  }
  func.func @transform_21(%arg0: i32) -> (i32, i32) {
    %c0_i32 = arith.constant 0 : i32
    %c0_i32_0 = arith.constant 0 : i32
    %c0_i32_1 = arith.constant 0 : i32
    return %c0_i32, %c0_i32_0 : i32, i32
  }
  func.func @transform_22(%arg0: i32) -> (i32, i32) {
    %c0_i32 = arith.constant 0 : i32
    %c0_i32_0 = arith.constant 0 : i32
    %c0_i32_1 = arith.constant 0 : i32
    return %c0_i32, %c0_i32_0 : i32, i32
  }
  func.func @transform_23(%arg0: i32) -> (i32, i32) {
    %c0_i32 = arith.constant 0 : i32
    %c0_i32_0 = arith.constant 0 : i32
    %c0_i32_1 = arith.constant 0 : i32
    return %c0_i32, %c0_i32_0 : i32, i32
  }
  func.func @transform_24(%arg0: i32) -> (i32, i32, i32) {
    %c0_i32 = arith.constant 0 : i32
    %c0_i32_0 = arith.constant 0 : i32
    %c0_i32_1 = arith.constant 0 : i32
    return %arg0, %c0_i32, %c0_i32_0 : i32, i32, i32
  }
}

</mosaic_0001>

<bundles_post_ra>
// kernel: tpu_custom_call.1
= control target key start
LH: loop header
LB: loop body
LE: loop exit
PB: predicated region body
PF: predicated region fallthrough
CT: control target
= control target key end

     0   :  { %s11981_s0 = inlined_call_operand.hbm [shape: f32[2,16,128], index: 0, kind: input, shape index: {}]   ;;  %s11982_s1 = inlined_call_operand.hbm [shape: f32[2,24,128], index: 1, kind: input, shape index: {}]   ;;  %s11983_s2 = inlined_call_operand.hbm [shape: f32[2,16,16], index: 2, kind: input, shape index: {}]   ;;  %s11984_s3 = inlined_call_operand.hbm [shape: f32[2,16,24], index: 3, kind: input, shape index: {}]   ;;  %s11985_s4 = inlined_call_operand.hbm [shape: bf16[128,384], index: 4, kind: input, shape index: {}]   ;;  %s11986_s5 = inlined_call_operand.vmem [shape: f32[1,384], index: 5, kind: input, shape index: {}]   ;;  %s11987_s6 = inlined_call_operand.hbm [shape: bf16[128,128], index: 6, kind: input, shape index: {}]   ;;  %s11988_s7 = inlined_call_operand.vmem [shape: f32[1,128], index: 7, kind: input, shape index: {}]   ;;  %s11989_s8 = inlined_call_operand.vmem [shape: f32[1,128], index: 8, kind: input, shape index: {}]   ;;  %s11990_s9 = inlined_call_operand.vmem [shape: f32[1,128], index: 9, kind: input, shape index: {}]   ;;  %s11991_s10 = inlined_call_operand.hbm [shape: bf16[128,128], index: 10, kind: input, shape index: {}]   ;;  %s11992_s11 = inlined_call_operand.vmem [shape: f32[1,128], index: 11, kind: input, shape index: {}]   ;;  %s11993_s12 = inlined_call_operand.hbm [shape: bf16[128,256], index: 12, kind: input, shape index: {}]   ;;  %s11994_s13 = inlined_call_operand.vmem [shape: f32[1,256], index: 13, kind: input, shape index: {}]   ;;  %s11995_s14 = inlined_call_operand.hbm [shape: bf16[128,128], index: 14, kind: input, shape index: {}]   ;;  %s11996_s15 = inlined_call_operand.vmem [shape: f32[1,128], index: 15, kind: input, shape index: {}]   ;;  %s11997_s16 = inlined_call_operand.vmem [shape: f32[1,128], index: 16, kind: input, shape index: {}]   ;;  %s11998_s17 = inlined_call_operand.vmem [shape: f32[1,128], index: 17, kind: input, shape index: {}]   ;;  %s11999_s18 = inlined_call_operand.hbm [shape: bf16[128,256], index: 18, kind: input, shape index: {}]   ;;  %s12000_s19 = inlined_call_operand.vmem [shape: f32[1,256], index: 19, kind: input, shape index: {}]   ;;  %s12001_s20 = inlined_call_operand.hbm [shape: bf16[256,128], index: 20, kind: input, shape index: {}]   ;;  %s12002_s21 = inlined_call_operand.vmem [shape: f32[1,128], index: 21, kind: input, shape index: {}]   ;;  %s12003_s22 = inlined_call_operand.vmem [shape: f32[1,128], index: 22, kind: input, shape index: {}]   ;;  %s12004_s23 = inlined_call_operand.vmem [shape: f32[1,128], index: 23, kind: input, shape index: {}]   ;;  %s12005_s24 = inlined_call_operand.hbm [shape: f32[2,16,128], index: 24, kind: output, shape index: {}]  }
   0x1   :  { %12023 = sst [smem:[#allocation28_spill]] %s11981_s0 }
   0x2   :  { %12024 = sst [smem:[#allocation29_spill]] %s11982_s1 }
   0x3   :  { %12025 = sst [smem:[#allocation30_spill]] %s11983_s2 }
   0x4   :  { %12026 = sst [smem:[#allocation31_spill]] %s11984_s3 }
   0x5   :  { %12027 = sst [smem:[#allocation32_spill]] %s11985_s4 }
   0x6   :  { %12028 = sst [smem:[#allocation33_spill]] %s11986_s5 }
   0x7   :  { %12029 = sst [smem:[#allocation34_spill]] %s11987_s6 }
   0x8   :  { %12030 = sst [smem:[#allocation35_spill]] %s11988_s7 }
   0x9   :  { %12031 = sst [smem:[#allocation36_spill]] %s11989_s8 }
   0xa   :  { %12032 = sst [smem:[#allocation37_spill]] %s12004_s23 }
   0xb   :  { %12033 = sst [smem:[#allocation38_spill]] %s12005_s24 }
   0xc   :  { %29 = vsyncpa [#allocation3], 0 }
   0xd   :  { %30 = vsyncpa [#allocation6], 0 }
   0xe   :  { %31 = vsyncpa [#allocation9], 0 }
   0xf   :  { %32 = vsyncpa [#allocation12], 0 }
  0x10   :  { %33 = vsyncpa [#allocation15], 0 }
  0x11   :  { %34 = vsyncpa [#allocation18], 0 }
  0x12   :  { %35 = vsyncpa [#allocation4], 0  ;;  %s9720_s5 = smov [#allocation5]   ;;  %s9721_s27 = smov [#allocation8]  }
  0x13   :  { %s53_s26 = sshll.u32 %s9720_s5, 4  ;;  %s77_s28 = sshll.u32 %s9721_s27, 4  ;;  %s54_s26 = int_to_ptr.vmem [resolvable:$true] %s53_s26  ;;  %s9870_s28 = int_to_ptr.vmem [resolvable:$true] %s77_s28 }
  0x14   :  { %s12034_s29 = sld [smem:[#allocation29_spill]] }
  0x1a   :  { %s9442_s0 = scalar_lea.hbm %s12034_s29, 768 }
  0x1b   :  { %p9443_p0 = scmp.ne.s32.totalorder %s12034_s29, %s9442_s0  ;;  %p9446_p1 = scmp.lt.u32.totalorder %s9442_s0, %s12034_s29 }
  0x1d   :  { %p9448_p2 = pnand %p9446_p1, %p9443_p0 }
  0x1f   :  { %9451 = shalt.err (!%p9448_p2)
}
  0x20   :  { %s9452_s8 = scalar_lea.vmem %s54_s26, 768  ;;  %p9457_p4 = scmp.lt.s32.totalorder %s54_s26, %s54_s26 }
  0x21   :  { %p9453_p3 = scmp.ne.s32.totalorder %s54_s26, %s9452_s8  ;;  %p9458_p5 = scmp.lt.s32.totalorder %s9452_s8, %s9452_s8 }
  0x23   :  { %p9459_p6 = por %p9458_p5, %p9457_p4 }
  0x25   :  { %p9460_p7 = pnand %p9459_p6, %p9453_p3 }
  0x27   :  { %9463 = shalt.err (!%p9460_p7)
}
  0x28   :  { %s12013_s4 = smov 128   ;;  %s12015_s1 = smov 8  }
  0x29   :  { %59 = dma.hbm_to_vmem [thread:$0]  %s12034_s29, 768, %s54_s26, [#allocation6], %s12013_s4, %s12013_s4, %s12015_s1  }
  0x2a   :  { %s12035_s0 = sld [smem:[#allocation31_spill]] }
  0x30   :  { %s9464_s7 = scalar_lea.hbm %s12035_s0, 512 }
  0x31   :  { %p9465_p8 = scmp.ne.s32.totalorder %s12035_s0, %s9464_s7  ;;  %p9468_p9 = scmp.lt.u32.totalorder %s9464_s7, %s12035_s0 }
  0x33   :  { %p9470_p10 = pnand %p9468_p9, %p9465_p8 }
  0x35   :  { %9473 = shalt.err (!%p9470_p10)
}
  0x36   :  { %s9474_s24 = scalar_lea.vmem %s9870_s28, 512  ;;  %p9479_p12 = scmp.lt.s32.totalorder %s9870_s28, %s9870_s28 }
  0x37   :  { %p9475_p11 = scmp.ne.s32.totalorder %s9870_s28, %s9474_s24  ;;  %p9480_p13 = scmp.lt.s32.totalorder %s9474_s24, %s9474_s24 }
  0x39   :  { %p9481_p0 = por %p9480_p13, %p9479_p12 }
  0x3b   :  { %p9482_p1 = pnand %p9481_p0, %p9475_p11 }
  0x3d   :  { %9485 = shalt.err (!%p9482_p1)
}
  0x3e   :  { %83 = dma.hbm_to_vmem [thread:$0]  %s12035_s0, 512, %s9870_s28, [#allocation9], %s12013_s4, %s12013_s4, %s12015_s1  }
  0x3f   :  { %s9724_s5 = smov [#allocation11]   ;;  %s12036_s7 = sld [smem:[#allocation34_spill]] }
  0x40   :  { %s103_s27 = sshll.u32 %s9724_s5, 4  ;;  %s104_s27 = int_to_ptr.vmem [resolvable:$true] %s103_s27 }
  0x45   :  { %s9486_s30 = scalar_lea.hbm %s12036_s7, 1024 }
  0x46   :  { %p9487_p2 = scmp.ne.s32.totalorder %s12036_s7, %s9486_s30  ;;  %p9490_p3 = scmp.lt.u32.totalorder %s9486_s30, %s12036_s7 }
  0x48   :  { %p9492_p4 = pnand %p9490_p3, %p9487_p2 }
  0x4a   :  { %9495 = shalt.err (!%p9492_p4)
}
  0x4b   :  { %s9496_s23 = scalar_lea.vmem %s104_s27, 1024  ;;  %p9501_p6 = scmp.lt.s32.totalorder %s104_s27, %s104_s27 }
  0x4c   :  { %p9497_p5 = scmp.ne.s32.totalorder %s104_s27, %s9496_s23  ;;  %p9502_p7 = scmp.lt.s32.totalorder %s9496_s23, %s9496_s23 }
  0x4e   :  { %p9503_p8 = por %p9502_p7, %p9501_p6 }
  0x50   :  { %p9504_p9 = pnand %p9503_p8, %p9497_p5 }
  0x52   :  { %9507 = shalt.err (!%p9504_p9)
}
  0x53   :  { %s12017_s28 = smov 64   ;;  %s12019_s0 = smov 4  }
  0x54   :  { %109 = dma.hbm_to_vmem [thread:$0]  %s12036_s7, 1024, %s104_s27, [#allocation12], %s12017_s28, %s12017_s28, %s12019_s0  }
  0x55   :  { %s9727_s5 = smov [#allocation14]   ;;  %s9728_s2 = smov [#allocation17]  }
  0x56   :  { %s135_s6 = sshll.u32 %s9727_s5, 4  ;;  %s167_s30 = sshll.u32 %s9728_s2, 4  ;;  %s136_s6 = int_to_ptr.vmem [resolvable:$true] %s135_s6  ;;  %s168_s30 = int_to_ptr.vmem [resolvable:$true] %s167_s30 }
  0x57   :  { %s9508_s23 = scalar_lea.hbm %s11993_s12, 2048 }
  0x58   :  { %p9509_p10 = scmp.ne.s32.totalorder %s11993_s12, %s9508_s23  ;;  %p9512_p11 = scmp.lt.u32.totalorder %s9508_s23, %s11993_s12 }
  0x5a   :  { %p9514_p12 = pnand %p9512_p11, %p9509_p10 }
  0x5c   :  { %9517 = shalt.err (!%p9514_p12)
}
  0x5d   :  { %s9518_s27 = scalar_lea.vmem %s136_s6, 2048  ;;  %p9523_p0 = scmp.lt.s32.totalorder %s136_s6, %s136_s6 }
  0x5e   :  { %p9519_p13 = scmp.ne.s32.totalorder %s136_s6, %s9518_s27  ;;  %p9524_p1 = scmp.lt.s32.totalorder %s9518_s27, %s9518_s27 }
  0x60   :  { %p9525_p2 = por %p9524_p1, %p9523_p0 }
  0x62   :  { %p9526_p3 = pnand %p9525_p2, %p9519_p13 }
  0x64   :  { %9529 = shalt.err (!%p9526_p3)
}
  0x65   :  { %s12037_s7 = smov 8   ;;  %s12038_s26 = smov 128  }
  0x66   :  { %141 = dma.hbm_to_vmem [thread:$0]  %s11993_s12, 2048, %s136_s6, [#allocation15], %s12038_s26, %s12038_s26, %s12037_s7  }
  0x67   :  { %s9530_s1 = scalar_lea.hbm %s11999_s18, 2048 }
  0x68   :  { %p9531_p4 = scmp.ne.s32.totalorder %s11999_s18, %s9530_s1  ;;  %p9534_p5 = scmp.lt.u32.totalorder %s9530_s1, %s11999_s18 }
  0x6a   :  { %p9536_p6 = pnand %p9534_p5, %p9531_p4 }
  0x6c   :  { %9539 = shalt.err (!%p9536_p6)
}
  0x6d   :  { %s9540_s8 = scalar_lea.vmem %s168_s30, 2048  ;;  %p9545_p8 = scmp.lt.s32.totalorder %s168_s30, %s168_s30 }
  0x6e   :  { %p9541_p7 = scmp.ne.s32.totalorder %s168_s30, %s9540_s8  ;;  %p9546_p9 = scmp.lt.s32.totalorder %s9540_s8, %s9540_s8 }
  0x70   :  { %p9547_p10 = por %p9546_p9, %p9545_p8 }
  0x72   :  { %p9548_p11 = pnand %p9547_p10, %p9541_p7 }
  0x74   :  { %9551 = shalt.err (!%p9548_p11)
}
  0x75   :  { %173 = dma.hbm_to_vmem [thread:$0]  %s11999_s18, 2048, %s168_s30, [#allocation18], %s12038_s26, %s12038_s26, %s12037_s7  }
  0x76   :  { %s9729_s27 = smov [#allocation2]   ;;  %s9730_s5 = smov [#allocation7]  }
  0x77   :  { %s41_s29 = sshll.u32 %s9729_s27, 4  ;;  %s65_s2 = sshll.u32 %s9730_s5, 4  ;;  %s42_s29 = int_to_ptr.vmem [resolvable:$true] %s41_s29  ;;  %s66_s2 = int_to_ptr.vmem [resolvable:$true] %s65_s2 }
  0x78   :  { %s12039_s3 = sld [smem:[#allocation28_spill]] }
  0x7e   :  { %s9552_s24 = scalar_lea.hbm %s12039_s3, 512 }
  0x7f   :  { %p9553_p12 = scmp.ne.s32.totalorder %s12039_s3, %s9552_s24  ;;  %p9556_p13 = scmp.lt.u32.totalorder %s9552_s24, %s12039_s3 }
  0x81   :  { %p9558_p0 = pnand %p9556_p13, %p9553_p12 }
  0x83   :  { %9561 = shalt.err (!%p9558_p0)
}
  0x84   :  { %s9562_s18 = scalar_lea.vmem %s42_s29, 512  ;;  %p9567_p2 = scmp.lt.s32.totalorder %s42_s29, %s42_s29 }
  0x85   :  { %p9563_p1 = scmp.ne.s32.totalorder %s42_s29, %s9562_s18  ;;  %p9568_p3 = scmp.lt.s32.totalorder %s9562_s18, %s9562_s18 }
  0x87   :  { %p9569_p4 = por %p9568_p3, %p9567_p2 }
  0x89   :  { %p9570_p5 = pnand %p9569_p4, %p9563_p1 }
  0x8b   :  { %9573 = shalt.err (!%p9570_p5)
}
  0x8c   :  { %47 = dma.hbm_to_vmem [thread:$0]  %s12039_s3, 512, %s42_s29, [#allocation3], %s12038_s26, %s12038_s26, %s12037_s7  }
  0x8d   :  { %s12040_s27 = sld [smem:[#allocation30_spill]] }
  0x93   :  { %s9574_s5 = scalar_lea.hbm %s12040_s27, 512 }
  0x94   :  { %p9575_p6 = scmp.ne.s32.totalorder %s12040_s27, %s9574_s5  ;;  %p9578_p7 = scmp.lt.u32.totalorder %s9574_s5, %s12040_s27 }
  0x96   :  { %p9580_p8 = pnand %p9578_p7, %p9575_p6 }
  0x98   :  { %9583 = shalt.err (!%p9580_p8)
}
  0x99   :  { %s9584_s25 = scalar_lea.vmem %s66_s2, 512  ;;  %p9589_p10 = scmp.lt.s32.totalorder %s66_s2, %s66_s2 }
  0x9a   :  { %p9585_p9 = scmp.ne.s32.totalorder %s66_s2, %s9584_s25  ;;  %p9590_p11 = scmp.lt.s32.totalorder %s9584_s25, %s9584_s25 }
  0x9c   :  { %p9591_p12 = por %p9590_p11, %p9589_p10 }
  0x9e   :  { %p9592_p13 = pnand %p9591_p12, %p9585_p9 }
  0xa0   :  { %9595 = shalt.err (!%p9592_p13)
}
  0xa1   :  { %71 = dma.hbm_to_vmem [thread:$0]  %s12040_s27, 512, %s66_s2, [#allocation6], %s12038_s26, %s12038_s26, %s12037_s7  }
  0xa2   :  { %s9731_s8 = smov [#allocation10]   ;;  %s12041_s6 = sld [smem:[#allocation32_spill]] }
  0xa3   :  { %s89_s18 = sshll.u32 %s9731_s8, 4  ;;  %s90_s18 = int_to_ptr.vmem [resolvable:$true] %s89_s18 }
  0xa8   :  { %s9596_s28 = scalar_lea.hbm %s12041_s6, 3072 }
  0xa9   :  { %p9597_p0 = scmp.ne.s32.totalorder %s12041_s6, %s9596_s28  ;;  %p9600_p1 = scmp.lt.u32.totalorder %s9596_s28, %s12041_s6 }
  0xab   :  { %p9602_p2 = pnand %p9600_p1, %p9597_p0 }
  0xad   :  { %9605 = shalt.err (!%p9602_p2)
}
  0xae   :  { %s9606_s23 = scalar_lea.vmem %s90_s18, 3072  ;;  %p9611_p4 = scmp.lt.s32.totalorder %s90_s18, %s90_s18 }
  0xaf   :  { %p9607_p3 = scmp.ne.s32.totalorder %s90_s18, %s9606_s23  ;;  %p9612_p5 = scmp.lt.s32.totalorder %s9606_s23, %s9606_s23 }
  0xb1   :  { %p9613_p6 = por %p9612_p5, %p9611_p4 }
  0xb3   :  { %p9614_p7 = pnand %p9613_p6, %p9607_p3 }
  0xb5   :  { %9617 = shalt.err (!%p9614_p7)
}
  0xb6   :  { %s9732_s2 = smov 192   ;;  %s9733_s27 = smov 12  }
  0xb7   :  { %95 = dma.hbm_to_vmem [thread:$0]  %s12041_s6, 3072, %s90_s18, [#allocation9], %s9732_s2, %s9732_s2, %s9733_s27  }
  0xb8   :  { %s9734_s3 = smov [#allocation13]   ;;  %s9735_s30 = smov [#allocation16]  }
  0xb9   :  { %s121_s8 = sshll.u32 %s9734_s3, 4  ;;  %s149_s12 = sshll.u32 %s9735_s30, 4  ;;  %s122_s8 = int_to_ptr.vmem [resolvable:$true] %s121_s8  ;;  %s9994_s12 = int_to_ptr.vmem [resolvable:$true] %s149_s12 }
  0xba   :  { %s9618_s4 = scalar_lea.hbm %s11991_s10, 1024 }
  0xbb   :  { %p9619_p8 = scmp.ne.s32.totalorder %s11991_s10, %s9618_s4  ;;  %p9622_p9 = scmp.lt.u32.totalorder %s9618_s4, %s11991_s10 }
  0xbd   :  { %p9624_p10 = pnand %p9622_p9, %p9619_p8 }
  0xbf   :  { %9627 = shalt.err (!%p9624_p10)
}
  0xc0   :  { %s9628_s18 = scalar_lea.vmem %s122_s8, 1024  ;;  %p9633_p12 = scmp.lt.s32.totalorder %s122_s8, %s122_s8 }
  0xc1   :  { %p9629_p11 = scmp.ne.s32.totalorder %s122_s8, %s9628_s18  ;;  %p9634_p13 = scmp.lt.s32.totalorder %s9628_s18, %s9628_s18 }
  0xc3   :  { %p9635_p0 = por %p9634_p13, %p9633_p12 }
  0xc5   :  { %p9636_p1 = pnand %p9635_p0, %p9629_p11 }
  0xc7   :  { %9639 = shalt.err (!%p9636_p1)
}
  0xc8   :  { %s12042_s6 = smov 4   ;;  %s12043_s2 = smov 64  }
  0xc9   :  { %127 = dma.hbm_to_vmem [thread:$0]  %s11991_s10, 1024, %s122_s8, [#allocation12], %s12043_s2, %s12043_s2, %s12042_s6  }
  0xca   :  { %s9640_s0 = scalar_lea.hbm %s11995_s14, 1024 }
  0xcb   :  { %p9641_p2 = scmp.ne.s32.totalorder %s11995_s14, %s9640_s0  ;;  %p9644_p3 = scmp.lt.u32.totalorder %s9640_s0, %s11995_s14 }
  0xcd   :  { %p9646_p4 = pnand %p9644_p3, %p9641_p2 }
  0xcf   :  { %9649 = shalt.err (!%p9646_p4)
}
  0xd0   :  { %s9650_s1 = scalar_lea.vmem %s9994_s12, 1024  ;;  %p9655_p6 = scmp.lt.s32.totalorder %s9994_s12, %s9994_s12 }
  0xd1   :  { %p9651_p5 = scmp.ne.s32.totalorder %s9994_s12, %s9650_s1  ;;  %p9656_p7 = scmp.lt.s32.totalorder %s9650_s1, %s9650_s1 }
  0xd3   :  { %p9657_p8 = por %p9656_p7, %p9655_p6 }
  0xd5   :  { %p9658_p9 = pnand %p9657_p8, %p9651_p5 }
  0xd7   :  { %9661 = shalt.err (!%p9658_p9)
}
  0xd8   :  { %155 = dma.hbm_to_vmem [thread:$0]  %s11995_s14, 1024, %s9994_s12, [#allocation15], %s12043_s2, %s12043_s2, %s12042_s6  }
  0xd9   :  { %s9736_s24 = smov [#allocation19]   ;;  %s9662_s25 = scalar_lea.hbm %s12001_s20, 2048 }
  0xda   :  { %s181_s23 = sshll.u32 %s9736_s24, 4  ;;  %p9663_p10 = scmp.ne.s32.totalorder %s12001_s20, %s9662_s25  ;;  %s182_s23 = int_to_ptr.vmem [resolvable:$true] %s181_s23 }
  0xdb   :  { %p9666_p11 = scmp.lt.u32.totalorder %s9662_s25, %s12001_s20 }
  0xdd   :  { %p9668_p12 = pnand %p9666_p11, %p9663_p10 }
  0xdf   :  { %9671 = shalt.err (!%p9668_p12)
}
  0xe0   :  { %s9672_s28 = scalar_lea.vmem %s182_s23, 2048  ;;  %p9677_p0 = scmp.lt.s32.totalorder %s182_s23, %s182_s23 }
  0xe1   :  { %p9673_p13 = scmp.ne.s32.totalorder %s182_s23, %s9672_s28  ;;  %p9678_p1 = scmp.lt.s32.totalorder %s9672_s28, %s9672_s28 }
  0xe3   :  { %p9679_p2 = por %p9678_p1, %p9677_p0 }
  0xe5   :  { %p9680_p3 = pnand %p9679_p2, %p9673_p13 }
  0xe7   :  { %9683 = shalt.err (!%p9680_p3)
}
  0xe8   :  { %187 = dma.hbm_to_vmem [thread:$0]  %s12001_s20, 2048, %s182_s23, [#allocation18], %s12043_s2, %s12043_s2, %s12042_s6  }
  0xe9   :  { %9706 = dma.done.wait [#allocation3], 512  }
  0xea   :  { %9707 = vsyncadd [#allocation3], 4294966784 }
  0xeb   :  { %9708 = dma.done.wait [#allocation6], 1280  }
  0xec   :  { %9709 = vsyncadd [#allocation6], 4294966016 }
  0xed   :  { %9710 = dma.done.wait [#allocation9], 3584  }
  0xee   :  { %9711 = vsyncadd [#allocation9], 4294963712 }
  0xef   :  { %9712 = dma.done.wait [#allocation12], 2048  }
  0xf0   :  { %9713 = vsyncadd [#allocation12], 4294965248 }
  0xf1   :  { %9714 = dma.done.wait [#allocation15], 3072  }
  0xf2   :  { %9715 = vsyncadd [#allocation15], 4294964224 }
  0xf3   :  { %9716 = dma.done.wait [#allocation18], 4096  }
  0xf4   :  { %9717 = vsyncadd [#allocation18], 4294963200  ;;  %v12021_v0 = vmov 0   ;;  %v9166_v1 = vld [vmem:[#allocation10 + $0x4] ss:$12 sps:$4 sm:$0xff]   ;;  %v229_v10 = vld [vmem:[#allocation2 + $0x8] sm:$0xff]  ;;  %v277_v31 = vlaneseq }
  0xf5   :  { %452 = vmatprep.mubr.bf16.mxu0 %v12021_v0  ;;  %v9168_v2 = vld [vmem:[#allocation10] ss:$12 sps:$4 sm:$0xff]   ;;  %420 = vmatprep.subr.bf16.mxu0 %v9166_v1  ;;  %v9169_v3 = vld [vmem:[#allocation10 + $0x1c] ss:$12 sps:$4 sm:$0xff]   ;;  %v9171_v4 = vld [vmem:[#allocation10 + $0x18] ss:$12 sps:$4 sm:$0xff]  }
  0xf6   :  { %421 = vmatpush1.bf16.msra.mxu0 %v9168_v2  ;;  %v9172_v5 = vld [vmem:[#allocation10 + $0x34] ss:$12 sps:$4 sm:$0xff]   ;;  %v9174_v6 = vld [vmem:[#allocation10 + $0x30] ss:$12 sps:$4 sm:$0xff]   ;;  %v9175_v7 = vld [vmem:[#allocation10 + $0x4c] ss:$12 sps:$4 sm:$0xff]  }
  0xf7   :  { %422 = vmatprep.subr.bf16.mxu0 %v9169_v3  ;;  %v228_v8 = vld [vmem:[#allocation2] sm:$0xff]  ;;  %v9180_v13 = vld [vmem:[#allocation10 + $0x60] ss:$12 sps:$4 sm:$0xff]   ;;  %v9181_v14 = vld [vmem:[#allocation10 + $0x7c] ss:$12 sps:$4 sm:$0xff]   ;;  %v10048_v32 = vshrl.u32 %v277_v31, 7 }
  0xf8   :  { %v9177_v9 = vld [vmem:[#allocation10 + $0x48] ss:$12 sps:$4 sm:$0xff]   ;;  %v9178_v11 = vld [vmem:[#allocation10 + $0x64] ss:$12 sps:$4 sm:$0xff]   ;;  %v238_v12 = vpack.c.bf16 %v229_v10, %v228_v8  ;;  %v9187_v18 = vld [vmem:[#allocation10 + $0xac] ss:$12 sps:$4 sm:$0xff]  }
  0xf9   :  { %v9183_v15 = vld [vmem:[#allocation10 + $0x78] ss:$12 sps:$4 sm:$0xff]   ;;  %v9184_v16 = vld [vmem:[#allocation10 + $0x94] ss:$12 sps:$4 sm:$0xff]   ;;  %v9186_v17 = vld [vmem:[#allocation10 + $0x90] ss:$12 sps:$4 sm:$0xff]  }
  0xfa   :  { %423 = vmatpush1.bf16.msra.mxu0 %v9171_v4  ;;  %8853 = vmatprep.mubr.bf16.mxu1 %v238_v12  ;;  %v9189_v19 = vld [vmem:[#allocation10 + $0xa8] ss:$12 sps:$4 sm:$0xff]   ;;  %v230_v20 = vld [vmem:[#allocation2 + $0x10] sm:$0xff]  ;;  %v9193_v26 = vld [vmem:[#allocation10 + $0x50] ss:$12 sps:$4 sm:$0xff]   ;;  %v10051_v33 = vsub.s32 0, %v10048_v32 }
  0xfb   :  { %424 = vmatprep.subr.bf16.mxu0 %v9172_v5  ;;  %v231_v21 = vld [vmem:[#allocation2 + $0x18] sm:$0xff]  ;;  %v9192_v25 = vld [vmem:[#allocation10 + $0x38] ss:$12 sps:$4 sm:$0xff]   ;;  %v9197_v30 = vld [vmem:[#allocation10 + $0xb0] ss:$12 sps:$4 sm:$0xff]   ;;  %s12044_s5 = sld [smem:[#allocation33_spill]] }
  0xfc   :  { %v239_v22 = vpack.c.bf16 %v231_v21, %v230_v20  ;;  %v9190_v23 = vld [vmem:[#allocation10 + $0x8] ss:$12 sps:$4 sm:$0xff]   ;;  %v9191_v24 = vld [vmem:[#allocation10 + $0x20] ss:$12 sps:$4 sm:$0xff]   ;;  %v9196_v29 = vld [vmem:[#allocation10 + $0x98] ss:$12 sps:$4 sm:$0xff]  }
  0xfd   :  { %8837 = vmatprep.subr.bf16.mxu1 %v9190_v23  ;;  %v9194_v27 = vld [vmem:[#allocation10 + $0x68] ss:$12 sps:$4 sm:$0xff]   ;;  %v9195_v28 = vld [vmem:[#allocation10 + $0x80] ss:$12 sps:$4 sm:$0xff]   ;;  %v10057_v35 = vsub.s32 1, %v10048_v32  ;;  %s9738_s4 = smov 32  }
  0xfe   :  { %425 = vmatpush1.bf16.msra.mxu0 %v9174_v6  ;;  %8838 = vmatpush3.bf16.msra.mxu1 %v9190_v23  ;;  %s9739_s1 = smov 96   ;;  %v9740_v58 = vmov 0.0   ;;  %vm9741_vm0 = vmmov 0   ;;  %v287_v59 = vsub.s32 2, %v10048_v32  ;;  %vm2144_vm1 = vcmask 261120   ;;  %s12045_s24 = sld [smem:[#allocation35_spill]] }
  0xff   :  { %426 = vmatprep.subr.bf16.mxu0 %v9175_v7  ;;  %8839 = vmatprep.subr.bf16.mxu1 %v9191_v24  ;;  %v9742_v7 = vmov 1983009808   ;;  %vm2541_vm2 = vcmask 130048   ;;  %vm3624_vm3 = vcmask 523264   ;;  %vm3629_vm4 = vcmask 785408   ;;  %s12046_s25 = sld [smem:[#allocation36_spill]] }
 0x100   :  { %v578_v8 = vunpack.c.l.s4 %v9742_v7  ;;  %vm6904_vm5 = vcmask 1043456   ;;  %vm6716_vm6 = vcmask 195584  }
 0x101   :  { %v275_v34 = vld [vmem:[%s12044_s5] sm:$0x7] }
 0x102   :  { %427 = vmatpush1.bf16.msra.mxu0 %v9177_v9  ;;  %8840 = vmatpush3.bf16.msra.mxu1 %v9191_v24  ;;  %v280_v36 = vrot.slane %v275_v34, %v10051_v33  ;;  %v284_v38 = vrot.slane %v275_v34, %v10057_v35  ;;  %v288_v60 = vrot.slane %v275_v34, %v287_v59 }
 0x103   :  { %428 = vmatprep.subr.bf16.mxu0 %v9178_v11  ;;  %8841 = vmatprep.subr.bf16.mxu1 %v9192_v25 }
 0x106   :  { %429 = vmatpush1.bf16.msra.mxu0 %v9180_v13  ;;  %8842 = vmatpush3.bf16.msra.mxu1 %v9192_v25 }
 0x107   :  { %430 = vmatprep.subr.bf16.mxu0 %v9181_v14  ;;  %8843 = vmatprep.subr.bf16.mxu1 %v9193_v26  ;;  %v9743_v14 = vmov 1934713408  }
 0x10a   :  { %431 = vmatpush1.bf16.msra.mxu0 %v9183_v15  ;;  %8844 = vmatpush3.bf16.msra.mxu1 %v9193_v26  ;;  %v609_v15 = vunpack.c.l.s4 %v9743_v14 }
 0x10b   :  { %432 = vmatprep.subr.bf16.mxu0 %v9184_v16  ;;  %8845 = vmatprep.subr.bf16.mxu1 %v9194_v27 }
 0x10e   :  { %433 = vmatpush1.bf16.msra.mxu0 %v9186_v17  ;;  %8846 = vmatpush3.bf16.msra.mxu1 %v9194_v27 }
 0x10f   :  { %434 = vmatprep.subr.bf16.mxu0 %v9187_v18  ;;  %8847 = vmatprep.subr.bf16.mxu1 %v9195_v28  ;;  %v10108_v18 = vpack.i.b16 %v12021_v0, %v12021_v0 }
 0x112   :  { %435 = vmatpush1.bf16.msra.mxu0 %v9189_v19  ;;  %8848 = vmatpush3.bf16.msra.mxu1 %v9195_v28 }
 0x113   :  { %8849 = vmatprep.subr.bf16.mxu1 %v9196_v29  ;;  %8863 = vmatprep.subr.bf16.mxu0 %v9740_v58 }
 0x115   :  { %453 = vmatmul.mubr.bf16.vlgmr.msra.gmra.mrb[0].mxu0 %v238_v12  ;;  %v579_v12 = vunpack.c.0.s8 %v578_v8 }
 0x116   :  { %462 = vmatprep.mubr.bf16.mxu0 %v12021_v0  ;;  %8850 = vmatpush3.bf16.msra.mxu1 %v9196_v29 }
 0x117   :  { %8851 = vmatprep.subr.bf16.mxu1 %v9197_v30  ;;  %v10112_v20 = vsub.s32 %v579_v12, %v10048_v32 }
 0x11a   :  { %8852 = vmatpush3.bf16.msra.mxu1 %v9197_v30 }
 0x11b   :  { %8857 = vmatprep.subr.bf16.mxu1 %v9740_v58 }
 0x11d   :  { %463 = vmatmul.mubr.bf16.gmra.mrb[4].mxu0 %v239_v22  ;;  %8854 = vmatmul.mubr.bf16.vlgmr.msra.gmra.mrb[0].mxu1 %v239_v22  ;;  %v610_v22 = vunpack.c.0.s8 %v609_v15 }
 0x11e   :  { %8859 = vmatprep.mubr.msk.bf16.mxu1 %vm9741_vm0, %v9740_v58  ;;  %8865 = vmatprep.mubr.msk.bf16.mxu0 %vm9741_vm0, %v9740_v58 }
 0x1e8   :  { %v454_v37 = vpop.f32.mrb[0].mxu0 }
 0x1e9   :  { %v456_v39 = vpop.f32.mrb[1].mxu0  ;;  %v455_v41 = vadd.f32 %v454_v37, %v280_v36 }
 0x1ea   :  { %v458_v40 = vpop.f32.mrb[2].mxu0  ;;  %v457_v44 = vadd.f32 %v456_v39, %v284_v38 }
 0x1eb   :  { %v459_v42 = vadd.f32 %v458_v40, %v280_v36  ;;  %v460_v43 = vpop.f32.mrb[3].mxu0 }
 0x1ec   :  { %v461_v45 = vadd.f32 %v460_v43, %v284_v38 }
 0x1ed   :  { %v10061_v46 = vpack.c.bf16 %v459_v42, %v455_v41 }
 0x1ee   :  { %v10063_v47 = vpack.c.bf16 %v461_v45, %v457_v44 }
 0x1ef   :  { %v542_v42 = vshrl.u32 %v10061_v46, 16 }
 0x1f0   :  { %1076 = vrot.lane.b32.xlu1 %v10063_v47, %s9738_s4  ;;  %1068 = vrot.lane.b32.xlu0 %v10063_v47, %s9739_s1  ;;  %v464_v48 = vpop.f32.mrb[4].mxu0  ;;  %v8855_v61 = vpop.f32.mrb[0].mxu1  ;;  %v1084_v24 = vshrl.u32 %v10063_v47, 16 }
 0x1f1   :  { %v465_v49 = vadd.f32 %v464_v48, %v280_v36  ;;  %v466_v50 = vpop.f32.mrb[5].mxu0  ;;  %v516_v62 = vadd.f32 %v8855_v61, %v288_v60  ;;  %v507_v63 = vpop.f32.mrb[1].mxu1 }
 0x1f2   :  { %v467_v51 = vadd.f32 %v466_v50, %v284_v38  ;;  %v468_v52 = vpop.f32.mrb[6].mxu0  ;;  %v508_v1 = vadd.f32 %v507_v63, %v288_v60  ;;  %v8856_v2 = vpop.f32.mrb[2].mxu1 }
 0x1f3   :  { %v469_v53 = vadd.f32 %v468_v52, %v280_v36  ;;  %v470_v54 = vpop.f32.mrb[7].mxu0  ;;  %v519_v3 = vadd.f32 %v8856_v2, %v288_v60  ;;  %v510_v4 = vpop.f32.mrb[3].mxu1 }
 0x1f4   :  { %1072 = vrot.lane.b32.xlu0 %v10063_v47, %s12043_s2  ;;  %526 = vrot.lane.b32.xlu1 %v10061_v46, %s9739_s1  ;;  %v471_v55 = vadd.f32 %v470_v54, %v284_v38  ;;  %v511_v5 = vadd.f32 %v510_v4, %v288_v60  ;;  %v10121_v38 = vsub.s32 %v610_v22, %v10048_v32 }
 0x1f5   :  { %v10073_v56 = vpack.c.bf16 %v469_v53, %v465_v49  ;;  %v10100_v6 = vpack.c.bf16 %v519_v3, %v516_v62 }
 0x1f6   :  { %v10075_v57 = vpack.c.bf16 %v471_v55, %v467_v51  ;;  %v10102_v11 = vpack.c.bf16 %v511_v5, %v508_v1 }
 0x1f7   :  { %v564_v43 = vshrl.u32 %v10073_v56, 16 }
 0x1f8   :  { %530 = vrot.lane.b32.xlu0 %v10061_v46, %s12043_s2  ;;  %534 = vrot.lane.b32.xlu1 %v10061_v46, %s9738_s4  ;;  %v1100_v8 = vshrl.u32 %v10075_v57, 16 }
 0x1fc   :  { %1070 = vrot.lane.b32.xlu0 %v10075_v57, %s9739_s1  ;;  %1074 = vrot.lane.b32.xlu1 %v10075_v57, %s12043_s2 }
 0x200   :  { %1078 = vrot.lane.b32.xlu0 %v10075_v57, %s9738_s4  ;;  %528 = vrot.lane.b32.xlu1 %v10073_v56, %s9739_s1 }
 0x204   :  { %532 = vrot.lane.b32.xlu0 %v10073_v56, %s12043_s2  ;;  %536 = vrot.lane.b32.xlu1 %v10073_v56, %s9738_s4 }
 0x208   :  { %1604 = vrot.lane.b32.xlu1 %v10102_v11, %s9739_s1 }
 0x262   :  { %v1077_v9 = vpop.permute.xlu1 %1076  ;;  %v1069_v10 = vpop.permute.xlu0 %1068 }
 0x263   :  { %v1082_v19 = vpack.i.b16 %v1069_v10, %v10063_v47  ;;  %v1085_v21 = vshrl.u32 %v1069_v10, 16  ;;  %v1093_v27 = vshrl.u32 %v1077_v9, 16 }
 0x265   :  { %v1112_v28 = vcombine.high %v1082_v19, %v10108_v18  ;;  %v1086_v29 = vpack.i.b16 %v1085_v21, %v1084_v24  ;;  %v1119_v30 = vrot.slane %v1082_v19, %v10112_v20 }
 0x266   :  { %v1073_v13 = vpop.permute.xlu0 %1072  ;;  %v527_v17 = vpop.permute.xlu1 %526 }
 0x267   :  { %v1090_v16 = vpack.i.b16 %v1077_v9, %v1073_v13  ;;  %v1092_v23 = vshrl.u32 %v1073_v13, 16  ;;  %v540_v31 = vpack.i.b16 %v527_v17, %v10061_v46  ;;  %v543_v34 = vshrl.u32 %v527_v17, 16 }
 0x268   :  { %v1126_v44 = vrot.slane %v1112_v28, %v10112_v20  ;;  %v1178_v49 = vcombine.high %v1086_v29, %v10108_v18  ;;  %v1185_v50 = vrot.slane %v1086_v29, %v10112_v20 }
 0x269   :  { %v1127_v25 = vcombine.high %v1090_v16, %v10108_v18  ;;  %v1134_v26 = vrot.slane %v1090_v16, %v10112_v20  ;;  %v1094_v39 = vpack.i.b16 %v1093_v27, %v1092_v23  ;;  %v544_v51 = vpack.i.b16 %v543_v34, %v542_v42 }
 0x26a   :  { %v531_v36 = vpop.permute.xlu0 %530  ;;  %v535_v37 = vpop.permute.xlu1 %534  ;;  %v576_v32 = vcombine.high %v540_v31, %v10108_v18  ;;  %v583_v61 = vrot.slane %v540_v31, %v10112_v20  ;;  %v1192_v4 = vrot.slane %v1178_v49, %v10112_v20 }
 0x26b   :  { %v1141_v40 = vrot.slane %v1127_v25, %v10112_v20  ;;  %v1142_v41 = vcombine.low %v1119_v30, %v1134_v26  ;;  %v1143_v45 = vcombine.high %v1119_v30, %v1134_v26  ;;  %v550_v47 = vshrl.u32 %v531_v36, 16 }
 0x26c   :  { %v548_v48 = vpack.i.b16 %v535_v37, %v531_v36  ;;  %v1200_v52 = vrot.slane %v1094_v39, %v10112_v20  ;;  %v551_v53 = vshrl.u32 %v535_v37, 16  ;;  %v1193_v60 = vcombine.high %v1094_v39, %v10108_v18 }
 0x26d   :  { %v10134_v55 = vrot.slane %v1142_v41, %v10121_v38  ;;  %v1158_v59 = vcombine.low %v1126_v44, %v1141_v40  ;;  %v10139_v63 = vrot.slane %v1143_v45, %v10121_v38  ;;  %v1159_v1 = vcombine.high %v1126_v44, %v1141_v40 }
 0x26e   :  { %v591_v54 = vcombine.high %v548_v48, %v10108_v18  ;;  %v598_v46 = vrot.slane %v548_v48, %v10112_v20  ;;  %v1071_v62 = vpop.permute.xlu0 %1070  ;;  %v552_v2 = vpack.i.b16 %v551_v53, %v550_v47  ;;  %v1208_v9 = vcombine.low %v1185_v50, %v1200_v52  ;;  %v1075_v24 = vpop.permute.xlu1 %1074 }
 0x26f   :  { %v1209_v10 = vcombine.high %v1185_v50, %v1200_v52  ;;  %v590_v12 = vrot.slane %v576_v32, %v10112_v20  ;;  %v642_v13 = vcombine.high %v544_v51, %v10108_v18  ;;  %v10147_v14 = vrot.slane %v1158_v59, %v10121_v38 }
 0x270   :  { %v605_v3 = vrot.slane %v591_v54, %v10112_v20  ;;  %v606_v5 = vcombine.low %v583_v61, %v598_v46  ;;  %v607_v7 = vcombine.high %v583_v61, %v598_v46  ;;  %v1207_v15 = vrot.slane %v1193_v60, %v10112_v20 }
 0x271   :  { %v649_v16 = vrot.slane %v544_v51, %v10112_v20  ;;  %v657_v17 = vcombine.high %v552_v2, %v10108_v18  ;;  %v10153_v19 = vrot.slane %v1159_v1, %v10121_v38  ;;  %v1376_v21 = vcombine.low %v10134_v55, %v10139_v63 }
 0x272   :  { %v622_v22 = vcombine.low %v590_v12, %v605_v3  ;;  %v623_v23 = vcombine.high %v590_v12, %v605_v3  ;;  %v8511_v25 = vcombine.high %v10134_v55, %v10139_v63  ;;  %v614_v26 = vrot.slane %v606_v5, %v10121_v38  ;;  %v1079_v29 = vpop.permute.xlu0 %1078  ;;  %v529_v46 = vpop.permute.xlu1 %528 }
 0x273   :  { %v621_v27 = vrot.slane %v607_v7, %v10121_v38  ;;  %v664_v28 = vrot.slane %v552_v2, %v10112_v20  ;;  %v10163_v30 = vrot.slane %v1208_v9, %v10121_v38  ;;  %v10166_v31 = vrot.slane %v1209_v10, %v10121_v38 }
 0x274   :  { %v671_v34 = vrot.slane %v657_v17, %v10112_v20  ;;  %v1101_v36 = vshrl.u32 %v1071_v62, 16  ;;  %v1224_v37 = vcombine.low %v1192_v4, %v1207_v15  ;;  %v1225_v39 = vcombine.high %v1192_v4, %v1207_v15 }
 0x275   :  { %v656_v40 = vrot.slane %v642_v13, %v10112_v20  ;;  %v1098_v41 = vpack.i.b16 %v1071_v62, %v10075_v57  ;;  %v630_v42 = vrot.slane %v622_v22, %v10121_v38  ;;  %v637_v44 = vrot.slane %v623_v23, %v10121_v38 }
 0x276   :  { %v1108_v45 = vshrl.u32 %v1075_v24, 16  ;;  %v1109_v47 = vshrl.u32 %v1079_v29, 16  ;;  %v672_v48 = vcombine.low %v649_v16, %v664_v28  ;;  %v673_v49 = vcombine.high %v649_v16, %v664_v28  ;;  %v533_v28 = vpop.permute.xlu0 %532 }
 0x277   :  { %v840_v50 = vcombine.low %v614_v26, %v621_v27  ;;  %v8503_v51 = vcombine.high %v614_v26, %v621_v27  ;;  %v688_v32 = vcombine.low %v656_v40, %v671_v34  ;;  %v689_v52 = vcombine.high %v656_v40, %v671_v34 }
 0x278   :  { %v1102_v53 = vpack.i.b16 %v1101_v36, %v1100_v8  ;;  %v1106_v54 = vpack.i.b16 %v1079_v29, %v1075_v24  ;;  %v10174_v59 = vrot.slane %v1224_v37, %v10121_v38  ;;  %v10177_v57 = vrot.slane %v1225_v39, %v10121_v38  ;;  %v537_v29 = vpop.permute.xlu1 %536 }
 0x279   :  { %v1392_v60 = vcombine.low %v10147_v14, %v10153_v19  ;;  %v8512_v61 = vcombine.high %v10147_v14, %v10153_v19  ;;  %v856_v62 = vcombine.low %v630_v42, %v637_v44  ;;  %v8504_v1 = vcombine.high %v630_v42, %v637_v44 }
 0x27a   :  { %v1244_v2 = vcombine.high %v1098_v41, %v10108_v18  ;;  %v1110_v3 = vpack.i.b16 %v1109_v47, %v1108_v45  ;;  %v680_v4 = vrot.slane %v672_v48, %v10121_v38  ;;  %v687_v5 = vrot.slane %v673_v49, %v10121_v38 }
 0x27b   :  { %v10187_v7 = vrot.slane %v840_v50, %v10112_v20  ;;  %v10190_v8 = vrot.slane %v8503_v51, %v10112_v20  ;;  %v696_v9 = vrot.slane %v688_v32, %v10121_v38  ;;  %v703_v10 = vrot.slane %v689_v52, %v10121_v38 }
 0x27c   :  { %v1310_v12 = vcombine.high %v1102_v53, %v10108_v18  ;;  %v1259_v13 = vcombine.high %v1106_v54, %v10108_v18  ;;  %v1426_v15 = vcombine.low %v10163_v30, %v10166_v31  ;;  %v8513_v16 = vcombine.high %v10163_v30, %v10166_v31 }
 0x27d   :  { %v1251_v17 = vrot.slane %v1098_v41, %v10112_v20  ;;  %v1266_v22 = vrot.slane %v1106_v54, %v10112_v20  ;;  %v10203_v23 = vrot.slane %v856_v62, %v10112_v20  ;;  %v10206_v24 = vrot.slane %v8504_v1, %v10112_v20 }
 0x27e   :  { %v1258_v26 = vrot.slane %v1244_v2, %v10112_v20  ;;  %v1317_v27 = vrot.slane %v1102_v53, %v10112_v20  ;;  %v872_v34 = vcombine.low %v10187_v7, %v10190_v8  ;;  %v890_v36 = vcombine.low %v680_v4, %v687_v5 }
 0x27f   :  { %v8505_v37 = vcombine.high %v680_v4, %v687_v5  ;;  %v1325_v39 = vcombine.high %v1110_v3, %v10108_v18  ;;  %v906_v40 = vcombine.low %v696_v9, %v703_v10  ;;  %v1324_v41 = vrot.slane %v1310_v12, %v10112_v20 }
 0x280   :  { %v1273_v42 = vrot.slane %v1259_v13, %v10112_v20  ;;  %v565_v44 = vshrl.u32 %v529_v46, 16  ;;  %v1274_v45 = vcombine.low %v1251_v17, %v1266_v22  ;;  %v1275_v47 = vcombine.high %v1251_v17, %v1266_v22 }
 0x281   :  { %v572_v48 = vshrl.u32 %v533_v28, 16  ;;  %v570_v49 = vpack.i.b16 %v537_v29, %v533_v28  ;;  %v880_v50 = vcombine.low %v10203_v23, %v10206_v24  ;;  %v8506_v51 = vcombine.high %v696_v9, %v703_v10 }
 0x282   :  { %v1332_v32 = vrot.slane %v1110_v3, %v10112_v20  ;;  %v573_v52 = vshrl.u32 %v537_v29, 16  ;;  %v10219_v53 = vrot.slane %v890_v36, %v10112_v20  ;;  %v10222_v54 = vrot.slane %v8505_v37, %v10112_v20 }
 0x283   :  { %v1339_v62 = vrot.slane %v1325_v39, %v10112_v20  ;;  %v562_v1 = vpack.i.b16 %v529_v46, %v10073_v56  ;;  %v1290_v2 = vcombine.low %v1258_v26, %v1273_v42  ;;  %v1291_v4 = vcombine.high %v1258_v26, %v1273_v42 }
 0x284   :  { %v566_v5 = vpack.i.b16 %v565_v44, %v564_v43  ;;  %v574_v12 = vpack.i.b16 %v573_v52, %v572_v48  ;;  %v10229_v9 = vrot.slane %v906_v40, %v10112_v20  ;;  %v10232_v3 = vrot.slane %v1274_v45, %v10121_v38 }
 0x285   :  { %v10235_v10 = vrot.slane %v1275_v47, %v10121_v38  ;;  %v723_v13 = vcombine.high %v570_v49, %v10108_v18  ;;  %v10239_v17 = vrot.slane %v8506_v51, %v10112_v20  ;;  %v1340_v46 = vcombine.low %v1317_v27, %v1332_v32 }
 0x286   :  { %v1341_v22 = vcombine.high %v1317_v27, %v1332_v32  ;;  %v789_v56 = vcombine.high %v574_v12, %v10108_v18  ;;  %v922_v43 = vcombine.low %v10219_v53, %v10222_v54  ;;  %v1356_v26 = vcombine.low %v1324_v41, %v1339_v62 }
 0x287   :  { %v708_v28 = vcombine.high %v562_v1, %v10108_v18  ;;  %v730_v29 = vrot.slane %v570_v49, %v10112_v20  ;;  %v10247_v36 = vrot.slane %v1290_v2, %v10121_v38  ;;  %v10250_v37 = vrot.slane %v1291_v4, %v10121_v38 }
 0x288   :  { %v1357_v39 = vcombine.high %v1324_v41, %v1339_v62  ;;  %v774_v40 = vcombine.high %v566_v5, %v10108_v18  ;;  %v1476_v27 = vcombine.low %v10232_v3, %v10235_v10  ;;  %v8515_v42 = vcombine.high %v10232_v3, %v10235_v10 }
 0x289   :  { %v715_v44 = vrot.slane %v562_v1, %v10112_v20  ;;  %v737_v45 = vrot.slane %v723_v13, %v10112_v20  ;;  %v10260_v47 = vrot.slane %v1340_v46, %v10121_v38  ;;  %v10263_v48 = vrot.slane %v1341_v22, %v10121_v38 }
 0x28a   :  { %v803_v41 = vrot.slane %v789_v56, %v10112_v20  ;;  %v1383_v49 = vrot.slane %v1376_v21, %v10112_v20  ;;  %v722_v51 = vrot.slane %v708_v28, %v10112_v20  ;;  %v1399_v52 = vrot.slane %v1392_v60, %v10112_v20 }
 0x28b   :  { %v738_v32 = vcombine.low %v715_v44, %v730_v29  ;;  %v1407_v62 = vrot.slane %v8512_v61, %v10112_v20  ;;  %v788_v1 = vrot.slane %v774_v40, %v10112_v20  ;;  %v739_v2 = vcombine.high %v715_v44, %v730_v29 }
 0x28c   :  { %v796_v4 = vrot.slane %v574_v12, %v10112_v20  ;;  %v1391_v21 = vrot.slane %v8511_v25, %v10112_v20  ;;  %v10286_v13 = vrot.slane %v1356_v26, %v10121_v38  ;;  %v10289_v60 = vrot.slane %v1357_v39, %v10121_v38 }
 0x28d   :  { %v754_v46 = vcombine.low %v722_v51, %v737_v45  ;;  %v755_v22 = vcombine.high %v722_v51, %v737_v45  ;;  %v1492_v14 = vcombine.low %v10247_v36, %v10250_v37  ;;  %v781_v19 = vrot.slane %v566_v5, %v10112_v20 }
 0x28e   :  { %v820_v61 = vcombine.low %v788_v1, %v803_v41  ;;  %v821_v12 = vcombine.high %v788_v1, %v803_v41  ;;  %v10295_v56 = vrot.slane %v738_v32, %v10121_v38  ;;  %v1416_v55 = vcombine.low %v1399_v52, %v1407_v62 }
 0x28f   :  { %v1433_v63 = vrot.slane %v1426_v15, %v10112_v20  ;;  %v1441_v25 = vrot.slane %v8513_v16, %v10112_v20  ;;  %v10306_v26 = vrot.slane %v739_v2, %v10121_v38  ;;  %v804_v5 = vcombine.low %v781_v19, %v796_v4 }
 0x290   :  { %v1408_v28 = vcombine.low %v1383_v49, %v1391_v21  ;;  %v1442_v29 = vcombine.low %v10174_v59, %v10177_v57  ;;  %v10311_v39 = vrot.slane %v754_v46, %v10121_v38  ;;  %v10314_v40 = vrot.slane %v755_v22, %v10121_v38 }
 0x291   :  { %v805_v15 = vcombine.high %v781_v19, %v796_v4  ;;  %v8514_v44 = vcombine.high %v10174_v59, %v10177_v57  ;;  %v828_v30 = vrot.slane %v820_v61, %v10121_v38  ;;  %v835_v31 = vrot.slane %v821_v12, %v10121_v38 }
 0x292   :  { %v1423_v16 = vrot.slane %v1416_v55, %v10121_v38  ;;  %v1449_v45 = vrot.slane %v1442_v29, %v10112_v20  ;;  %v8516_v41 = vcombine.high %v10247_v36, %v10250_v37  ;;  %v1526_v49 = vcombine.low %v10260_v47, %v10263_v48 }
 0x293   :  { %v1457_v51 = vrot.slane %v8514_v44, %v10112_v20  ;;  %v1458_v32 = vcombine.low %v1433_v63, %v1441_v25  ;;  %v8517_v59 = vcombine.high %v10260_v47, %v10263_v48  ;;  %v940_v57 = vcombine.low %v10295_v56, %v10306_v26 }
 0x294   :  { %v1415_v52 = vrot.slane %v1408_v28, %v10121_v38  ;;  %v930_v62 = vcombine.low %v10229_v9, %v10239_v17  ;;  %v812_v1 = vrot.slane %v804_v5, %v10121_v38  ;;  %v819_v36 = vrot.slane %v805_v15, %v10121_v38 }
 0x295   :  { %v8507_v37 = vcombine.high %v10295_v56, %v10306_v26  ;;  %v1466_v2 = vcombine.low %v1449_v45, %v1457_v51  ;;  %v956_v4 = vcombine.low %v10311_v39, %v10314_v40  ;;  %v8508_v47 = vcombine.high %v10311_v39, %v10314_v40 }
 0x296   :  { %v1006_v48 = vcombine.low %v828_v30, %v835_v31  ;;  %v1424_v21 = vcombine.low %v1415_v52, %v1423_v16  ;;  %v8510_v46 = vcombine.high %v828_v30, %v835_v31  ;;  %v1465_v22 = vrot.slane %v1458_v32, %v10121_v38 }
 0x297   :  { %v1473_v9 = vrot.slane %v1466_v2, %v10121_v38  ;;  %v10348_v17 = vrot.slane %v872_v34, %v10121_v38  ;;  %v887_v19 = vrot.slane %v880_v50, %v10121_v38  ;;  %v929_v61 = vrot.slane %v922_v43, %v10121_v38 }
 0x298   :  { %v937_v12 = vrot.slane %v930_v62, %v10121_v38  ;;  %v1499_v55 = vrot.slane %v1492_v14, %v10112_v20  ;;  %v1507_v25 = vrot.slane %v8516_v41, %v10112_v20  ;;  %v1533_v7 = vrot.slane %v1526_v49, %v10112_v20 }
 0x299   :  { %v1474_v63 = vcombine.low %v1465_v22, %v1473_v9  ;;  %v1541_v8 = vrot.slane %v8517_v59, %v10112_v20  ;;  %v1579_v34 = vshrl.u32 %v1424_v21, 16  ;;  %v1483_v23 = vrot.slane %v1476_v27, %v10112_v20 }
 0x29a   :  { %v1542_v24 = vcombine.low %v10286_v13, %v10289_v60  ;;  %v8518_v50 = vcombine.high %v10286_v13, %v10289_v60  ;;  %v1475_v43 = vcombine.high %v1465_v22, %v1473_v9  ;;  %v1491_v14 = vrot.slane %v8515_v42, %v10112_v20 }
 0x29b   :  { %v1578_v53 = vpack.i.b16 %v1474_v63, %v1424_v21  ;;  %v1580_v54 = vshrl.u32 %v1474_v63, 16  ;;  %v938_v5 = vcombine.low %v929_v61, %v937_v12  ;;  %v1425_v28 = vcombine.high %v1415_v52, %v1423_v16 }
 0x29c   :  { %v1549_v29 = vrot.slane %v1542_v24, %v10112_v20  ;;  %v1557_v27 = vrot.slane %v8518_v50, %v10112_v20  ;;  %v1516_v15 = vcombine.low %v1499_v55, %v1507_v25  ;;  %v1558_v44 = vcombine.low %v1533_v7, %v1541_v8 }
 0x29d   :  { %v2149_v39 = vsel %vm2144_vm1, %v1578_v53, 0  ;;  %v1581_v40 = vpack.i.b16 %v1580_v54, %v1579_v34  ;;  %v990_v13 = vcombine.low %v812_v1, %v819_v36  ;;  %v8509_v60 = vcombine.high %v812_v1, %v819_v36 }
 0x29e   :  { %8858 = vmatpush3.bf16.xpose.msra.mxu1 %v2149_v39  ;;  %v888_v30 = vcombine.low %v10348_v17, %v887_v19  ;;  %v1566_v31 = vcombine.low %v1549_v29, %v1557_v27  ;;  %v963_v3 = vrot.slane %v956_v4, %v10112_v20  ;;  %v1586_v42 = vshrl.u32 %v1475_v43, 16 }
 0x29f   :  { %v2196_v10 = vsel %vm2144_vm1, %v1581_v40, 0  ;;  %8869 = vmatprep.subr.bf16.mxu1 %v9740_v58  ;;  %v1508_v16 = vcombine.low %v1483_v23, %v1491_v14  ;;  %v1013_v45 = vrot.slane %v1006_v48, %v10112_v20  ;;  %v1021_v41 = vrot.slane %v8510_v46, %v10112_v20 }
 0x2a0   :  { %8864 = vmatpush3.bf16.xpose.msra.mxu0 %v2196_v10  ;;  %v1585_v49 = vshrl.u32 %v1425_v28, 16  ;;  %v1573_v51 = vrot.slane %v1566_v31, %v10121_v38  ;;  %v1044_v32 = vshrl.u32 %v938_v5, 16  ;;  %v1584_v59 = vpack.i.b16 %v1475_v43, %v1425_v28 }
 0x2a1   :  { %8875 = vmatprep.subr.bf16.mxu0 %v9740_v58  ;;  %v1523_v52 = vrot.slane %v1516_v15, %v10121_v38  ;;  %v1565_v62 = vrot.slane %v1558_v44, %v10121_v38  ;;  %v971_v1 = vrot.slane %v8508_v47, %v10112_v20  ;;  %v997_v36 = vrot.slane %v990_v13, %v10112_v20 }
 0x2a2   :  { %v1005_v2 = vrot.slane %v8509_v60, %v10112_v20  ;;  %v1043_v4 = vshrl.u32 %v888_v30, 16  ;;  %v1042_v48 = vpack.i.b16 %v938_v5, %v888_v30  ;;  %v1587_v21 = vpack.i.b16 %v1586_v42, %v1585_v49 }
 0x2a3   :  { %v1515_v46 = vrot.slane %v1508_v16, %v10121_v38  ;;  %v1574_v22 = vcombine.low %v1565_v62, %v1573_v51  ;;  %v947_v9 = vrot.slane %v940_v57, %v10112_v20  ;;  %v955_v47 = vrot.slane %v8507_v37, %v10112_v20 }
 0x2a4   :  { %v939_v55 = vcombine.high %v929_v61, %v937_v12  ;;  %v2243_v63 = vsel %vm2144_vm1, %v1584_v59, 0  ;;  %v1045_v25 = vpack.i.b16 %v1044_v32, %v1043_v4  ;;  %v1030_v8 = vcombine.low %v1013_v45, %v1021_v41 }
 0x2a5   :  { %8860 = vmatmul.mubr.msk.bf16.vlgmr.msra.gmra.mrb[4].mxu1 %vm2144_vm1, %v1042_v48  ;;  %v1524_v7 = vcombine.low %v1515_v46, %v1523_v52  ;;  %v889_v34 = vcombine.high %v10348_v17, %v887_v19  ;;  %v980_v57 = vcombine.low %v963_v3, %v971_v1  ;;  %v1022_v23 = vcombine.low %v997_v36, %v1005_v2  ;;  %v2522_v36 = vld [vmem:[#allocation7 + $0x8] sm:$0xff] }
 0x2a6   :  { %8870 = vmatpush3.bf16.xpose.msra.mxu1 %v2243_v63  ;;  %8871 = vmatprep.mubr.msk.bf16.mxu1 %vm9741_vm0, %v9740_v58  ;;  %v2290_v56 = vsel %vm2144_vm1, %v1587_v21, 0  ;;  %v1592_v26 = vshrl.u32 %v1574_v22, 16  ;;  %v972_v37 = vcombine.low %v947_v9, %v955_v47  ;;  %v1050_v12 = vshrl.u32 %v939_v55, 16 }
 0x2a7   :  { %8866 = vmatmul.mubr.msk.bf16.vlgmr.msra.gmra.mrb[8].mxu0 %vm2144_vm1, %v1045_v25  ;;  %8881 = vmatprep.subr.bf16.mxu1 %v9740_v58  ;;  %v1590_v61 = vpack.i.b16 %v1574_v22, %v1524_v7  ;;  %v1591_v24 = vshrl.u32 %v1524_v7, 16  ;;  %v1037_v17 = vrot.slane %v1030_v8, %v10121_v38  ;;  %v1048_v19 = vpack.i.b16 %v939_v55, %v889_v34 }
 0x2a8   :  { %8876 = vmatpush3.bf16.xpose.msra.mxu0 %v2290_v56  ;;  %8877 = vmatprep.mubr.msk.bf16.mxu0 %vm9741_vm0, %v9740_v58  ;;  %v1049_v50 = vshrl.u32 %v889_v34, 16  ;;  %v987_v54 = vrot.slane %v980_v57, %v10121_v38  ;;  %v1029_v43 = vrot.slane %v1022_v23, %v10121_v38  ;;  %v1575_v14 = vcombine.high %v1565_v62, %v1573_v51  ;;  %v2521_v62 = vld [vmem:[#allocation7] sm:$0xff] }
 0x2a9   :  { %8887 = vmatprep.subr.bf16.mxu0 %v9740_v58  ;;  %v1593_v53 = vpack.i.b16 %v1592_v26, %v1591_v24  ;;  %v979_v5 = vrot.slane %v972_v37, %v10121_v38  ;;  %v2337_v28 = vsel %vm2144_vm1, %v1590_v61, 0  ;;  %v1525_v39 = vcombine.high %v1515_v46, %v1523_v52 }
 0x2aa   :  { %v1051_v29 = vpack.i.b16 %v1050_v12, %v1049_v50  ;;  %v1038_v27 = vcombine.low %v1029_v43, %v1037_v17  ;;  %v1598_v44 = vshrl.u32 %v1575_v14, 16  ;;  %v1039_v45 = vcombine.high %v1029_v43, %v1037_v17  ;;  %v2523_v43 = vld [vmem:[#allocation7 + $0x10] sm:$0xff] }
 0x2ab   :  { %v2384_v40 = vsel %vm2144_vm1, %v1593_v53, 0  ;;  %v988_v15 = vcombine.low %v979_v5, %v987_v54  ;;  %v1596_v13 = vpack.i.b16 %v1575_v14, %v1525_v39  ;;  %v1597_v30 = vshrl.u32 %v1525_v39, 16 }
 0x2ac   :  { %v1056_v60 = vshrl.u32 %v1038_v27, 16  ;;  %v989_v49 = vcombine.high %v979_v5, %v987_v54  ;;  %v1062_v51 = vshrl.u32 %v1039_v45, 16 }
 0x2ad   :  { %8872 = vmatmul.mubr.msk.bf16.vlgmr.msra.gmra.mrb[8].mxu1 %vm2144_vm1, %v1048_v19  ;;  %v1054_v31 = vpack.i.b16 %v1038_v27, %v988_v15  ;;  %v1055_v3 = vshrl.u32 %v988_v15, 16  ;;  %v1599_v10 = vpack.i.b16 %v1598_v44, %v1597_v30  ;;  %v2431_v42 = vsel %vm2144_vm1, %v1596_v13, 0  ;;  %v2524_v27 = vld [vmem:[#allocation7 + $0x18] sm:$0xff] }
 0x2ae   :  { %8882 = vmatpush3.bf16.xpose.msra.mxu1 %v2337_v28  ;;  %8883 = vmatprep.mubr.msk.bf16.mxu1 %vm9741_vm0, %v9740_v58  ;;  %v1060_v32 = vpack.i.b16 %v1039_v45, %v989_v49  ;;  %v1061_v59 = vshrl.u32 %v989_v49, 16 }
 0x2af   :  { %8878 = vmatmul.mubr.msk.bf16.vlgmr.msra.gmra.mrb[12].mxu0 %vm2144_vm1, %v1051_v29  ;;  %8893 = vmatprep.subr.bf16.mxu1 %v9740_v58  ;;  %v1057_v16 = vpack.i.b16 %v1056_v60, %v1055_v3  ;;  %v2478_v41 = vsel %vm2144_vm1, %v1599_v10, 0 }
 0x2b0   :  { %8888 = vmatpush3.bf16.xpose.msra.mxu0 %v2384_v40  ;;  %8889 = vmatprep.mubr.msk.bf16.mxu0 %vm9741_vm0, %v9740_v58  ;;  %v1063_v52 = vpack.i.b16 %v1062_v51, %v1061_v59 }
 0x2b1   :  { %8899 = vmatprep.subr.bf16.mxu0 %v9740_v58 }
 0x2b5   :  { %8884 = vmatmul.mubr.msk.bf16.vlgmr.msra.gmra.mrb[12].mxu1 %vm2144_vm1, %v1054_v31 }
 0x2b6   :  { %8894 = vmatpush3.bf16.xpose.msra.mxu1 %v2431_v42  ;;  %8895 = vmatprep.mubr.msk.bf16.mxu1 %vm9741_vm0, %v9740_v58 }
 0x2b7   :  { %8890 = vmatmul.mubr.msk.bf16.vlgmr.msra.gmra.mrb[16].mxu0 %vm2144_vm1, %v1057_v16  ;;  %8905 = vmatprep.subr.bf16.mxu1 %v9740_v58 }
 0x2b8   :  { %8900 = vmatpush3.bf16.xpose.msra.mxu0 %v2478_v41  ;;  %8901 = vmatprep.mubr.msk.bf16.mxu0 %vm9741_vm0, %v9740_v58 }
 0x2b9   :  { %8911 = vmatprep.subr.bf16.mxu0 %v9740_v58 }
 0x2bd   :  { %8896 = vmatmul.mubr.msk.bf16.vlgmr.msra.gmra.mrb[16].mxu1 %vm2144_vm1, %v1060_v32 }
 0x2be   :  { %8907 = vmatprep.mubr.msk.bf16.mxu1 %vm9741_vm0, %v9740_v58 }
 0x2bf   :  { %8902 = vmatmul.mubr.msk.bf16.vlgmr.msra.gmra.mrb[20].mxu0 %vm2144_vm1, %v1063_v52 }
 0x2c0   :  { %8913 = vmatprep.mubr.msk.bf16.mxu0 %vm9741_vm0, %v9740_v58 }
 0x378   :  { %v2185_v1 = vpop.f32.mrb[4].mxu1 }
 0x379   :  { %v10441_v2 = vadd.f32 %v2521_v62, %v2185_v1  ;;  %v8861_v4 = vpop.f32.mrb[5].mxu1 }
 0x37a   :  { %v2188_v48 = vpop.f32.mrb[6].mxu1  ;;  %v2232_v21 = vpop.f32.mrb[8].mxu0 }
 0x37b   :  { %v10443_v46 = vadd.f32 %v2522_v36, %v2188_v48  ;;  %v10445_v22 = vadd.f32 %v2521_v62, %v2232_v21  ;;  %v8862_v9 = vpop.f32.mrb[7].mxu1  ;;  %v8867_v47 = vpop.f32.mrb[9].mxu0  ;;  %v2542_v55 = vsel %vm2541_vm2, %v10441_v2, -inf }
 0x37c   :  { %v2235_v63 = vpop.f32.mrb[10].mxu0  ;;  %2543 = vmax.xlane.f32.xlu0 %v2542_v55 }
 0x37d   :  { %v8868_v25 = vpop.f32.mrb[11].mxu0  ;;  %v2545_v7 = vsel %vm2541_vm2, %v10443_v46, -inf  ;;  %v10451_v8 = vadd.f32 %v2522_v36, %v2235_v63  ;;  %v2548_v34 = vsel %vm2541_vm2, %v10445_v22, -inf }
 0x37e   :  { %2546 = vmax.xlane.f32.xlu1 %v2545_v7 }
 0x37f   :  { %v2551_v19 = vsel %vm2541_vm2, %v10451_v8, -inf }
 0x380   :  { %2549 = vmax.xlane.f32.xlu0 %v2548_v34  ;;  %v2279_v57 = vpop.f32.mrb[8].mxu1 }
 0x381   :  { %v10455_v23 = vadd.f32 %v2521_v62, %v2279_v57  ;;  %v8873_v56 = vpop.f32.mrb[9].mxu1  ;;  %v10513_v57 = vpop.permute.xlu1 %1604 }
 0x382   :  { %v2282_v26 = vpop.f32.mrb[10].mxu1  ;;  %v2326_v37 = vpop.f32.mrb[12].mxu0 }
 0x383   :  { %v10457_v61 = vadd.f32 %v2522_v36, %v2282_v26  ;;  %v10459_v12 = vadd.f32 %v2521_v62, %v2326_v37  ;;  %v8874_v24 = vpop.f32.mrb[11].mxu1  ;;  %v8879_v17 = vpop.f32.mrb[13].mxu0  ;;  %v2554_v50 = vsel %vm2541_vm2, %v10455_v23, -inf }
 0x384   :  { %v2329_v53 = vpop.f32.mrb[14].mxu0  ;;  %2552 = vmax.xlane.f32.xlu0 %v2551_v19  ;;  %2555 = vmax.xlane.f32.xlu1 %v2554_v50 }
 0x385   :  { %v8880_v54 = vpop.f32.mrb[15].mxu0  ;;  %v10465_v14 = vadd.f32 %v2522_v36, %v2329_v53  ;;  %v2560_v5 = vsel %vm2541_vm2, %v10459_v12, -inf  ;;  %v2557_v28 = vsel %vm2541_vm2, %v10457_v61, -inf }
 0x387   :  { %v2563_v3 = vsel %vm2541_vm2, %v10465_v14, -inf }
 0x388   :  { %2561 = vmax.xlane.f32.xlu1 %v2560_v5  ;;  %2558 = vmax.xlane.f32.xlu0 %v2557_v28  ;;  %v2373_v29 = vpop.f32.mrb[12].mxu1 }
 0x389   :  { %v10471_v39 = vadd.f32 %v2523_v43, %v2373_v29  ;;  %v8885_v40 = vpop.f32.mrb[13].mxu1 }
 0x38a   :  { %v2376_v15 = vpop.f32.mrb[14].mxu1  ;;  %v2420_v44 = vpop.f32.mrb[16].mxu0 }
 0x38b   :  { %v10473_v13 = vadd.f32 %v2524_v27, %v2376_v15  ;;  %v10475_v60 = vadd.f32 %v2523_v43, %v2420_v44  ;;  %v8886_v30 = vpop.f32.mrb[15].mxu1  ;;  %v8891_v31 = vpop.f32.mrb[17].mxu0  ;;  %v2566_v10 = vsel %vm2541_vm2, %v10471_v39, -inf }
 0x38c   :  { %v2423_v42 = vpop.f32.mrb[18].mxu0  ;;  %2564 = vmax.xlane.f32.xlu0 %v2563_v3  ;;  %2567 = vmax.xlane.f32.xlu1 %v2566_v10 }
 0x38d   :  { %v8892_v16 = vpop.f32.mrb[19].mxu0  ;;  %v10481_v45 = vadd.f32 %v2524_v27, %v2423_v42  ;;  %v2572_v41 = vsel %vm2541_vm2, %v10475_v60, -inf  ;;  %v2569_v49 = vsel %vm2541_vm2, %v10473_v13, -inf }
 0x38f   :  { %v2575_v21 = vsel %vm2541_vm2, %v10481_v45, -inf }
 0x390   :  { %2573 = vmax.xlane.f32.xlu1 %v2572_v41  ;;  %2570 = vmax.xlane.f32.xlu0 %v2569_v49  ;;  %v2467_v51 = vpop.f32.mrb[16].mxu1 }
 0x391   :  { %v10487_v32 = vadd.f32 %v2523_v43, %v2467_v51  ;;  %v8897_v59 = vpop.f32.mrb[17].mxu1 }
 0x392   :  { %v2470_v52 = vpop.f32.mrb[18].mxu1  ;;  %v2514_v62 = vpop.f32.mrb[20].mxu0 }
 0x393   :  { %v10489_v1 = vadd.f32 %v2524_v27, %v2470_v52  ;;  %v10491_v36 = vadd.f32 %v2523_v43, %v2514_v62  ;;  %v8898_v4 = vpop.f32.mrb[19].mxu1  ;;  %v8903_v48 = vpop.f32.mrb[21].mxu0  ;;  %v2578_v9 = vsel %vm2541_vm2, %v10487_v32, -inf }
 0x394   :  { %v2517_v47 = vpop.f32.mrb[22].mxu0  ;;  %2576 = vmax.xlane.f32.xlu0 %v2575_v21  ;;  %2579 = vmax.xlane.f32.xlu1 %v2578_v9 }
 0x395   :  { %v8904_v55 = vpop.f32.mrb[23].mxu0  ;;  %v10497_v63 = vadd.f32 %v2524_v27, %v2517_v47  ;;  %v2584_v25 = vsel %vm2541_vm2, %v10491_v36, -inf  ;;  %v2581_v7 = vsel %vm2541_vm2, %v10489_v1, -inf }
 0x397   :  { %v2587_v34 = vsel %vm2541_vm2, %v10497_v63, -inf }
 0x398   :  { %2585 = vmax.xlane.f32.xlu1 %v2584_v25  ;;  %2582 = vmax.xlane.f32.xlu0 %v2581_v7 }
 0x39c   :  { %2588 = vmax.xlane.f32.xlu0 %v2587_v34 }
 0x3a9   :  { %1612 = vrot.lane.b32.xlu1 %v10102_v11, %s9738_s4 }
 0x3ad   :  { %1610 = vrot.lane.b32.xlu1 %v10100_v6, %s12043_s2 }
 0x3b2   :  { %1608 = vrot.lane.b32.xlu0 %v10102_v11, %s12043_s2 }
 0x3b6   :  { %1606 = vrot.lane.b32.xlu0 %v10100_v6, %s9739_s1 }
 0x409   :  { %v2544_v56 = vpop.xlane.xlu0 %2543 }
 0x40a   :  { %v2590_v26 = vsub.f32 %v10441_v2, %v2544_v56 }
 0x40b   :  { %v2547_v37 = vpop.xlane.xlu1 %2546 }
 0x40c   :  { %v2606_v24 = vmul.f32 1.442695, %v2590_v26  ;;  %v2591_v17 = vsub.f32 %v10443_v46, %v2547_v37 }
 0x40d   :  { %v2550_v19 = vpop.xlane.xlu0 %2549 }
 0x40e   :  { %9286 = vpow2.f32 %v2606_v24  ;;  %v2608_v50 = vmul.f32 1.442695, %v2591_v17  ;;  %v2592_v53 = vsub.f32 %v10445_v22, %v2550_v19  ;;  %v1620_v19 = vshrl.u32 %v10102_v11, 16 }
 0x410   :  { %9288 = vpow2.f32 %v2608_v50  ;;  %v2610_v54 = vmul.f32 1.442695, %v2592_v53  ;;  %v1618_v50 = vpack.i.b16 %v10513_v57, %v10102_v11  ;;  %v1621_v53 = vshrl.u32 %v10513_v57, 16 }
 0x411   :  { %v2553_v43 = vpop.xlane.xlu0 %2552  ;;  %v2556_v5 = vpop.xlane.xlu1 %2555 }
 0x412   :  { %9290 = vpow2.f32 %v2610_v54  ;;  %v2593_v28 = vsub.f32 %v10451_v8, %v2553_v43  ;;  %v2594_v29 = vsub.f32 %v10455_v23, %v2556_v5  ;;  %v1648_v11 = vcombine.high %v1618_v50, %v10108_v18 }
 0x414   :  { %v2612_v27 = vmul.f32 1.442695, %v2593_v28  ;;  %v2614_v2 = vmul.f32 1.442695, %v2594_v29 }
 0x415   :  { %v2562_v40 = vpop.xlane.xlu1 %2561  ;;  %v2559_v15 = vpop.xlane.xlu0 %2558 }
 0x416   :  { %9292 = vpow2.f32 %v2612_v27  ;;  %v2596_v46 = vsub.f32 %v10459_v12, %v2562_v40  ;;  %v2595_v44 = vsub.f32 %v10457_v61, %v2559_v15 }
 0x417   :  { %9294 = vpow2.f32 %v2614_v2  ;;  %v1622_v2 = vpack.i.b16 %v1621_v53, %v1620_v19 }
 0x418   :  { %v10522_v22 = vpop.eup %9286  ;;  %v2618_v30 = vmul.f32 1.442695, %v2596_v46  ;;  %v2616_v31 = vmul.f32 1.442695, %v2595_v44 }
 0x419   :  { %v2565_v3 = vpop.xlane.xlu0 %2564  ;;  %v2568_v10 = vpop.xlane.xlu1 %2567  ;;  %v2638_v8 = vsel %vm2541_vm2, %v10522_v22, 0.0 }
 0x41a   :  { %v10526_v23 = vpop.eup %9288  ;;  %9296 = vpow2.f32 %v2618_v30  ;;  %v2597_v42 = vsub.f32 %v10465_v14, %v2565_v3  ;;  %v2598_v16 = vsub.f32 %v10471_v39, %v2568_v10  ;;  %2639 = vadd.xlane.f32.xlu1 %v2638_v8 }
 0x41b   :  { %9298 = vpow2.f32 %v2616_v31  ;;  %v2641_v61 = vsel %vm2541_vm2, %v10526_v23, 0.0  ;;  %v1655_v31 = vrot.slane %v1618_v50, %v10112_v20 }
 0x41c   :  { %v10532_v12 = vpop.eup %9290  ;;  %v2620_v41 = vmul.f32 1.442695, %v2597_v42  ;;  %v2622_v49 = vmul.f32 1.442695, %v2598_v16  ;;  %2642 = vadd.xlane.f32.xlu0 %v2641_v61  ;;  %v1662_v42 = vrot.slane %v1648_v11, %v10112_v20  ;;  %v1714_v16 = vcombine.high %v1622_v2, %v10108_v18 }
 0x41d   :  { %v2574_v51 = vpop.xlane.xlu1 %2573  ;;  %v10534_v59 = vpop.xlane.xlu0 %2570  ;;  %v2644_v14 = vsel %vm2541_vm2, %v10532_v12, 0.0 }
 0x41e   :  { %9300 = vpow2.f32 %v2620_v41  ;;  %v2600_v52 = vsub.f32 %v10475_v60, %v2574_v51 }
 0x41f   :  { %9302 = vpow2.f32 %v2622_v49 }
 0x420   :  { %v10539_v39 = vpop.eup %9292  ;;  %v2626_v62 = vmul.f32 1.442695, %v2600_v52  ;;  %2645 = vadd.xlane.f32.xlu0 %v2644_v14  ;;  %v1721_v52 = vrot.slane %v1622_v2, %v10112_v20 }
 0x421   :  { %v10541_v4 = vpop.eup %9294  ;;  %v2577_v48 = vpop.xlane.xlu0 %2576  ;;  %v2647_v9 = vsel %vm2541_vm2, %v10539_v39, 0.0 }
 0x422   :  { %v10543_v21 = vpop.xlane.xlu1 %2579  ;;  %9304 = vpow2.f32 %v2626_v62  ;;  %v2601_v47 = vsub.f32 %v10481_v45, %v2577_v48  ;;  %2648 = vadd.xlane.f32.xlu1 %v2647_v9  ;;  %v2650_v60 = vsel %vm2541_vm2, %v10541_v4, 0.0 }
 0x424   :  { %v10550_v55 = vpop.eup %9296  ;;  %v2628_v25 = vmul.f32 1.442695, %v2601_v47  ;;  %2651 = vadd.xlane.f32.xlu0 %v2650_v60 }
 0x425   :  { %v10552_v7 = vpop.eup %9298  ;;  %v2583_v56 = vpop.xlane.xlu0 %2582  ;;  %v2656_v45 = vsel %vm2541_vm2, %v10550_v55, 0.0 }
 0x426   :  { %v10554_v34 = vpop.xlane.xlu1 %2585  ;;  %9306 = vpow2.f32 %v2628_v25  ;;  %v2603_v26 = vsub.f32 %v10489_v1, %v2583_v56  ;;  %v2653_v37 = vsel %vm2541_vm2, %v10552_v7, 0.0  ;;  %v1728_v25 = vrot.slane %v1714_v16, %v10112_v20 }
 0x427   :  { %2654 = vadd.xlane.f32.xlu1 %v2653_v37 }
 0x428   :  { %v10561_v24 = vpop.eup %9300  ;;  %2657 = vadd.xlane.f32.xlu0 %v2656_v45  ;;  %v2632_v43 = vmul.f32 1.442695, %v2603_v26 }
 0x429   :  { %v10563_v17 = vpop.eup %9302  ;;  %v2589_v1 = vpop.xlane.xlu0 %2588  ;;  %v2659_v54 = vsel %vm2541_vm2, %v10561_v24, 0.0 }
 0x42a   :  { %v2605_v5 = vsub.f32 %v10497_v63, %v2589_v1  ;;  %v1613_v28 = vpop.permute.xlu1 %1612  ;;  %v2662_v29 = vsel %vm2541_vm2, %v10563_v17, 0.0  ;;  %9308 = vpow2.f32 %v2632_v43 }
 0x42b   :  { %2660 = vadd.xlane.f32.xlu1 %v2659_v54  ;;  %v1629_v15 = vshrl.u32 %v1613_v28, 16 }
 0x42c   :  { %v10574_v27 = vpop.eup %9304  ;;  %2663 = vadd.xlane.f32.xlu0 %v2662_v29  ;;  %v2636_v40 = vmul.f32 1.442695, %v2605_v5 }
 0x42d   :  { %v1609_v57 = vpop.permute.xlu0 %1608  ;;  %v2668_v63 = vsel %vm2541_vm2, %v10574_v27, 0.0 }
 0x42e   :  { %v1626_v46 = vpack.i.b16 %v1613_v28, %v1609_v57  ;;  %v1628_v44 = vshrl.u32 %v1609_v57, 16  ;;  %9310 = vpow2.f32 %v2636_v40 }
 0x430   :  { %v10579_v30 = vpop.eup %9306  ;;  %v1630_v3 = vpack.i.b16 %v1629_v15, %v1628_v44  ;;  %v1663_v10 = vcombine.high %v1626_v46, %v10108_v18  ;;  %v1670_v8 = vrot.slane %v1626_v46, %v10112_v20  ;;  %2669 = vadd.xlane.f32.xlu0 %v2668_v63 }
 0x431   :  { %v2671_v62 = vsel %vm2541_vm2, %v10579_v30, 0.0 }
 0x432   :  { %v1677_v61 = vrot.slane %v1663_v10, %v10112_v20  ;;  %v1678_v41 = vcombine.low %v1655_v31, %v1670_v8  ;;  %v1679_v49 = vcombine.high %v1655_v31, %v1670_v8  ;;  %v1729_v51 = vcombine.high %v1630_v3, %v10108_v18 }
 0x433   :  { %v1736_v14 = vrot.slane %v1630_v3, %v10112_v20 }
 0x434   :  { %v1686_v48 = vrot.slane %v1678_v41, %v10121_v38  ;;  %v1693_v9 = vrot.slane %v1679_v49, %v10121_v38  ;;  %v1694_v47 = vcombine.low %v1662_v42, %v1677_v61  ;;  %v1695_v60 = vcombine.high %v1662_v42, %v1677_v61  ;;  %2672 = vadd.xlane.f32.xlu0 %v2671_v62  ;;  %v10600_v28 = vpop.eup %9308 }
 0x435   :  { %v1743_v56 = vrot.slane %v1729_v51, %v10112_v20  ;;  %v1744_v26 = vcombine.low %v1721_v52, %v1736_v14  ;;  %v1745_v37 = vcombine.high %v1721_v52, %v1736_v14  ;;  %v2677_v10 = vsel %vm2541_vm2, %v10600_v28, 0.0 }
 0x436   :  { %v1702_v45 = vrot.slane %v1694_v47, %v10121_v38  ;;  %v1709_v19 = vrot.slane %v1695_v60, %v10121_v38  ;;  %v1912_v50 = vcombine.low %v1686_v48, %v1693_v9  ;;  %v8519_v53 = vcombine.high %v1686_v48, %v1693_v9 }
 0x437   :  { %v1752_v1 = vrot.slane %v1744_v26, %v10121_v38  ;;  %v1759_v54 = vrot.slane %v1745_v37, %v10121_v38  ;;  %v1760_v43 = vcombine.low %v1728_v25, %v1743_v56  ;;  %v1761_v5 = vcombine.high %v1728_v25, %v1743_v56 }
 0x438   :  { %v1919_v29 = vrot.slane %v1912_v50, %v10112_v20  ;;  %v1927_v2 = vrot.slane %v8519_v53, %v10112_v20  ;;  %v1928_v11 = vcombine.low %v1702_v45, %v1709_v19  ;;  %v8520_v40 = vcombine.high %v1702_v45, %v1709_v19  ;;  %v10606_v63 = vpop.eup %9310  ;;  %2678 = vadd.xlane.f32.xlu0 %v2677_v10 }
 0x439   :  { %v1768_v57 = vrot.slane %v1760_v43, %v10121_v38  ;;  %v1775_v15 = vrot.slane %v1761_v5, %v10121_v38  ;;  %v1962_v46 = vcombine.low %v1752_v1, %v1759_v54  ;;  %v8521_v44 = vcombine.high %v1752_v1, %v1759_v54 }
 0x43a   :  { %v1935_v8 = vrot.slane %v1928_v11, %v10112_v20  ;;  %v1943_v42 = vrot.slane %v8520_v40, %v10112_v20  ;;  %v1944_v16 = vcombine.low %v1919_v29, %v1927_v2  ;;  %v2683_v52 = vsel %vm2541_vm2, %v10606_v63, 0.0 }
 0x43b   :  { %v1978_v31 = vcombine.low %v1768_v57, %v1775_v15  ;;  %v8522_v3 = vcombine.high %v1768_v57, %v1775_v15  ;;  %v1969_v61 = vrot.slane %v1962_v46, %v10112_v20  ;;  %v1977_v41 = vrot.slane %v8521_v44, %v10112_v20 }
 0x43c   :  { %1614 = vrot.lane.b32.xlu1 %v10100_v6, %s9738_s4  ;;  %v1952_v14 = vcombine.low %v1935_v8, %v1943_v42  ;;  %2684 = vadd.xlane.f32.xlu0 %v2683_v52  ;;  %v1951_v9 = vrot.slane %v1944_v16, %v10121_v38  ;;  %v2599_v2 = vsub.f32 %v10473_v13, %v10534_v59 }
 0x43d   :  { %v1985_v49 = vrot.slane %v1978_v31, %v10112_v20  ;;  %v1993_v51 = vrot.slane %v8522_v3, %v10112_v20  ;;  %v1994_v62 = vcombine.low %v1969_v61, %v1977_v41  ;;  %v2602_v40 = vsub.f32 %v10487_v32, %v10543_v21  ;;  %v1611_v21 = vpop.permute.xlu1 %1610 }
 0x43e   :  { %v1959_v47 = vrot.slane %v1952_v14, %v10121_v38  ;;  %v2624_v11 = vmul.f32 1.442695, %v2599_v2  ;;  %v2604_v15 = vsub.f32 %v10491_v36, %v10554_v34  ;;  %v1607_v34 = vpop.permute.xlu0 %1606 }
 0x43f   :  { %v2002_v48 = vcombine.low %v1985_v49, %v1993_v51  ;;  %v2001_v60 = vrot.slane %v1994_v62, %v10121_v38  ;;  %v2630_v57 = vmul.f32 1.442695, %v2602_v40  ;;  %v1637_v51 = vshrl.u32 %v1607_v34, 16 }
 0x440   :  { %v1960_v56 = vcombine.low %v1951_v9, %v1959_v47  ;;  %v10624_v26 = vcombine.high %v1951_v9, %v1959_v47  ;;  %9312 = vpow2.f32 %v2624_v11  ;;  %v2634_v46 = vmul.f32 1.442695, %v2604_v15 }
 0x441   :  { %v2009_v25 = vrot.slane %v2002_v48, %v10121_v38  ;;  %9314 = vpow2.f32 %v2630_v57  ;;  %v1636_v48 = vshrl.u32 %v10100_v6, 16 }
 0x442   :  { %v2116_v19 = vshrl.u32 %v1960_v56, 16  ;;  %v2124_v50 = vshrl.u32 %v10624_v26, 16  ;;  %9316 = vpow2.f32 %v2634_v46 }
 0x443   :  { %v2010_v37 = vcombine.low %v2001_v60, %v2009_v25  ;;  %v2011_v45 = vcombine.high %v2001_v60, %v2009_v25  ;;  %v1634_v60 = vpack.i.b16 %v1607_v34, %v10100_v6 }
 0x445   :  { %v2114_v53 = vpack.i.b16 %v2010_v37, %v1960_v56  ;;  %v2117_v1 = vshrl.u32 %v2010_v37, 16  ;;  %v2122_v54 = vpack.i.b16 %v2011_v45, %v10624_v26  ;;  %v2125_v43 = vshrl.u32 %v2011_v45, 16 }
 0x446   :  { %v1638_v56 = vpack.i.b16 %v1637_v51, %v1636_v48  ;;  %v1644_v45 = vshrl.u32 %v1611_v21, 16  ;;  %v1780_v6 = vcombine.high %v1634_v60, %v10108_v18  ;;  %v1787_v2 = vrot.slane %v1634_v60, %v10112_v20 }
 0x447   :  { %8906 = vmatpush3.bf16.msra.mxu1 %v2114_v53  ;;  %v2118_v5 = vpack.i.b16 %v2117_v1, %v2116_v19  ;;  %v10628_v29 = vpack.i.b16 %v2125_v43, %v2124_v50 }
 0x448   :  { %8917 = vmatprep.subr.bf16.mxu1 %v9740_v58  ;;  %v1846_v53 = vcombine.high %v1638_v56, %v10108_v18  ;;  %v1794_v46 = vrot.slane %v1780_v6, %v10112_v20 }
 0x449   :  { %8912 = vmatpush3.bf16.msra.mxu0 %v2118_v5 }
 0x44a   :  { %8923 = vmatprep.subr.bf16.mxu0 %v9740_v58  ;;  %v10638_v44 = vpop.eup %9312 }
 0x44b   :  { %v2665_v13 = vsel %vm2541_vm2, %v10638_v44, 0.0  ;;  %v10642_v59 = vpop.eup %9314 }
 0x44c   :  { %v2674_v31 = vsel %vm2541_vm2, %v10642_v59, 0.0  ;;  %v10646_v32 = vpop.eup %9316 }
 0x44d   :  { %v2680_v36 = vsel %vm2541_vm2, %v10646_v32, 0.0 }
 0x460   :  { %2666 = vadd.xlane.f32.xlu1 %v2665_v13 }
 0x464   :  { %2675 = vadd.xlane.f32.xlu1 %v2674_v31 }
 0x468   :  { %2681 = vadd.xlane.f32.xlu1 %v2680_v36  ;;  %v1860_v36 = vrot.slane %v1846_v53, %v10112_v20 }
 0x4a7   :  { %v2640_v3 = vpop.xlane.xlu1 %2639 }
 0x4a8   :  { %9318 = vrcp.f32 %v2640_v3 }
 0x4a9   :  { %v2643_v10 = vpop.xlane.xlu0 %2642 }
 0x4aa   :  { %9320 = vrcp.f32 %v2643_v10 }
 0x4ad   :  { %v2646_v8 = vpop.xlane.xlu0 %2645 }
 0x4ae   :  { %9322 = vrcp.f32 %v2646_v8 }
 0x4af   :  { %v2649_v42 = vpop.xlane.xlu1 %2648 }
 0x4b0   :  { %9324 = vrcp.f32 %v2649_v42 }
 0x4b1   :  { %v2652_v16 = vpop.xlane.xlu0 %2651 }
 0x4b2   :  { %v9319_v61 = vpop.eup %9318  ;;  %9326 = vrcp.f32 %v2652_v16 }
 0x4b3   :  { %v2702_v52 = vmul.f32 %v9319_v61, %v10522_v22 }
 0x4b4   :  { %v9321_v41 = vpop.eup %9320  ;;  %v2655_v49 = vpop.xlane.xlu1 %2654 }
 0x4b5   :  { %v2703_v14 = vmul.f32 %v9321_v41, %v10526_v23  ;;  %9328 = vrcp.f32 %v2655_v49  ;;  %v2658_v62 = vpop.xlane.xlu0 %2657 }
 0x4b6   :  { %9330 = vrcp.f32 %v2658_v62 }
 0x4b7   :  { %v2718_v9 = vpack.c.bf16 %v2703_v14, %v2702_v52 }
 0x4b8   :  { %v9323_v47 = vpop.eup %9322  ;;  %v2661_v25 = vpop.xlane.xlu1 %2660 }
 0x4b9   :  { %9332 = vrcp.f32 %v2661_v25  ;;  %8908 = vmatmul.mubr.msk.bf16.vlgmr.msra.gmra.mrb[20].mxu1 %vm2541_vm2, %v2718_v9  ;;  %v10655_v26 = vpop.xlane.xlu0 %2663  ;;  %v2704_v22 = vmul.f32 %v9323_v47, %v10532_v12  ;;  %v1853_v12 = vrot.slane %v1638_v56, %v10112_v20 }
 0x4ba   :  { %v9325_v37 = vpop.eup %9324  ;;  %8918 = vmatpush3.bf16.msra.mxu1 %v2122_v54  ;;  %8919 = vmatprep.mubr.msk.bf16.mxu1 %vm9741_vm0, %v9740_v58 }
 0x4bb   :  { %v2705_v23 = vmul.f32 %v9325_v37, %v10539_v39  ;;  %8929 = vmatprep.subr.bf16.mxu1 %v9740_v58 }
 0x4bc   :  { %v1615_v19 = vpop.permute.xlu1 %1614  ;;  %v9327_v50 = vpop.eup %9326 }
 0x4bd   :  { %v1642_v1 = vpack.i.b16 %v1615_v19, %v1611_v21  ;;  %v1645_v43 = vshrl.u32 %v1615_v19, 16  ;;  %v2670_v5 = vpop.xlane.xlu0 %2669  ;;  %v2719_v54 = vpack.c.bf16 %v2705_v23, %v2704_v22  ;;  %v2706_v13 = vmul.f32 %v9327_v50, %v10541_v4 }
 0x4bf   :  { %v9329_v11 = vpop.eup %9328  ;;  %v1646_v40 = vpack.i.b16 %v1645_v43, %v1644_v45  ;;  %v1795_v39 = vcombine.high %v1642_v1, %v10108_v18  ;;  %v1802_v57 = vrot.slane %v1642_v1, %v10112_v20  ;;  %8914 = vmatmul.mubr.msk.bf16.vlgmr.msra.gmra.mrb[24].mxu0 %vm2541_vm2, %v2719_v54 }
 0x4c0   :  { %v9331_v15 = vpop.eup %9330  ;;  %v2707_v31 = vmul.f32 %v9329_v11, %v10552_v7  ;;  %8924 = vmatpush3.bf16.msra.mxu0 %v10628_v29  ;;  %8925 = vmatprep.mubr.msk.bf16.mxu0 %vm9741_vm0, %v9740_v58 }
 0x4c1   :  { %v1809_v21 = vrot.slane %v1795_v39, %v10112_v20  ;;  %v1810_v34 = vcombine.low %v1787_v2, %v1802_v57  ;;  %v1811_v3 = vcombine.high %v1787_v2, %v1802_v57  ;;  %v2673_v10 = vpop.xlane.xlu0 %2672  ;;  %8935 = vmatprep.subr.bf16.mxu0 %v9740_v58  ;;  %v2708_v8 = vmul.f32 %v9331_v15, %v10550_v55 }
 0x4c2   :  { %v1861_v4 = vcombine.high %v1646_v40, %v10108_v18  ;;  %v1868_v7 = vrot.slane %v1646_v40, %v10112_v20  ;;  %v2720_v42 = vpack.c.bf16 %v2707_v31, %v2706_v13  ;;  %9334 = vrcp.f32 %v2673_v10 }
 0x4c3   :  { %v9333_v29 = vpop.eup %9332  ;;  %v1818_v16 = vrot.slane %v1810_v34, %v10121_v38  ;;  %v1825_v61 = vrot.slane %v1811_v3, %v10121_v38  ;;  %v1826_v41 = vcombine.low %v1794_v46, %v1809_v21  ;;  %v1827_v49 = vcombine.high %v1794_v46, %v1809_v21 }
 0x4c4   :  { %v1875_v51 = vrot.slane %v1861_v4, %v10112_v20  ;;  %v1876_v52 = vcombine.low %v1853_v12, %v1868_v7  ;;  %v1877_v14 = vcombine.high %v1853_v12, %v1868_v7  ;;  %8920 = vmatmul.mubr.msk.bf16.vlgmr.msra.gmra.mrb[24].mxu1 %vm2541_vm2, %v2720_v42  ;;  %v2709_v55 = vmul.f32 %v9333_v29, %v10561_v24 }
 0x4c5   :  { %v1834_v62 = vrot.slane %v1826_v41, %v10121_v38  ;;  %v1841_v48 = vrot.slane %v1827_v49, %v10121_v38  ;;  %v2012_v9 = vcombine.low %v1818_v16, %v1825_v61  ;;  %8931 = vmatprep.mubr.msk.bf16.mxu1 %vm9741_vm0, %v9740_v58  ;;  %v8523_v22 = vcombine.high %v1818_v16, %v1825_v61 }
 0x4c6   :  { %v1884_v47 = vrot.slane %v1876_v52, %v10121_v38  ;;  %v1891_v60 = vrot.slane %v1877_v14, %v10121_v38  ;;  %v1892_v25 = vcombine.low %v1860_v36, %v1875_v51  ;;  %v1893_v56 = vcombine.high %v1860_v36, %v1875_v51 }
 0x4c7   :  { %v2019_v37 = vrot.slane %v2012_v9, %v10112_v20  ;;  %v2028_v23 = vcombine.low %v1834_v62, %v1841_v48  ;;  %v8524_v45 = vcombine.high %v1834_v62, %v1841_v48  ;;  %v2027_v53 = vrot.slane %v8523_v22, %v10112_v20 }
 0x4c8   :  { %v1900_v24 = vrot.slane %v1892_v25, %v10121_v38  ;;  %v1907_v6 = vrot.slane %v1893_v56, %v10121_v38  ;;  %v2062_v19 = vcombine.low %v1884_v47, %v1891_v60  ;;  %v8525_v50 = vcombine.high %v1884_v47, %v1891_v60 }
 0x4c9   :  { %v2721_v1 = vpack.c.bf16 %v2709_v55, %v2708_v8  ;;  %v2035_v43 = vrot.slane %v2028_v23, %v10112_v20  ;;  %9336 = vrcp.f32 %v2670_v5  ;;  %v2043_v11 = vrot.slane %v8524_v45, %v10112_v20 }
 0x4ca   :  { %v2078_v54 = vcombine.low %v1900_v24, %v1907_v6  ;;  %v8526_v2 = vcombine.high %v1900_v24, %v1907_v6  ;;  %v2044_v12 = vcombine.low %v2019_v37, %v2027_v53  ;;  %v2069_v40 = vrot.slane %v2062_v19, %v10112_v20 }
 0x4cb   :  { %8926 = vmatmul.mubr.msk.bf16.vlgmr.msra.gmra.mrb[28].mxu0 %vm2541_vm2, %v2721_v1  ;;  %v2077_v39 = vrot.slane %v8525_v50, %v10112_v20  ;;  %v2052_v57 = vcombine.low %v2035_v43, %v2043_v11  ;;  %9338 = vrcp.f32 %v10655_v26 }
 0x4cc   :  { %v2085_v15 = vrot.slane %v2078_v54, %v10112_v20  ;;  %v2093_v46 = vrot.slane %v8526_v2, %v10112_v20  ;;  %8937 = vmatprep.mubr.msk.bf16.mxu0 %vm9741_vm0, %v9740_v58  ;;  %v9335_v31 = vpop.eup %9334  ;;  %v2051_v5 = vrot.slane %v2044_v12, %v10121_v38 }
 0x4cd   :  { %v2094_v13 = vcombine.low %v2069_v40, %v2077_v39  ;;  %v2059_v36 = vrot.slane %v2052_v57, %v10121_v38  ;;  %v2713_v41 = vmul.f32 %v9335_v31, %v10579_v30  ;;  %v2679_v30 = vpop.xlane.xlu0 %2678 }
 0x4ce   :  { %v2102_v21 = vcombine.low %v2085_v15, %v2093_v46 }
 0x4cf   :  { %v2060_v34 = vcombine.low %v2051_v5, %v2059_v36  ;;  %v2101_v3 = vrot.slane %v2094_v13, %v10121_v38  ;;  %v2061_v61 = vcombine.high %v2051_v5, %v2059_v36 }
 0x4d0   :  { %v2109_v10 = vrot.slane %v2102_v21, %v10121_v38 }
 0x4d1   :  { %v2132_v29 = vshrl.u32 %v2060_v34, 16  ;;  %v2140_v14 = vshrl.u32 %v2061_v61, 16 }
 0x4d2   :  { %v2110_v8 = vcombine.low %v2101_v3, %v2109_v10  ;;  %v2111_v4 = vcombine.high %v2101_v3, %v2109_v10 }
 0x4d3   :  { %v9337_v7 = vpop.eup %9336 }
 0x4d4   :  { %v2130_v42 = vpack.i.b16 %v2110_v8, %v2060_v34  ;;  %v2133_v16 = vshrl.u32 %v2110_v8, 16  ;;  %v2141_v51 = vshrl.u32 %v2111_v4, 16  ;;  %v2712_v52 = vmul.f32 %v9337_v7, %v10574_v27  ;;  %v2685_v27 = vpop.xlane.xlu0 %2684 }
 0x4d5   :  { %v9339_v60 = vpop.eup %9338  ;;  %v2138_v45 = vpack.i.b16 %v2111_v4, %v2061_v61 }
 0x4d6   :  { %8930 = vmatpush3.bf16.msra.mxu1 %v2130_v42  ;;  %v2134_v49 = vpack.i.b16 %v2133_v16, %v2132_v29  ;;  %v2723_v55 = vpack.c.bf16 %v2713_v41, %v2712_v52  ;;  %v2142_v62 = vpack.i.b16 %v2141_v51, %v2140_v14  ;;  %v2710_v56 = vmul.f32 %v9339_v60, %v10563_v17 }
 0x4d7   :  { %8941 = vmatprep.subr.bf16.mxu1 %v9740_v58 }
 0x4d8   :  { %8936 = vmatpush3.bf16.msra.mxu0 %v2134_v49 }
 0x4d9   :  { %8947 = vmatprep.subr.bf16.mxu0 %v9740_v58 }
 0x4db   :  { %8938 = vmatmul.mubr.msk.bf16.vlgmr.msra.gmra.mrb[32].mxu0 %vm2541_vm2, %v2723_v55 }
 0x4dc   :  { %8948 = vmatpush3.bf16.msra.mxu0 %v2142_v62  ;;  %8949 = vmatprep.mubr.msk.bf16.mxu0 %vm9741_vm0, %v9740_v58 }
 0x4ed   :  { %v2667_v48 = vpop.xlane.xlu1 %2666 }
 0x4ee   :  { %9340 = vrcp.f32 %v2667_v48 }
 0x4f1   :  { %v2676_v9 = vpop.xlane.xlu1 %2675 }
 0x4f2   :  { %9342 = vrcp.f32 %v2676_v9 }
 0x4f3   :  { %9344 = vrcp.f32 %v2679_v30 }
 0x4f4   :  { %9346 = vrcp.f32 %v2685_v27 }
 0x4f5   :  { %v2682_v47 = vpop.xlane.xlu1 %2681 }
 0x4f6   :  { %9348 = vrcp.f32 %v2682_v47 }
 0x4f8   :  { %v9341_v25 = vpop.eup %9340 }
 0x4f9   :  { %v2711_v37 = vmul.f32 %v9341_v25, %v10638_v44 }
 0x4fb   :  { %v2722_v22 = vpack.c.bf16 %v2711_v37, %v2710_v56 }
 0x4fc   :  { %v9343_v23 = vpop.eup %9342 }
 0x4fd   :  { %v9345_v24 = vpop.eup %9344  ;;  %8932 = vmatmul.mubr.msk.bf16.vlgmr.msra.gmra.mrb[28].mxu1 %vm2541_vm2, %v2722_v22  ;;  %v2714_v6 = vmul.f32 %v9343_v23, %v10642_v59 }
 0x4fe   :  { %v9347_v26 = vpop.eup %9346  ;;  %8942 = vmatpush3.bf16.msra.mxu1 %v2138_v45  ;;  %8943 = vmatprep.mubr.msk.bf16.mxu1 %vm9741_vm0, %v9740_v58  ;;  %v2715_v50 = vmul.f32 %v9345_v24, %v10600_v28 }
 0x4ff   :  { %v2717_v17 = vmul.f32 %v9347_v26, %v10606_v63 }
 0x500   :  { %v9349_v19 = vpop.eup %9348  ;;  %v2724_v53 = vpack.c.bf16 %v2715_v50, %v2714_v6 }
 0x501   :  { %v2716_v44 = vmul.f32 %v9349_v19, %v10646_v32 }
 0x503   :  { %v2725_v1 = vpack.c.bf16 %v2717_v17, %v2716_v44 }
 0x505   :  { %8944 = vmatmul.mubr.msk.bf16.vlgmr.msra.gmra.mrb[32].mxu1 %vm2541_vm2, %v2724_v53  ;;  %8950 = vmatmul.mubr.msk.bf16.vlgmr.msra.gmra.mrb[36].mxu0 %vm2541_vm2, %v2725_v1 }
 0x58c   :  { %v2763_v43 = vpop.f32.mrb[20].mxu1 }
 0x58d   :  { %v8909_v54 = vpop.f32.mrb[21].mxu1 }
 0x58e   :  { %v2766_v2 = vpop.f32.mrb[22].mxu1 }
 0x58f   :  { %v3078_v11 = vpack.c.bf16 %v2766_v2, %v2763_v43  ;;  %v8910_v12 = vpop.f32.mrb[23].mxu1 }
 0x591   :  { %v3090_v15 = vshrl.u32 %v3078_v11, 16 }
 0x592   :  { %v2807_v40 = vpop.f32.mrb[24].mxu0 }
 0x593   :  { %v8915_v59 = vpop.f32.mrb[25].mxu0 }
 0x594   :  { %v2810_v39 = vpop.f32.mrb[26].mxu0 }
 0x595   :  { %v3079_v57 = vpack.c.bf16 %v2810_v39, %v2807_v40  ;;  %v8916_v28 = vpop.f32.mrb[27].mxu0 }
 0x597   :  { %v3088_v63 = vpack.i.b16 %v3079_v57, %v3078_v11  ;;  %v3091_v46 = vshrl.u32 %v3079_v57, 16  ;;  %v2851_v32 = vpop.f32.mrb[24].mxu1 }
 0x598   :  { %v8921_v13 = vpop.f32.mrb[25].mxu1 }
 0x599   :  { %v3092_v31 = vpack.i.b16 %v3091_v46, %v3090_v15  ;;  %v2854_v5 = vpop.f32.mrb[26].mxu1  ;;  %v3118_v7 = vcombine.high %v3088_v63, %v10108_v18  ;;  %v3125_v61 = vrot.slane %v3088_v63, %v10112_v20 }
 0x59a   :  { %v3080_v36 = vpack.c.bf16 %v2854_v5, %v2851_v32  ;;  %v8922_v21 = vpop.f32.mrb[27].mxu1 }
 0x59b   :  { %v3132_v52 = vrot.slane %v3118_v7, %v10112_v20  ;;  %v3184_v14 = vcombine.high %v3092_v31, %v10108_v18  ;;  %v3191_v27 = vrot.slane %v3092_v31, %v10112_v20 }
 0x59c   :  { %v3098_v42 = vshrl.u32 %v3080_v36, 16 }
 0x59d   :  { %v3198_v37 = vrot.slane %v3184_v14, %v10112_v20 }
 0x59e   :  { %v2895_v34 = vpop.f32.mrb[28].mxu0 }
 0x59f   :  { %v8927_v3 = vpop.f32.mrb[29].mxu0 }
 0x5a0   :  { %v2898_v10 = vpop.f32.mrb[30].mxu0 }
 0x5a1   :  { %v3081_v8 = vpack.c.bf16 %v2898_v10, %v2895_v34  ;;  %v8928_v4 = vpop.f32.mrb[31].mxu0 }
 0x5a3   :  { %v3096_v29 = vpack.i.b16 %v3081_v8, %v3080_v36  ;;  %v3099_v16 = vshrl.u32 %v3081_v8, 16 }
 0x5a5   :  { %v3100_v41 = vpack.i.b16 %v3099_v16, %v3098_v42  ;;  %v3133_v49 = vcombine.high %v3096_v29, %v10108_v18  ;;  %v3140_v51 = vrot.slane %v3096_v29, %v10112_v20  ;;  %v9198_v42 = vld [vmem:[#allocation11] sm:$0xff]   ;;  %v9199_v29 = vld [vmem:[#allocation11 + $0x8] sm:$0xff]  }
 0x5a6   :  { %8953 = vmatprep.subr.bf16.mxu1 %v9198_v42 }
 0x5a7   :  { %v3147_v55 = vrot.slane %v3133_v49, %v10112_v20  ;;  %v3148_v62 = vcombine.low %v3125_v61, %v3140_v51  ;;  %v3149_v30 = vcombine.high %v3125_v61, %v3140_v51  ;;  %v3199_v48 = vcombine.high %v3100_v41, %v10108_v18  ;;  %8954 = vmatpush3.bf16.msra.mxu1 %v9198_v42 }
 0x5a8   :  { %v3206_v9 = vrot.slane %v3100_v41, %v10112_v20  ;;  %8955 = vmatprep.subr.bf16.mxu1 %v9199_v29 }
 0x5a9   :  { %v3156_v47 = vrot.slane %v3148_v62, %v10121_v38  ;;  %v3163_v60 = vrot.slane %v3149_v30, %v10121_v38  ;;  %v3164_v25 = vcombine.low %v3132_v52, %v3147_v55  ;;  %v3165_v56 = vcombine.high %v3132_v52, %v3147_v55  ;;  %v9200_v52 = vld [vmem:[#allocation11 + $0x10] sm:$0xff]  }
 0x5aa   :  { %v3213_v22 = vrot.slane %v3199_v48, %v10112_v20  ;;  %v3214_v23 = vcombine.low %v3191_v27, %v3206_v9  ;;  %v3215_v45 = vcombine.high %v3191_v27, %v3206_v9 }
 0x5ab   :  { %v3172_v24 = vrot.slane %v3164_v25, %v10121_v38  ;;  %v3179_v26 = vrot.slane %v3165_v56, %v10121_v38  ;;  %v3382_v6 = vcombine.low %v3156_v47, %v3163_v60  ;;  %v8543_v19 = vcombine.high %v3156_v47, %v3163_v60  ;;  %8956 = vmatpush3.bf16.msra.mxu1 %v9199_v29  ;;  %v9201_v60 = vld [vmem:[#allocation11 + $0x18] sm:$0xff]  }
 0x5ac   :  { %v3222_v50 = vrot.slane %v3214_v23, %v10121_v38  ;;  %v3229_v17 = vrot.slane %v3215_v45, %v10121_v38  ;;  %v3230_v44 = vcombine.low %v3198_v37, %v3213_v22  ;;  %v3231_v53 = vcombine.high %v3198_v37, %v3213_v22  ;;  %8957 = vmatprep.subr.bf16.mxu1 %v9200_v52  ;;  %v9202_v37 = vld [vmem:[#allocation11 + $0x20] sm:$0xff]   ;;  %v9203_v22 = vld [vmem:[#allocation11 + $0x28] sm:$0xff]  }
 0x5ad   :  { %v3389_v1 = vrot.slane %v3382_v6, %v10112_v20  ;;  %v3397_v43 = vrot.slane %v8543_v19, %v10112_v20  ;;  %v3398_v54 = vcombine.low %v3172_v24, %v3179_v26  ;;  %v8544_v2 = vcombine.high %v3172_v24, %v3179_v26 }
 0x5ae   :  { %v3238_v11 = vrot.slane %v3230_v44, %v10121_v38  ;;  %v3245_v12 = vrot.slane %v3231_v53, %v10121_v38  ;;  %v2983_v40 = vpop.f32.mrb[32].mxu0  ;;  %v3432_v59 = vcombine.low %v3222_v50, %v3229_v17  ;;  %v8545_v39 = vcombine.high %v3222_v50, %v3229_v17 }
 0x5af   :  { %v8939_v57 = vpop.f32.mrb[33].mxu0  ;;  %v3405_v28 = vrot.slane %v3398_v54, %v10112_v20  ;;  %v3413_v15 = vrot.slane %v8544_v2, %v10112_v20  ;;  %v3414_v63 = vcombine.low %v3389_v1, %v3397_v43  ;;  %8958 = vmatpush3.bf16.msra.mxu1 %v9200_v52 }
 0x5b0   :  { %v2986_v46 = vpop.f32.mrb[34].mxu0  ;;  %v3439_v32 = vrot.slane %v3432_v59, %v10112_v20  ;;  %v3447_v13 = vrot.slane %v8545_v39, %v10112_v20  ;;  %v3448_v31 = vcombine.low %v3238_v11, %v3245_v12  ;;  %v8546_v5 = vcombine.high %v3238_v11, %v3245_v12  ;;  %8959 = vmatprep.subr.bf16.mxu1 %v9201_v60 }
 0x5b1   :  { %v3083_v36 = vpack.c.bf16 %v2986_v46, %v2983_v40  ;;  %v8940_v21 = vpop.f32.mrb[35].mxu0  ;;  %v3422_v34 = vcombine.low %v3405_v28, %v3413_v15  ;;  %v3421_v4 = vrot.slane %v3414_v63, %v10121_v38 }
 0x5b2   :  { %v3455_v3 = vrot.slane %v3448_v31, %v10112_v20  ;;  %v3463_v10 = vrot.slane %v8546_v5, %v10112_v20  ;;  %v3464_v8 = vcombine.low %v3439_v32, %v3447_v13 }
 0x5b3   :  { %v3429_v7 = vrot.slane %v3422_v34, %v10121_v38  ;;  %8960 = vmatpush3.bf16.msra.mxu1 %v9201_v60  ;;  %v3107_v19 = vshrl.u32 %v3083_v36, 16 }
 0x5b4   :  { %v3472_v16 = vcombine.low %v3455_v3, %v3463_v10  ;;  %v3471_v49 = vrot.slane %v3464_v8, %v10121_v38  ;;  %8961 = vmatprep.subr.bf16.mxu1 %v9202_v37 }
 0x5b5   :  { %v3431_v61 = vcombine.high %v3421_v4, %v3429_v7  ;;  %v10758_v41 = vcombine.low %v3421_v4, %v3429_v7 }
 0x5b6   :  { %v3479_v51 = vrot.slane %v3472_v16, %v10121_v38 }
 0x5b7   :  { %v3591_v62 = vshrl.u32 %v3431_v61, 16  ;;  %v3585_v30 = vshrl.u32 %v10758_v41, 16  ;;  %8962 = vmatpush3.bf16.msra.mxu1 %v9202_v37 }
 0x5b8   :  { %v10762_v14 = vcombine.low %v3471_v49, %v3479_v51  ;;  %v3481_v55 = vcombine.high %v3471_v49, %v3479_v51  ;;  %8963 = vmatprep.subr.bf16.mxu1 %v9203_v22 }
 0x5ba   :  { %v3590_v48 = vpack.i.b16 %v3481_v55, %v3431_v61  ;;  %v3592_v27 = vshrl.u32 %v3481_v55, 16  ;;  %v3586_v9 = vshrl.u32 %v10762_v14, 16  ;;  %v3584_v47 = vpack.i.b16 %v10762_v14, %v10758_v41  ;;  %v8551_v41 = vld [vmem:[%s12045_s24] ss:$0 sm:$0xff] }
 0x5bb   :  { %8964 = vmatpush3.bf16.msra.mxu1 %v9203_v22 }
 0x5bc   :  { %3610 = vrot.lane.b32.xlu1 %v3590_v48, %s12043_s2  ;;  %v3587_v25 = vpack.i.b16 %v3586_v9, %v3585_v30  ;;  %v10769_v56 = vpack.i.b16 %v3592_v27, %v3591_v62 }
 0x5c0   :  { %3606 = vrot.lane.b32.xlu1 %v3587_v25, %s9738_s4 }
 0x5d0   :  { %v2939_v23 = vpop.f32.mrb[28].mxu1 }
 0x5d1   :  { %v8933_v45 = vpop.f32.mrb[29].mxu1 }
 0x5d2   :  { %v2942_v24 = vpop.f32.mrb[30].mxu1 }
 0x5d3   :  { %v3082_v26 = vpack.c.bf16 %v2942_v24, %v2939_v23  ;;  %v8934_v6 = vpop.f32.mrb[31].mxu1 }
 0x5d5   :  { %v3104_v50 = vpack.i.b16 %v3083_v36, %v3082_v26  ;;  %v3106_v17 = vshrl.u32 %v3082_v26, 16 }
 0x5d7   :  { %v3108_v44 = vpack.i.b16 %v3107_v19, %v3106_v17  ;;  %v3250_v57 = vcombine.high %v3104_v50, %v10108_v18  ;;  %v3257_v46 = vrot.slane %v3104_v50, %v10112_v20  ;;  %v9204_v50 = vld [vmem:[#allocation11 + $0x30] sm:$0xff]  }
 0x5d8   :  { %v3027_v53 = vpop.f32.mrb[32].mxu1  ;;  %v3071_v1 = vpop.f32.mrb[36].mxu0  ;;  %8965 = vmatprep.subr.bf16.mxu1 %v9204_v50 }
 0x5d9   :  { %v8945_v43 = vpop.f32.mrb[33].mxu1  ;;  %v8951_v54 = vpop.f32.mrb[37].mxu0  ;;  %v3264_v5 = vrot.slane %v3250_v57, %v10112_v20  ;;  %v3316_v36 = vcombine.high %v3108_v44, %v10108_v18  ;;  %v3323_v8 = vrot.slane %v3108_v44, %v10112_v20  ;;  %8966 = vmatpush3.bf16.msra.mxu1 %v9204_v50  ;;  %v9441_v50 = vld [vmem:[#allocation2 + $0x18] sm:$0xff] }
 0x5da   :  { %v3030_v2 = vpop.f32.mrb[34].mxu1  ;;  %v3074_v11 = vpop.f32.mrb[38].mxu0 }
 0x5db   :  { %v3084_v12 = vpack.c.bf16 %v3030_v2, %v3027_v53  ;;  %v3085_v40 = vpack.c.bf16 %v3074_v11, %v3071_v1  ;;  %v8946_v59 = vpop.f32.mrb[35].mxu1  ;;  %v8952_v39 = vpop.f32.mrb[39].mxu0  ;;  %v3330_v61 = vrot.slane %v3316_v36, %v10112_v20 }
 0x5dd   :  { %v3114_v28 = vshrl.u32 %v3084_v12, 16  ;;  %v3112_v15 = vpack.i.b16 %v3085_v40, %v3084_v12  ;;  %v3115_v63 = vshrl.u32 %v3085_v40, 16 }
 0x5df   :  { %v3116_v32 = vpack.i.b16 %v3115_v63, %v3114_v28  ;;  %v3265_v13 = vcombine.high %v3112_v15, %v10108_v18  ;;  %v3272_v31 = vrot.slane %v3112_v15, %v10112_v20  ;;  %v9205_v28 = vld [vmem:[#allocation11 + $0x38] sm:$0xff]  }
 0x5e0   :  { %8967 = vmatprep.subr.bf16.mxu1 %v9205_v28 }
 0x5e1   :  { %v3279_v21 = vrot.slane %v3265_v13, %v10112_v20  ;;  %v3280_v34 = vcombine.low %v3257_v46, %v3272_v31  ;;  %v3281_v3 = vcombine.high %v3257_v46, %v3272_v31  ;;  %v3331_v10 = vcombine.high %v3116_v32, %v10108_v18  ;;  %8968 = vmatpush3.bf16.msra.mxu1 %v9205_v28  ;;  %v9221_v28 = vld [vmem:[#allocation14 + $0x50] ss:$8 sps:$4 sm:$0xff]  }
 0x5e2   :  { %v3338_v4 = vrot.slane %v3116_v32, %v10112_v20 }
 0x5e3   :  { %v3288_v7 = vrot.slane %v3280_v34, %v10121_v38  ;;  %v3295_v42 = vrot.slane %v3281_v3, %v10121_v38  ;;  %v3296_v29 = vcombine.low %v3264_v5, %v3279_v21  ;;  %v3297_v16 = vcombine.high %v3264_v5, %v3279_v21 }
 0x5e4   :  { %v3345_v49 = vrot.slane %v3331_v10, %v10112_v20  ;;  %v3346_v51 = vcombine.low %v3323_v8, %v3338_v4  ;;  %v3347_v52 = vcombine.high %v3323_v8, %v3338_v4 }
 0x5e5   :  { %v3304_v55 = vrot.slane %v3296_v29, %v10121_v38  ;;  %v3311_v62 = vrot.slane %v3297_v16, %v10121_v38  ;;  %v3482_v30 = vcombine.low %v3288_v7, %v3295_v42  ;;  %v8547_v48 = vcombine.high %v3288_v7, %v3295_v42 }
 0x5e6   :  { %v3354_v27 = vrot.slane %v3346_v51, %v10121_v38  ;;  %v3361_v9 = vrot.slane %v3347_v52, %v10121_v38  ;;  %v3362_v60 = vcombine.low %v3330_v61, %v3345_v49  ;;  %v3363_v25 = vcombine.high %v3330_v61, %v3345_v49 }
 0x5e7   :  { %v3489_v37 = vrot.slane %v3482_v30, %v10112_v20  ;;  %v3497_v22 = vrot.slane %v8547_v48, %v10112_v20  ;;  %v3498_v23 = vcombine.low %v3304_v55, %v3311_v62  ;;  %v8548_v45 = vcombine.high %v3304_v55, %v3311_v62 }
 0x5e8   :  { %v3370_v24 = vrot.slane %v3362_v60, %v10121_v38  ;;  %v3377_v26 = vrot.slane %v3363_v25, %v10121_v38  ;;  %v3532_v6 = vcombine.low %v3354_v27, %v3361_v9  ;;  %v8549_v19 = vcombine.high %v3354_v27, %v3361_v9 }
 0x5e9   :  { %v3505_v17 = vrot.slane %v3498_v23, %v10112_v20  ;;  %v3513_v44 = vrot.slane %v8548_v45, %v10112_v20  ;;  %v3514_v53 = vcombine.low %v3489_v37, %v3497_v22  ;;  %v9438_v22 = vld [vmem:[#allocation2] sm:$0xff]  ;;  %v9439_v45 = vld [vmem:[#allocation2 + $0x8] sm:$0xff] }
 0x5ea   :  { %v3539_v1 = vrot.slane %v3532_v6, %v10112_v20  ;;  %v3547_v43 = vrot.slane %v8549_v19, %v10112_v20  ;;  %v3548_v54 = vcombine.low %v3370_v24, %v3377_v26  ;;  %v8550_v2 = vcombine.high %v3370_v24, %v3377_v26  ;;  %v9440_v6 = vld [vmem:[#allocation2 + $0x10] sm:$0xff] }
 0x5eb   :  { %v3522_v11 = vcombine.low %v3505_v17, %v3513_v44  ;;  %v3521_v39 = vrot.slane %v3514_v53, %v10121_v38  ;;  %v9206_v44 = vld [vmem:[#allocation14] ss:$8 sps:$4 sm:$0xff]   ;;  %v9208_v53 = vld [vmem:[#allocation14 + $0x4] ss:$8 sps:$4 sm:$0xff]  }
 0x5ec   :  { %v3555_v12 = vrot.slane %v3548_v54, %v10112_v20  ;;  %v3563_v40 = vrot.slane %v8550_v2, %v10112_v20  ;;  %v3564_v59 = vcombine.low %v3539_v1, %v3547_v43  ;;  %4057 = vmatprep.subr.bf16.mxu1 %v9208_v53  ;;  %v9209_v1 = vld [vmem:[#allocation14 + $0x10] ss:$8 sps:$4 sm:$0xff]   ;;  %v9211_v43 = vld [vmem:[#allocation14 + $0x14] ss:$8 sps:$4 sm:$0xff]   ;;  %v9214_v54 = vld [vmem:[#allocation14 + $0x24] ss:$8 sps:$4 sm:$0xff]  }
 0x5ed   :  { %v3529_v57 = vrot.slane %v3522_v11, %v10121_v38  ;;  %v9212_v2 = vld [vmem:[#allocation14 + $0x20] ss:$8 sps:$4 sm:$0xff]   ;;  %v9217_v11 = vld [vmem:[#allocation14 + $0x34] ss:$8 sps:$4 sm:$0xff]  }
 0x5ee   :  { %v3572_v15 = vcombine.low %v3555_v12, %v3563_v40  ;;  %v3571_v32 = vrot.slane %v3564_v59, %v10121_v38  ;;  %v9215_v12 = vld [vmem:[#allocation14 + $0x30] ss:$8 sps:$4 sm:$0xff]   ;;  %v9220_v40 = vld [vmem:[#allocation14 + $0x44] ss:$8 sps:$4 sm:$0xff]  }
 0x5ef   :  { %v3531_v63 = vcombine.high %v3521_v39, %v3529_v57  ;;  %v3530_v46 = vcombine.low %v3521_v39, %v3529_v57  ;;  %v9230_v59 = vld [vmem:[#allocation13] sm:$0xff]   ;;  %v9223_v57 = vld [vmem:[#allocation14 + $0x54] ss:$8 sps:$4 sm:$0xff]  }
 0x5f0   :  { %v3579_v13 = vrot.slane %v3572_v15, %v10121_v38  ;;  %8973 = vmatprep.subr.bf16.mxu0 %v9230_v59  ;;  %v9218_v39 = vld [vmem:[#allocation14 + $0x40] ss:$8 sps:$4 sm:$0xff]   ;;  %v9226_v15 = vld [vmem:[#allocation14 + $0x64] ss:$8 sps:$4 sm:$0xff]  }
 0x5f1   :  { %v3603_v36 = vshrl.u32 %v3531_v63, 16  ;;  %v3597_v21 = vshrl.u32 %v3530_v46, 16  ;;  %8974 = vmatpush3.bf16.msra.mxu0 %v9230_v59 }
 0x5f2   :  { %v3580_v31 = vcombine.low %v3571_v32, %v3579_v13  ;;  %v3581_v5 = vcombine.high %v3571_v32, %v3579_v13  ;;  %v9227_v32 = vld [vmem:[#allocation14 + $0x70] ss:$8 sps:$4 sm:$0xff]  }
 0x5f3   :  { %v232_v13 = vld [vmem:[#allocation5] sm:$0xff] }
 0x5f4   :  { %v3602_v34 = vpack.i.b16 %v3581_v5, %v3531_v63  ;;  %v3604_v3 = vshrl.u32 %v3581_v5, 16  ;;  %v3598_v10 = vshrl.u32 %v3580_v31, 16  ;;  %v3596_v8 = vpack.i.b16 %v3580_v31, %v3530_v46  ;;  %v9224_v63 = vld [vmem:[#allocation14 + $0x60] ss:$8 sps:$4 sm:$0xff]   ;;  %v9229_v46 = vld [vmem:[#allocation14 + $0x74] ss:$8 sps:$4 sm:$0xff]  }
 0x5f5   :  { %v233_v31 = vld [vmem:[#allocation5 + $0x8] sm:$0xff] }
 0x5f6   :  { %3612 = vrot.lane.b32.xlu1 %v3602_v34, %s12043_s2  ;;  %v3599_v4 = vpack.i.b16 %v3598_v10, %v3597_v21  ;;  %v3605_v7 = vpack.i.b16 %v3604_v3, %v3603_v36  ;;  %v240_v5 = vpack.c.bf16 %v233_v31, %v232_v13  ;;  %v234_v36 = vld [vmem:[#allocation5 + $0x10] sm:$0xff]  ;;  %v235_v21 = vld [vmem:[#allocation5 + $0x18] sm:$0xff] }
 0x5f7   :  { %v241_v34 = vpack.c.bf16 %v235_v21, %v234_v36 }
 0x5f8   :  { %3608 = vrot.lane.b32.xlu0 %v3599_v4, %s9738_s4 }
 0x5fa   :  { %3616 = vrot.lane.b32.xlu1 %v3605_v7, %s9739_s1 }
 0x5fc   :  { %3614 = vrot.lane.b32.xlu0 %v10769_v56, %s9739_s1 }
 0x62e   :  { %v3611_v42 = vpop.permute.xlu1 %3610 }
 0x632   :  { %v3607_v29 = vpop.permute.xlu1 %3606 }
 0x633   :  { %v3620_v49 = vsel %vm2144_vm1, %v3584_v47, %v3607_v29 }
 0x634   :  { %v3626_v30 = vsel %vm3624_vm3, %v3620_v49, %v3611_v42 }
 0x668   :  { %v3613_v16 = vpop.permute.xlu1 %3612 }
 0x66a   :  { %v3609_v61 = vpop.permute.xlu0 %3608 }
 0x66b   :  { %v3623_v51 = vsel %vm2144_vm1, %v3596_v8, %v3609_v61 }
 0x66c   :  { %v3617_v52 = vpop.permute.xlu1 %3616  ;;  %v3628_v55 = vsel %vm3624_vm3, %v3623_v51, %v3613_v16 }
 0x66d   :  { %v3634_v48 = vsel %vm3629_vm4, %v3628_v55, %v3617_v52 }
 0x66e   :  { %v3615_v62 = vpop.permute.xlu0 %3614 }
 0x66f   :  { %v3631_v56 = vsel %vm3629_vm4, %v3626_v30, %v3615_v62 }
 0x670   :  { %8969 = vmatprep.mubr.bf16.mxu1 %v3631_v56 }
 0x671   :  { %8970 = vmatmul.mubr.bf16.vlgmr.msra.gmra.mrb[36].mxu1 %v3634_v48  ;;  %v9231_v48 = vld [vmem:[#allocation13 + $0x8] sm:$0xff]  }
 0x672   :  { %4089 = vmatprep.mubr.bf16.mxu1 %v12021_v0  ;;  %4058 = vmatpush1.bf16.msra.mxu1 %v9206_v44 }
 0x673   :  { %4059 = vmatprep.subr.bf16.mxu1 %v9211_v43  ;;  %8975 = vmatprep.subr.bf16.mxu0 %v9231_v48 }
 0x674   :  { %8976 = vmatpush3.bf16.msra.mxu0 %v9231_v48 }
 0x676   :  { %4060 = vmatpush1.bf16.msra.mxu1 %v9209_v1 }
 0x677   :  { %4061 = vmatprep.subr.bf16.mxu1 %v9214_v54 }
 0x67a   :  { %4062 = vmatpush1.bf16.msra.mxu1 %v9212_v2 }
 0x67b   :  { %4063 = vmatprep.subr.bf16.mxu1 %v9217_v11 }
 0x67e   :  { %4064 = vmatpush1.bf16.msra.mxu1 %v9215_v12 }
 0x67f   :  { %4065 = vmatprep.subr.bf16.mxu1 %v9220_v40 }
 0x682   :  { %4066 = vmatpush1.bf16.msra.mxu1 %v9218_v39 }
 0x683   :  { %4067 = vmatprep.subr.bf16.mxu1 %v9223_v57 }
 0x686   :  { %4068 = vmatpush1.bf16.msra.mxu1 %v9221_v28 }
 0x687   :  { %4069 = vmatprep.subr.bf16.mxu1 %v9226_v15 }
 0x68a   :  { %4070 = vmatpush1.bf16.msra.mxu1 %v9224_v63 }
 0x68b   :  { %4071 = vmatprep.subr.bf16.mxu1 %v9229_v46 }
 0x68e   :  { %4072 = vmatpush1.bf16.msra.mxu1 %v9227_v32 }
 0x68f   :  { %8993 = vmatprep.subr.bf16.mxu1 %v9740_v58 }
 0x691   :  { %4090 = vmatmul.mubr.bf16.vlgmr.msra.gmra.mrb[40].mxu1 %v240_v5 }
 0x692   :  { %4099 = vmatprep.mubr.bf16.mxu1 %v12021_v0 }
 0x699   :  { %4100 = vmatmul.mubr.bf16.gmra.mrb[44].mxu1 %v241_v34 }
 0x69a   :  { %4109 = vmatprep.mubr.bf16.mxu1 %v12021_v0 }
 0x744   :  { %v8971_v14 = vpop.f32.mrb[36].mxu1 }
 0x745   :  { %v3741_v47 = vpop.f32.mrb[37].mxu1  ;;  %v3750_v25 = vadd.f32 %v8971_v14, %v8551_v41  ;;  %v9233_v14 = vld [vmem:[#allocation13 + $0x18] sm:$0xff]  }
 0x746   :  { %v3742_v27 = vadd.f32 %v8551_v41, %v3741_v47  ;;  %v8972_v9 = vpop.f32.mrb[38].mxu1  ;;  %v9234_v47 = vld [vmem:[#allocation13 + $0x20] sm:$0xff]  }
 0x747   :  { %v3744_v60 = vpop.f32.mrb[39].mxu1  ;;  %v3753_v26 = vadd.f32 %v8972_v9, %v8551_v41  ;;  %v3758_v19 = vadd.f32 %v9440_v6, %v3750_v25  ;;  %v9236_v9 = vld [vmem:[#allocation13 + $0x30] sm:$0xff]  }
 0x748   :  { %v3745_v37 = vadd.f32 %v8551_v41, %v3744_v60  ;;  %v3756_v23 = vadd.f32 %v9438_v22, %v3742_v27  ;;  %v9232_v41 = vld [vmem:[#allocation13 + $0x10] sm:$0xff]   ;;  %v9235_v27 = vld [vmem:[#allocation13 + $0x28] sm:$0xff]   ;;  %v9237_v60 = vld [vmem:[#allocation13 + $0x38] sm:$0xff]  }
 0x749   :  { %v10822_v17 = vadd.f32 %v9441_v50, %v3753_v26  ;;  %8977 = vmatprep.subr.bf16.mxu0 %v9232_v41  ;;  %v236_v25 = vld [vmem:[#allocation5 + $0x20] sm:$0xff] }
 0x74a   :  { %3762 = vadd.xlane.f32.xlu0 %v3756_v23  ;;  %v3757_v24 = vadd.f32 %v9439_v45, %v3745_v37  ;;  %8978 = vmatpush3.bf16.msra.mxu0 %v9232_v41  ;;  %v237_v37 = vld [vmem:[#allocation5 + $0x28] sm:$0xff] }
 0x74b   :  { %8979 = vmatprep.subr.bf16.mxu0 %v9233_v14  ;;  %v242_v22 = vpack.c.bf16 %v237_v37, %v236_v25 }
 0x74c   :  { %3764 = vadd.xlane.f32.xlu1 %v3757_v24 }
 0x74d   :  { %4110 = vmatmul.mubr.bf16.gmra.mrb[48].mxu1 %v242_v22 }
 0x74e   :  { %3766 = vadd.xlane.f32.xlu0 %v3758_v19  ;;  %8980 = vmatpush3.bf16.msra.mxu0 %v9233_v14 }
 0x74f   :  { %8981 = vmatprep.subr.bf16.mxu0 %v9234_v47  ;;  %8997 = vmatprep.mubr.msk.bf16.mxu1 %vm9741_vm0, %v9740_v58 }
 0x752   :  { %3768 = vadd.xlane.f32.xlu0 %v10822_v17  ;;  %8982 = vmatpush3.bf16.msra.mxu0 %v9234_v47 }
 0x753   :  { %8983 = vmatprep.subr.bf16.mxu0 %v9235_v27 }
 0x756   :  { %8984 = vmatpush3.bf16.msra.mxu0 %v9235_v27 }
 0x757   :  { %8985 = vmatprep.subr.bf16.mxu0 %v9236_v9 }
 0x75a   :  { %8986 = vmatpush3.bf16.msra.mxu0 %v9236_v9 }
 0x75b   :  { %8987 = vmatprep.subr.bf16.mxu0 %v9237_v60 }
 0x75e   :  { %8988 = vmatpush3.bf16.msra.mxu0 %v9237_v60 }
 0x75f   :  { %9001 = vmatprep.subr.bf16.mxu0 %v9740_v58 }
 0x764   :  { %v4091_v26 = vpop.f32.mrb[40].mxu1 }
 0x7d7   :  { %v3763_v3 = vpop.xlane.xlu0 %3762 }
 0x7d8   :  { %v3771_v10 = vmul.f32 0.0078125, %v3763_v3 }
 0x7d9   :  { %v3765_v8 = vpop.xlane.xlu1 %3764 }
 0x7da   :  { %v10828_v4 = vsub.f32 %v3756_v23, %v3771_v10  ;;  %v3772_v7 = vmul.f32 0.0078125, %v3765_v8  ;;  %v3965_v23 = vld [vmem:[%s11994_s13] sm:$0x3] }
 0x7db   :  { %v3767_v42 = vpop.xlane.xlu0 %3766  ;;  %v10852_v45 = vrot.slane %v3965_v23, %v10051_v33 }
 0x7dc   :  { %v10830_v29 = vsub.f32 %v3757_v24, %v3772_v7  ;;  %v3773_v16 = vmul.f32 0.0078125, %v3767_v42  ;;  %v3779_v61 = vmul.f32 %v10828_v4, %v10828_v4  ;;  %v10855_v24 = vrot.slane %v3965_v23, %v10057_v35 }
 0x7dd   :  { %v4092_v6 = vadd.f32 %v4091_v26, %v10852_v45 }
 0x7de   :  { %v10834_v49 = vsub.f32 %v3758_v19, %v3773_v16  ;;  %3783 = vadd.xlane.f32.xlu1 %v3779_v61  ;;  %v3780_v51 = vmul.f32 %v10830_v29, %v10830_v29  ;;  %v4093_v19 = vpop.f32.mrb[41].mxu1  ;;  %v8560_v16 = vld [vmem:[%s12046_s25] ss:$0 sm:$0xff] }
 0x7df   :  { %v3769_v52 = vpop.xlane.xlu0 %3768  ;;  %v4094_v50 = vadd.f32 %v4093_v19, %v10855_v24 }
 0x7e0   :  { %v3774_v55 = vmul.f32 0.0078125, %v3769_v52  ;;  %3785 = vadd.xlane.f32.xlu0 %v3780_v51  ;;  %v3781_v62 = vmul.f32 %v10834_v49, %v10834_v49 }
 0x7e2   :  { %v10841_v30 = vsub.f32 %v10822_v17, %v3774_v55  ;;  %3787 = vadd.xlane.f32.xlu1 %v3781_v62  ;;  %v4095_v17 = vpop.f32.mrb[42].mxu1 }
 0x7e3   :  { %v4096_v44 = vadd.f32 %v4095_v17, %v10852_v45  ;;  %v4097_v53 = vpop.f32.mrb[43].mxu1 }
 0x7e4   :  { %v3782_v56 = vmul.f32 %v10841_v30, %v10841_v30  ;;  %v4098_v1 = vadd.f32 %v4097_v53, %v10855_v24  ;;  %v4101_v2 = vpop.f32.mrb[44].mxu1 }
 0x7e5   :  { %v10861_v43 = vpack.c.bf16 %v4096_v44, %v4092_v6  ;;  %v4102_v11 = vadd.f32 %v4101_v2, %v10852_v45  ;;  %v4103_v12 = vpop.f32.mrb[45].mxu1 }
 0x7e6   :  { %3789 = vadd.xlane.f32.xlu0 %v3782_v56  ;;  %v10863_v54 = vpack.c.bf16 %v4098_v1, %v4094_v50  ;;  %v4105_v40 = vpop.f32.mrb[46].mxu1  ;;  %v4104_v39 = vadd.f32 %v4103_v12, %v10855_v24  ;;  %v8561_v56 = vld [vmem:[%s11990_s9] ss:$0 sm:$0xff] }
 0x7e7   :  { %v4106_v59 = vadd.f32 %v4105_v40, %v10852_v45  ;;  %v4107_v28 = vpop.f32.mrb[47].mxu1  ;;  %v4684_v22 = vshrl.u32 %v10861_v43, 16 }
 0x7e8   :  { %v4108_v15 = vadd.f32 %v4107_v28, %v10855_v24 }
 0x7e9   :  { %v10874_v57 = vpack.c.bf16 %v4106_v59, %v4102_v11 }
 0x7ea   :  { %v10881_v63 = vpack.c.bf16 %v4108_v15, %v4104_v39 }
 0x7f3   :  { %4662 = vrot.lane.b32.xlu1 %v10861_v43, %s9739_s1 }
 0x7f7   :  { %4674 = vrot.lane.b32.xlu1 %v10861_v43, %s9738_s4 }
 0x7fb   :  { %4664 = vrot.lane.b32.xlu1 %v10874_v57, %s9739_s1 }
 0x7fc   :  { %4668 = vrot.lane.b32.xlu0 %v10861_v43, %s12043_s2 }
 0x7ff   :  { %4676 = vrot.lane.b32.xlu1 %v10874_v57, %s9738_s4 }
 0x800   :  { %4670 = vrot.lane.b32.xlu0 %v10874_v57, %s12043_s2 }
 0x86b   :  { %v3784_v46 = vpop.xlane.xlu1 %3783 }
 0x86c   :  { %v3791_v32 = vmul.f32 0.0078125, %v3784_v46 }
 0x86d   :  { %v3786_v13 = vpop.xlane.xlu0 %3785 }
 0x86e   :  { %v3795_v31 = vadd.f32 1e-05, %v3791_v32  ;;  %v3792_v5 = vmul.f32 0.0078125, %v3786_v13 }
 0x86f   :  { %v3788_v36 = vpop.xlane.xlu1 %3787 }
 0x870   :  { %9350 = vrsqrt.f32 %v3795_v31  ;;  %v3796_v21 = vadd.f32 1e-05, %v3792_v5  ;;  %v3793_v34 = vmul.f32 0.0078125, %v3788_v36 }
 0x872   :  { %9352 = vrsqrt.f32 %v3796_v21  ;;  %v3797_v3 = vadd.f32 1e-05, %v3793_v34  ;;  %v4700_v34 = vshrl.u32 %v10874_v57, 16 }
 0x873   :  { %v3790_v10 = vpop.xlane.xlu0 %3789 }
 0x874   :  { %9354 = vrsqrt.f32 %v3797_v3  ;;  %v3794_v8 = vmul.f32 0.0078125, %v3790_v10 }
 0x876   :  { %v3798_v7 = vadd.f32 1e-05, %v3794_v8 }
 0x877   :  { %v4669_v23 = vpop.permute.xlu0 %4668 }
 0x878   :  { %9356 = vrsqrt.f32 %v3798_v7  ;;  %v4692_v50 = vshrl.u32 %v4669_v23, 16 }
 0x87a   :  { %v9351_v42 = vpop.eup %9350 }
 0x87b   :  { %v3803_v61 = vmul.f32 %v9351_v42, %v10828_v4 }
 0x87c   :  { %v9353_v51 = vpop.eup %9352 }
 0x87d   :  { %v3804_v52 = vmul.f32 %v9353_v51, %v10830_v29  ;;  %v3813_v55 = vmul.f32 %v8560_v16, %v3803_v61 }
 0x87e   :  { %v9355_v62 = vpop.eup %9354 }
 0x87f   :  { %v3805_v48 = vmul.f32 %v9355_v62, %v10834_v49  ;;  %v3814_v41 = vmul.f32 %v8560_v16, %v3804_v52  ;;  %v10894_v14 = vadd.f32 %v8561_v56, %v3813_v55 }
 0x881   :  { %v10896_v47 = vadd.f32 %v8561_v56, %v3814_v41  ;;  %v3815_v29 = vmul.f32 %v8560_v16, %v3805_v48 }
 0x882   :  { %v9357_v27 = vpop.eup %9356 }
 0x883   :  { %v3806_v9 = vmul.f32 %v9357_v27, %v10841_v30  ;;  %v3827_v4 = vpack.c.bf16 %v10896_v47, %v10894_v14  ;;  %v10901_v25 = vadd.f32 %v8561_v56, %v3815_v29  ;;  %v4663_v30 = vpop.permute.xlu1 %4662 }
 0x884   :  { %v4682_v26 = vpack.i.b16 %v4663_v30, %v10861_v43  ;;  %v4685_v6 = vshrl.u32 %v4663_v30, 16 }
 0x885   :  { %8989 = vmatprep.mubr.bf16.mxu0 %v3827_v4  ;;  %v3816_v60 = vmul.f32 %v8560_v16, %v3806_v9 }
 0x886   :  { %v4686_v19 = vpack.i.b16 %v4685_v6, %v4684_v22  ;;  %v4728_v17 = vcombine.high %v4682_v26, %v10108_v18  ;;  %v4735_v2 = vrot.slane %v4682_v26, %v10112_v20 }
 0x887   :  { %v10903_v37 = vadd.f32 %v8561_v56, %v3816_v60  ;;  %v4675_v44 = vpop.permute.xlu1 %4674 }
 0x888   :  { %v4794_v53 = vcombine.high %v4686_v19, %v10108_v18  ;;  %v4693_v1 = vshrl.u32 %v4675_v44, 16  ;;  %v4690_v11 = vpack.i.b16 %v4675_v44, %v4669_v23  ;;  %v4801_v12 = vrot.slane %v4686_v19, %v10112_v20 }
 0x889   :  { %v3828_v49 = vpack.c.bf16 %v10903_v37, %v10901_v25  ;;  %v4742_v59 = vrot.slane %v4728_v17, %v10112_v20 }
 0x88a   :  { %v4694_v40 = vpack.i.b16 %v4693_v1, %v4692_v50  ;;  %v4743_v39 = vcombine.high %v4690_v11, %v10108_v18  ;;  %v4750_v43 = vrot.slane %v4690_v11, %v10112_v20  ;;  %v4808_v28 = vrot.slane %v4794_v53, %v10112_v20  ;;  %v4671_v1 = vpop.permute.xlu0 %4670 }
 0x88b   :  { %8990 = vmatmul.mubr.bf16.vlgmr.msra.gmra.mrb[40].mxu0 %v3828_v49  ;;  %v4665_v42 = vpop.permute.xlu1 %4664 }
 0x88c   :  { %9005 = vmatprep.mubr.msk.bf16.mxu0 %vm9741_vm0, %v9740_v58  ;;  %v4809_v15 = vcombine.high %v4694_v40, %v10108_v18  ;;  %v4816_v46 = vrot.slane %v4694_v40, %v10112_v20  ;;  %v4757_v32 = vrot.slane %v4743_v39, %v10112_v20  ;;  %v4758_v13 = vcombine.low %v4735_v2, %v4750_v43 }
 0x88d   :  { %v4759_v31 = vcombine.high %v4735_v2, %v4750_v43  ;;  %v4698_v51 = vpack.i.b16 %v4665_v42, %v10874_v57  ;;  %v4701_v52 = vshrl.u32 %v4665_v42, 16  ;;  %v4708_v40 = vshrl.u32 %v4671_v1, 16 }
 0x88e   :  { %v4823_v5 = vrot.slane %v4809_v15, %v10112_v20  ;;  %v4824_v36 = vcombine.low %v4801_v12, %v4816_v46  ;;  %v4825_v21 = vcombine.high %v4801_v12, %v4816_v46  ;;  %v4766_v3 = vrot.slane %v4758_v13, %v10121_v38 }
 0x88f   :  { %v4773_v10 = vrot.slane %v4759_v31, %v10121_v38  ;;  %v4774_v8 = vcombine.low %v4742_v59, %v4757_v32  ;;  %v4775_v7 = vcombine.high %v4742_v59, %v4757_v32  ;;  %v4702_v29 = vpack.i.b16 %v4701_v52, %v4700_v34  ;;  %v4677_v19 = vpop.permute.xlu1 %4676  ;;  %v4111_v31 = vpop.f32.mrb[48].mxu1 }
 0x890   :  { %v4840_v16 = vcombine.low %v4808_v28, %v4823_v5  ;;  %v4841_v61 = vcombine.high %v4808_v28, %v4823_v5  ;;  %v4832_v56 = vrot.slane %v4824_v36, %v10121_v38  ;;  %v4839_v48 = vrot.slane %v4825_v21, %v10121_v38  ;;  %v4113_v42 = vpop.f32.mrb[49].mxu1 }
 0x891   :  { %v4782_v55 = vrot.slane %v4774_v8, %v10121_v38  ;;  %v4789_v62 = vrot.slane %v4775_v7, %v10121_v38  ;;  %v5124_v41 = vcombine.low %v4766_v3, %v4773_v10  ;;  %v8595_v27 = vcombine.high %v4766_v3, %v4773_v10 }
 0x892   :  { %v4848_v9 = vrot.slane %v4840_v16, %v10121_v38  ;;  %v4855_v4 = vrot.slane %v4841_v61, %v10121_v38  ;;  %v4860_v60 = vcombine.high %v4698_v51, %v10108_v18  ;;  %v5174_v22 = vcombine.low %v4832_v56, %v4839_v48 }
 0x893   :  { %v5140_v49 = vcombine.low %v4782_v55, %v4789_v62  ;;  %v8596_v57 = vcombine.high %v4782_v55, %v4789_v62  ;;  %v8597_v30 = vcombine.high %v4832_v56, %v4839_v48  ;;  %v5131_v23 = vrot.slane %v5124_v41, %v10112_v20 }
 0x894   :  { %v5139_v26 = vrot.slane %v8595_v27, %v10112_v20  ;;  %v4926_v6 = vcombine.high %v4702_v29, %v10108_v18  ;;  %v5190_v50 = vcombine.low %v4848_v9, %v4855_v4  ;;  %v8598_v17 = vcombine.high %v4848_v9, %v4855_v4 }
 0x895   :  { %v4867_v44 = vrot.slane %v4698_v51, %v10112_v20  ;;  %v4709_v53 = vshrl.u32 %v4677_v19, 16  ;;  %v4874_v2 = vrot.slane %v4860_v60, %v10112_v20  ;;  %v4933_v11 = vrot.slane %v4702_v29, %v10112_v20  ;;  %v4115_v51 = vpop.f32.mrb[50].mxu1 }
 0x896   :  { %v4706_v12 = vpack.i.b16 %v4677_v19, %v4671_v1  ;;  %v5147_v59 = vrot.slane %v5140_v49, %v10112_v20  ;;  %v5155_v39 = vrot.slane %v8596_v57, %v10112_v20  ;;  %v5181_v43 = vrot.slane %v5174_v22, %v10112_v20 }
 0x897   :  { %v5189_v28 = vrot.slane %v8597_v30, %v10112_v20  ;;  %v4940_v15 = vrot.slane %v4926_v6, %v10112_v20  ;;  %v4710_v46 = vpack.i.b16 %v4709_v53, %v4708_v40  ;;  %v5156_v5 = vcombine.low %v5131_v23, %v5139_v26 }
 0x898   :  { %v4875_v32 = vcombine.high %v4706_v12, %v10108_v18  ;;  %v4882_v13 = vrot.slane %v4706_v12, %v10112_v20  ;;  %v5164_v36 = vcombine.low %v5147_v59, %v5155_v39  ;;  %v5197_v21 = vrot.slane %v5190_v50, %v10112_v20 }
 0x899   :  { %v5205_v34 = vrot.slane %v8598_v17, %v10112_v20  ;;  %v4941_v7 = vcombine.high %v4710_v46, %v10108_v18  ;;  %v4948_v16 = vrot.slane %v4710_v46, %v10112_v20  ;;  %v4112_v61 = vadd.f32 %v4111_v31, %v10852_v45 }
 0x89a   :  { %v4889_v3 = vrot.slane %v4875_v32, %v10112_v20  ;;  %v4890_v10 = vcombine.low %v4867_v44, %v4882_v13  ;;  %v4891_v8 = vcombine.high %v4867_v44, %v4882_v13  ;;  %v10954_v52 = vrot.slane %v5156_v5, %v10121_v38 }
 0x89b   :  { %v5206_v55 = vcombine.low %v5181_v43, %v5189_v28  ;;  %v4955_v27 = vrot.slane %v4941_v7, %v10112_v20  ;;  %v4956_v9 = vcombine.low %v4933_v11, %v4948_v16  ;;  %v4957_v4 = vcombine.high %v4933_v11, %v4948_v16 }
 0x89c   :  { %v4898_v62 = vrot.slane %v4890_v10, %v10121_v38  ;;  %v4905_v56 = vrot.slane %v4891_v8, %v10121_v38  ;;  %v4906_v48 = vcombine.low %v4874_v2, %v4889_v3  ;;  %v4907_v41 = vcombine.high %v4874_v2, %v4889_v3 }
 0x89d   :  { %v4116_v29 = vadd.f32 %v4115_v51, %v10852_v45  ;;  %v4964_v30 = vrot.slane %v4956_v9, %v10121_v38  ;;  %v4971_v23 = vrot.slane %v4957_v4, %v10121_v38  ;;  %v4972_v26 = vcombine.low %v4940_v15, %v4955_v27 }
 0x89e   :  { %v10961_v60 = vrot.slane %v4906_v48, %v10121_v38  ;;  %v4921_v49 = vrot.slane %v4907_v41, %v10121_v38  ;;  %v5224_v57 = vcombine.low %v4898_v62, %v4905_v56  ;;  %v8599_v22 = vcombine.high %v4898_v62, %v4905_v56 }
 0x89f   :  { %v4973_v6 = vcombine.high %v4940_v15, %v4955_v27  ;;  %v4980_v44 = vrot.slane %v4972_v26, %v10121_v38  ;;  %v5249_v1 = vcombine.low %v4964_v30, %v4971_v23  ;;  %v8600_v2 = vcombine.high %v4964_v30, %v4971_v23  ;;  %v4117_v27 = vpop.f32.mrb[51].mxu1 }
 0x8a0   :  { %v5231_v19 = vrot.slane %v5224_v57, %v10112_v20  ;;  %v5239_v50 = vrot.slane %v8599_v22, %v10112_v20  ;;  %v5274_v17 = vcombine.low %v10961_v60, %v4921_v49  ;;  %v8601_v45 = vcombine.high %v10961_v60, %v4921_v49 }
 0x8a1   :  { %v4987_v53 = vrot.slane %v4973_v6, %v10121_v38  ;;  %v10972_v11 = vpack.c.bf16 %v4116_v29, %v4112_v61  ;;  %v5171_v12 = vrot.slane %v5164_v36, %v10121_v38  ;;  %v5256_v40 = vrot.slane %v5249_v1, %v10112_v20 }
 0x8a2   :  { %v5264_v59 = vrot.slane %v8600_v2, %v10112_v20  ;;  %v5213_v15 = vrot.slane %v5206_v55, %v10121_v38  ;;  %v5214_v46 = vcombine.low %v5197_v21, %v5205_v34  ;;  %v5240_v32 = vcombine.low %v5231_v19, %v5239_v50  ;;  %v8562_v2 = vld [vmem:[%s11992_s11] ss:$0 sm:$0xff] }
 0x8a3   :  { %v5324_v39 = vcombine.low %v4980_v44, %v4987_v53  ;;  %v8603_v43 = vcombine.high %v4980_v44, %v4987_v53  ;;  %v5172_v28 = vcombine.low %v10954_v52, %v5171_v12  ;;  %v4114_v41 = vadd.f32 %v4113_v42, %v10855_v24 }
 0x8a4   :  { %v5265_v13 = vcombine.low %v5256_v40, %v5264_v59  ;;  %v5221_v31 = vrot.slane %v5214_v46, %v10121_v38  ;;  %v5247_v10 = vrot.slane %v5240_v32, %v10121_v38  ;;  %v4118_v9 = vadd.f32 %v4117_v27, %v10855_v24 }
 0x8a5   :  { %v5427_v3 = vshrl.u32 %v5172_v28, 16  ;;  %v10995_v29 = vcombine.high %v10954_v52, %v5171_v12  ;;  %v11006_v24 = vrot.slane %v5274_v17, %v10112_v20  ;;  %v11009_v30 = vrot.slane %v8601_v45, %v10112_v20 }
 0x8a6   :  { %v5222_v5 = vcombine.low %v5213_v15, %v5221_v31  ;;  %v5272_v36 = vrot.slane %v5265_v13, %v10121_v38  ;;  %v5439_v51 = vshrl.u32 %v5247_v10, 16  ;;  %v10992_v4 = vpack.c.bf16 %v4118_v9, %v4114_v41 }
 0x8a7   :  { %v10997_v60 = vcombine.high %v5213_v15, %v5221_v31  ;;  %v5433_v49 = vshrl.u32 %v10995_v29, 16  ;;  %v11012_v52 = vcombine.high %v5247_v10, %v12021_v0  ;;  %v5306_v17 = vcombine.low %v11006_v24, %v11009_v30 }
 0x8a8   :  { %v5426_v8 = vpack.i.b16 %v5222_v5, %v5172_v28  ;;  %v5428_v7 = vshrl.u32 %v5222_v5, 16  ;;  %v5440_v62 = vshrl.u32 %v5272_v36, 16  ;;  %v5438_v34 = vpack.i.b16 %v5272_v36, %v5247_v10 }
 0x8a9   :  { %v5434_v57 = vshrl.u32 %v10997_v60, 16  ;;  %v5432_v42 = vpack.i.b16 %v10997_v60, %v10995_v29  ;;  %v11015_v23 = vcombine.high %v5272_v36, %v12021_v0  ;;  %v5445_v26 = vshrl.u32 %v11012_v52, 16 }
 0x8aa   :  { %v6300_v16 = vsel %vm2144_vm1, %v5426_v8, 0  ;;  %v5429_v61 = vpack.i.b16 %v5428_v7, %v5427_v3  ;;  %v5441_v55 = vpack.i.b16 %v5440_v62, %v5439_v51  ;;  %v6303_v56 = vsel %vm2144_vm1, %v5438_v34, 0 }
 0x8ab   :  { %8994 = vmatpush3.bf16.xpose.msra.mxu1 %v6300_v16  ;;  %v11003_v22 = vpack.i.b16 %v5434_v57, %v5433_v49  ;;  %v5446_v6 = vshrl.u32 %v11015_v23, 16  ;;  %v5444_v19 = vpack.i.b16 %v11015_v23, %v11012_v52  ;;  %v11026_v45 = vrot.slane %v5324_v39, %v10112_v20 }
 0x8ac   :  { %v6350_v21 = vsel %vm2144_vm1, %v5429_v61, 0  ;;  %8995 = vmatprep.subr.bf16.mxu1 %v9740_v58  ;;  %v6353_v48 = vsel %vm2144_vm1, %v5441_v55, 0  ;;  %v11029_v44 = vrot.slane %v8603_v43, %v10112_v20 }
 0x8ad   :  { %9002 = vmatpush3.bf16.xpose.msra.mxu0 %v6350_v21  ;;  %v11021_v50 = vpack.i.b16 %v5446_v6, %v5445_v26  ;;  %v11111_v29 = vsel %vm2144_vm1, %v11003_v22, 0  ;;  %v11127_v22 = vrot.slane %v5306_v17, %v10121_v38 }
 0x8ae   :  { %9003 = vmatprep.subr.bf16.mxu0 %v9740_v58  ;;  %v5356_v53 = vcombine.low %v11026_v45, %v11029_v44 }
 0x8b3   :  { %8996 = vmatpush3.bf16.xpose.msra.mxu1 %v6303_v56 }
 0x8b4   :  { %9017 = vmatprep.subr.bf16.mxu1 %v9740_v58 }
 0x8b5   :  { %9004 = vmatpush3.bf16.xpose.msra.mxu0 %v6353_v48 }
 0x8b6   :  { %9009 = vmatprep.subr.bf16.mxu0 %v9740_v58 }
 0x95e   :  { %v8991_v1 = vpop.f32.mrb[40].mxu0 }
 0x95f   :  { %v3934_v12 = vpop.f32.mrb[41].mxu0  ;;  %v3943_v59 = vadd.f32 %v8991_v1, %v8562_v2 }
 0x960   :  { %v8992_v40 = vpop.f32.mrb[42].mxu0  ;;  %v3935_v46 = vadd.f32 %v8562_v2, %v3934_v12 }
 0x961   :  { %v3946_v28 = vadd.f32 %v8992_v40, %v8562_v2  ;;  %v3937_v15 = vpop.f32.mrb[43].mxu0 }
 0x962   :  { %v3938_v32 = vadd.f32 %v8562_v2, %v3937_v15 }
 0x963   :  { %v11036_v39 = vpack.c.bf16 %v3946_v28, %v3943_v59 }
 0x964   :  { %v4120_v13 = vpack.c.bf16 %v3938_v32, %v3935_v46 }
 0x966   :  { %4128 = vrot.lane.b32.xlu1 %v4120_v13, %s12043_s2  ;;  %4124 = vrot.lane.b32.xlu0 %v4120_v13, %s9739_s1  ;;  %v4140_v3 = vshrl.u32 %v4120_v13, 16 }
 0x96a   :  { %4666 = vrot.lane.b32.xlu1 %v10972_v11, %s9739_s1  ;;  %4132 = vrot.lane.b32.xlu0 %v4120_v13, %s9738_s4 }
 0x96e   :  { %4678 = vrot.lane.b32.xlu1 %v10972_v11, %s9738_s4  ;;  %4672 = vrot.lane.b32.xlu0 %v10972_v11, %s12043_s2 }
 0x972   :  { %4130 = vrot.lane.b32.xlu1 %v11036_v39, %s12043_s2  ;;  %4126 = vrot.lane.b32.xlu0 %v11036_v39, %s9739_s1 }
 0x976   :  { %5484 = vrot.lane.b32.xlu1 %v10863_v54, %s12043_s2  ;;  %4134 = vrot.lane.b32.xlu0 %v11036_v39, %s9738_s4 }
 0x97a   :  { %5490 = vrot.lane.b32.xlu1 %v10863_v54, %s9738_s4  ;;  %5478 = vrot.lane.b32.xlu0 %v10863_v54, %s9739_s1 }
 0x97e   :  { %5480 = vrot.lane.b32.xlu1 %v10881_v63, %s9739_s1  ;;  %5486 = vrot.lane.b32.xlu0 %v10881_v63, %s12043_s2 }
 0x982   :  { %5492 = vrot.lane.b32.xlu1 %v10881_v63, %s9738_s4 }
 0x9d8   :  { %v4129_v43 = vpop.permute.xlu1 %4128  ;;  %v4125_v31 = vpop.permute.xlu0 %4124 }
 0x9d9   :  { %v4141_v5 = vshrl.u32 %v4125_v31, 16  ;;  %v4138_v10 = vpack.i.b16 %v4125_v31, %v4120_v13  ;;  %v4148_v16 = vshrl.u32 %v4129_v43, 16 }
 0x9db   :  { %v4142_v36 = vpack.i.b16 %v4141_v5, %v4140_v3  ;;  %v4168_v61 = vcombine.high %v4138_v10, %v10108_v18  ;;  %v4175_v21 = vrot.slane %v4138_v10, %v10112_v20 }
 0x9dc   :  { %v4133_v8 = vpop.permute.xlu0 %4132  ;;  %v4667_v7 = vpop.permute.xlu1 %4666 }
 0x9dd   :  { %v4146_v51 = vpack.i.b16 %v4133_v8, %v4129_v43  ;;  %v4149_v62 = vshrl.u32 %v4133_v8, 16  ;;  %v4234_v34 = vcombine.high %v4142_v36, %v10108_v18  ;;  %v4182_v41 = vrot.slane %v4168_v61, %v10112_v20 }
 0x9de   :  { %v4241_v49 = vrot.slane %v4142_v36, %v10112_v20  ;;  %v4714_v3 = vpack.i.b16 %v4667_v7, %v10972_v11 }
 0x9df   :  { %v4150_v55 = vpack.i.b16 %v4149_v62, %v4148_v16  ;;  %v4183_v56 = vcombine.high %v4146_v51, %v10108_v18  ;;  %v4190_v48 = vrot.slane %v4146_v51, %v10112_v20  ;;  %v4248_v12 = vrot.slane %v4234_v34, %v10112_v20 }
 0x9e0   :  { %v4679_v1 = vpop.permute.xlu1 %4678  ;;  %v4673_v2 = vpop.permute.xlu0 %4672 }
 0x9e1   :  { %v4197_v27 = vrot.slane %v4183_v56, %v10112_v20  ;;  %v4198_v9 = vcombine.low %v4175_v21, %v4190_v48  ;;  %v4199_v57 = vcombine.high %v4175_v21, %v4190_v48  ;;  %v4249_v26 = vcombine.high %v4150_v55, %v10108_v18 }
 0x9e2   :  { %v4256_v6 = vrot.slane %v4150_v55, %v10112_v20  ;;  %v4722_v5 = vpack.i.b16 %v4679_v1, %v4673_v2  ;;  %v4716_v56 = vshrl.u32 %v10972_v11, 16  ;;  %v4717_v48 = vshrl.u32 %v4667_v7, 16 }
 0x9e3   :  { %v4206_v40 = vrot.slane %v4198_v9, %v10121_v38  ;;  %v4214_v59 = vcombine.low %v4182_v41, %v4197_v27  ;;  %v4215_v28 = vcombine.high %v4182_v41, %v4197_v27  ;;  %v4213_v15 = vrot.slane %v4199_v57, %v10121_v38 }
 0x9e4   :  { %v4263_v46 = vrot.slane %v4249_v26, %v10112_v20  ;;  %v4264_v32 = vcombine.low %v4241_v49, %v4256_v6  ;;  %v4265_v13 = vcombine.high %v4241_v49, %v4256_v6  ;;  %v5007_v41 = vcombine.high %v4722_v5, %v10108_v18 }
 0x9e5   :  { %v4222_v43 = vrot.slane %v4214_v59, %v10121_v38  ;;  %v4229_v31 = vrot.slane %v4215_v28, %v10121_v38  ;;  %v4432_v34 = vcombine.low %v4206_v40, %v4213_v15  ;;  %v8587_v55 = vcombine.high %v4206_v40, %v4213_v15 }
 0x9e6   :  { %v4280_v10 = vcombine.low %v4248_v12, %v4263_v46  ;;  %v4281_v36 = vcombine.high %v4248_v12, %v4263_v46  ;;  %v4272_v8 = vrot.slane %v4264_v32, %v10121_v38  ;;  %v4279_v16 = vrot.slane %v4265_v13, %v10121_v38 }
 0x9e7   :  { %v4448_v61 = vcombine.low %v4222_v43, %v4229_v31  ;;  %v8588_v51 = vcombine.high %v4222_v43, %v4229_v31  ;;  %v5014_v27 = vrot.slane %v4722_v5, %v10112_v20  ;;  %v4992_v9 = vcombine.high %v4714_v3, %v10108_v18 }
 0x9e8   :  { %v4288_v62 = vrot.slane %v4280_v10, %v10121_v38  ;;  %v4295_v21 = vrot.slane %v4281_v36, %v10121_v38  ;;  %v4999_v49 = vrot.slane %v4714_v3, %v10112_v20  ;;  %v4725_v57 = vshrl.u32 %v4679_v1, 16 }
 0x9e9   :  { %v4724_v26 = vshrl.u32 %v4673_v2, 16  ;;  %v4455_v6 = vrot.slane %v4448_v61, %v10112_v20  ;;  %v4463_v12 = vrot.slane %v8588_v51, %v10112_v20  ;;  %v4482_v59 = vcombine.low %v4272_v8, %v4279_v16  ;;  %v4127_v61 = vpop.permute.xlu0 %4126 }
 0x9ea   :  { %v8589_v28 = vcombine.high %v4272_v8, %v4279_v16  ;;  %v4439_v40 = vrot.slane %v4432_v34, %v10112_v20  ;;  %v4447_v11 = vrot.slane %v8587_v55, %v10112_v20  ;;  %v4498_v7 = vcombine.low %v4288_v62, %v4295_v21  ;;  %v4131_v16 = vpop.permute.xlu1 %4130 }
 0x9eb   :  { %v8590_v15 = vcombine.high %v4288_v62, %v4295_v21  ;;  %v5021_v46 = vrot.slane %v5007_v41, %v10112_v20  ;;  %v5022_v32 = vcombine.low %v4999_v49, %v5014_v27  ;;  %v5023_v13 = vcombine.high %v4999_v49, %v5014_v27 }
 0x9ec   :  { %v5500_v43 = vshrl.u32 %v10863_v54, 16  ;;  %v4718_v1 = vpack.i.b16 %v4717_v48, %v4716_v56  ;;  %v4726_v2 = vpack.i.b16 %v4725_v57, %v4724_v26  ;;  %v5516_v31 = vshrl.u32 %v10881_v63, 16 }
 0x9ed   :  { %v11102_v5 = vsel %vm2144_vm1, %v5432_v42, 0  ;;  %v5006_v3 = vrot.slane %v4992_v9, %v10112_v20  ;;  %v4472_v10 = vcombine.low %v4455_v6, %v4463_v12  ;;  %v4489_v36 = vrot.slane %v4482_v59, %v10112_v20  ;;  %v4135_v59 = vpop.permute.xlu0 %4134 }
 0x9ee   :  { %v4497_v8 = vrot.slane %v8589_v28, %v10112_v20  ;;  %v4464_v51 = vcombine.low %v4439_v40, %v4447_v11  ;;  %v4505_v62 = vrot.slane %v4498_v7, %v10112_v20  ;;  %v4513_v21 = vrot.slane %v8590_v15, %v10112_v20  ;;  %v11141_v12 = vpop.permute.xlu1 %5484 }
 0x9ef   :  { %v5030_v60 = vrot.slane %v5022_v32, %v10121_v38  ;;  %v5037_v42 = vrot.slane %v5023_v13, %v10121_v38  ;;  %v5038_v34 = vcombine.low %v5006_v3, %v5021_v46  ;;  %v5039_v55 = vcombine.high %v5006_v3, %v5021_v46 }
 0x9f0   :  { %v5058_v56 = vcombine.high %v4718_v1, %v10108_v18  ;;  %v5080_v48 = vrot.slane %v4726_v2, %v10112_v20  ;;  %v11121_v41 = vsel %vm2144_vm1, %v5444_v19, 0  ;;  %v5065_v27 = vrot.slane %v4718_v1, %v10112_v20 }
 0x9f1   :  { %v11131_v9 = vrot.slane %v4472_v10, %v10121_v38  ;;  %v4514_v49 = vcombine.low %v4489_v36, %v4497_v8  ;;  %v4156_v57 = vshrl.u32 %v11036_v39, 16  ;;  %v4522_v26 = vcombine.low %v4505_v62, %v4513_v21 }
 0x9f2   :  { %v5073_v52 = vcombine.high %v4726_v2, %v10108_v18  ;;  %v4154_v23 = vpack.i.b16 %v4127_v61, %v11036_v39  ;;  %v4157_v19 = vshrl.u32 %v4127_v61, 16  ;;  %v11137_v6 = vrot.slane %v4464_v51, %v10121_v38 }
 0x9f3   :  { %v5046_v24 = vrot.slane %v5038_v34, %v10121_v38  ;;  %v5053_v30 = vrot.slane %v5039_v55, %v10121_v38  ;;  %v5290_v17 = vcombine.low %v5030_v60, %v5037_v42  ;;  %v5072_v28 = vrot.slane %v5058_v56, %v10112_v20  ;;  %v5491_v34 = vpop.permute.xlu1 %5490 }
 0x9f4   :  { %v5088_v40 = vcombine.low %v5065_v27, %v5080_v48  ;;  %v8602_v11 = vcombine.high %v5030_v60, %v5037_v42  ;;  %v11148_v39 = vrot.slane %v5356_v53, %v10121_v38  ;;  %v11152_v7 = vcombine.low %v11137_v6, %v11131_v9 }
 0x9f5   :  { %v11155_v15 = vrot.slane %v4514_v49, %v10121_v38  ;;  %v5089_v46 = vcombine.high %v5065_v27, %v5080_v48  ;;  %v4158_v32 = vpack.i.b16 %v4157_v19, %v4156_v57  ;;  %v11158_v13 = vrot.slane %v4522_v26, %v10121_v38 }
 0x9f6   :  { %v5087_v1 = vrot.slane %v5073_v52, %v10112_v20  ;;  %v4300_v2 = vcombine.high %v4154_v23, %v10108_v18  ;;  %v4162_v3 = vpack.i.b16 %v4135_v59, %v4131_v16  ;;  %v11163_v45 = vrot.slane %v5290_v17, %v10112_v20 }
 0x9f7   :  { %v5374_v44 = vcombine.low %v5046_v24, %v5053_v30  ;;  %v4164_v53 = vshrl.u32 %v4131_v16, 16  ;;  %v4165_v10 = vshrl.u32 %v4135_v59, 16  ;;  %v11166_v36 = vrot.slane %v5088_v40, %v10121_v38 }
 0x9f8   :  { %v11169_v8 = vrot.slane %v8602_v11, %v10112_v20  ;;  %v8605_v61 = vcombine.high %v5046_v24, %v5053_v30  ;;  %v4315_v51 = vcombine.high %v4162_v3, %v10108_v18  ;;  %v11173_v62 = vrot.slane %v5089_v46, %v10121_v38  ;;  %v5479_v11 = vpop.permute.xlu0 %5478 }
 0x9f9   :  { %v4366_v21 = vcombine.high %v4158_v32, %v10108_v18  ;;  %v4166_v60 = vpack.i.b16 %v4165_v10, %v4164_v53  ;;  %v4322_v42 = vrot.slane %v4162_v3, %v10112_v20  ;;  %v5104_v16 = vcombine.low %v5072_v28, %v5087_v1 }
 0x9fa   :  { %v5105_v55 = vcombine.high %v5072_v28, %v5087_v1  ;;  %v4314_v56 = vrot.slane %v4300_v2, %v10112_v20  ;;  %v4329_v48 = vrot.slane %v4315_v51, %v10112_v20  ;;  %v11180_v27 = vrot.slane %v5374_v44, %v10112_v20 }
 0x9fb   :  { %v4307_v49 = vrot.slane %v4154_v23, %v10112_v20  ;;  %v4381_v57 = vcombine.high %v4166_v60, %v10108_v18  ;;  %v4388_v26 = vrot.slane %v4166_v60, %v10112_v20  ;;  %v4373_v52 = vrot.slane %v4158_v32, %v10112_v20 }
 0x9fc   :  { %v4346_v19 = vcombine.low %v4314_v56, %v4329_v48  ;;  %v4347_v24 = vcombine.high %v4314_v56, %v4329_v48  ;;  %v5506_v30 = vpack.i.b16 %v5491_v34, %v11141_v12  ;;  %v4380_v17 = vrot.slane %v4366_v21, %v10112_v20 }
 0x9fd   :  { %v4330_v59 = vcombine.low %v4307_v49, %v4322_v42  ;;  %v4331_v28 = vcombine.high %v4307_v49, %v4322_v42  ;;  %v4395_v40 = vrot.slane %v4381_v57, %v10112_v20  ;;  %v11190_v46 = vrot.slane %v8605_v61, %v10112_v20 }
 0x9fe   :  { %v4396_v23 = vcombine.low %v4373_v52, %v4388_v26  ;;  %v4397_v1 = vcombine.high %v4373_v52, %v4388_v26  ;;  %v5509_v2 = vshrl.u32 %v5491_v34, 16  ;;  %v4354_v3 = vrot.slane %v4346_v19, %v10121_v38 }
 0x9ff   :  { %v4361_v32 = vrot.slane %v4347_v24, %v10121_v38  ;;  %v4412_v44 = vcombine.low %v4380_v17, %v4395_v40  ;;  %v4413_v53 = vcombine.high %v4380_v17, %v4395_v40  ;;  %v5112_v10 = vrot.slane %v5104_v16, %v10121_v38 }
 0xa00   :  { %v5340_v51 = vcombine.low %v11166_v36, %v11173_v62  ;;  %v5508_v21 = vshrl.u32 %v11141_v12, 16  ;;  %v5501_v60 = vshrl.u32 %v5479_v11, 16  ;;  %v4338_v61 = vrot.slane %v4330_v59, %v10121_v38 }
 0xa01   :  { %v4345_v42 = vrot.slane %v4331_v28, %v10121_v38  ;;  %v5559_v34 = vcombine.high %v5506_v30, %v10108_v18  ;;  %v5498_v56 = vpack.i.b16 %v5479_v11, %v10863_v54  ;;  %v5119_v48 = vrot.slane %v5105_v55, %v10121_v38 }
 0xa02   :  { %v4404_v49 = vrot.slane %v4396_v23, %v10121_v38  ;;  %v4411_v16 = vrot.slane %v4397_v1, %v10121_v38  ;;  %v5510_v57 = vpack.i.b16 %v5509_v2, %v5508_v21  ;;  %v4420_v26 = vrot.slane %v4412_v44, %v10121_v38 }
 0xa03   :  { %v4427_v12 = vrot.slane %v4413_v53, %v10121_v38  ;;  %v4548_v52 = vcombine.low %v4354_v3, %v4361_v32  ;;  %v8592_v19 = vcombine.high %v4354_v3, %v4361_v32  ;;  %v11208_v24 = vrot.slane %v5340_v51, %v10112_v20 }
 0xa04   :  { %v8604_v17 = vcombine.high %v11166_v36, %v11173_v62  ;;  %v5566_v59 = vrot.slane %v5506_v30, %v10112_v20  ;;  %v5502_v55 = vpack.i.b16 %v5501_v60, %v5500_v43  ;;  %v4532_v28 = vcombine.low %v4338_v61, %v4345_v42 }
 0xa05   :  { %v8591_v40 = vcombine.high %v4338_v61, %v4345_v42  ;;  %v5573_v11 = vrot.slane %v5559_v34, %v10112_v20  ;;  %v5544_v23 = vcombine.high %v5498_v56, %v10108_v18  ;;  %v4582_v1 = vcombine.low %v4404_v49, %v4411_v16  ;;  %v5481_v34 = vpop.permute.xlu1 %5480 }
 0xa06   :  { %v8593_v2 = vcombine.high %v4404_v49, %v4411_v16  ;;  %v5625_v3 = vcombine.high %v5510_v57, %v10108_v18  ;;  %v5610_v32 = vcombine.high %v5502_v55, %v10108_v18  ;;  %v4555_v44 = vrot.slane %v4548_v52, %v10112_v20 }
 0xa07   :  { %v4563_v36 = vrot.slane %v8592_v19, %v10112_v20  ;;  %v4598_v62 = vcombine.low %v4420_v26, %v4427_v12  ;;  %v5551_v54 = vrot.slane %v5498_v56, %v10112_v20  ;;  %v8594_v43 = vcombine.high %v4420_v26, %v4427_v12 }
 0xa08   :  { %v5632_v30 = vrot.slane %v5510_v57, %v10112_v20  ;;  %v5558_v53 = vrot.slane %v5544_v23, %v10112_v20  ;;  %v5617_v51 = vrot.slane %v5502_v55, %v10112_v20  ;;  %v5399_v21 = vcombine.low %v5112_v10, %v5119_v48 }
 0xa09   :  { %v8606_v60 = vcombine.high %v5112_v10, %v5119_v48  ;;  %v11226_v61 = vrot.slane %v4532_v28, %v10112_v20  ;;  %v11229_v42 = vrot.slane %v8591_v40, %v10112_v20  ;;  %v11232_v49 = vrot.slane %v4582_v1, %v10112_v20 }
 0xa0a   :  { %v11235_v56 = vrot.slane %v8593_v2, %v10112_v20  ;;  %v5639_v16 = vrot.slane %v5625_v3, %v10112_v20  ;;  %v5624_v57 = vrot.slane %v5610_v32, %v10112_v20  ;;  %v4572_v26 = vcombine.low %v4555_v44, %v4563_v36 }
 0xa0b   :  { %v11240_v10 = vrot.slane %v4598_v62, %v10112_v20  ;;  %v5574_v48 = vcombine.low %v5551_v54, %v5566_v59  ;;  %v5575_v12 = vcombine.high %v5551_v54, %v5566_v59  ;;  %v11243_v52 = vrot.slane %v8594_v43, %v10112_v20  ;;  %v5487_v54 = vpop.permute.xlu0 %5486  ;;  %v5493_v43 = vpop.permute.xlu1 %5492 }
 0xa0c   :  { %v5590_v19 = vcombine.low %v5558_v53, %v5573_v11  ;;  %v5640_v55 = vcombine.low %v5617_v51, %v5632_v30  ;;  %v5514_v28 = vpack.i.b16 %v5481_v34, %v10881_v63  ;;  %v11247_v40 = vrot.slane %v8604_v17, %v10112_v20 }
 0xa0d   :  { %v5591_v23 = vcombine.high %v5558_v53, %v5573_v11  ;;  %v5641_v1 = vcombine.high %v5617_v51, %v5632_v30  ;;  %v5517_v2 = vshrl.u32 %v5481_v34, 16  ;;  %v11250_v3 = vrot.slane %v5399_v21, %v10112_v20 }
 0xa0e   :  { %v11253_v32 = vrot.slane %v8606_v60, %v10112_v20  ;;  %v5656_v44 = vcombine.low %v5624_v57, %v5639_v16  ;;  %v11258_v36 = vrot.slane %v4572_v26, %v10121_v38  ;;  %v11263_v11 = vrot.slane %v5574_v48, %v10121_v38 }
 0xa0f   :  { %v11266_v62 = vrot.slane %v5575_v12, %v10121_v38  ;;  %v11271_v53 = vrot.slane %v5590_v19, %v10121_v38  ;;  %v11274_v51 = vrot.slane %v5640_v55, %v10121_v38  ;;  %v5676_v21 = vcombine.high %v5514_v28, %v10108_v18 }
 0xa10   :  { %v11278_v60 = vrot.slane %v5591_v23, %v10121_v38  ;;  %v11281_v34 = vrot.slane %v5641_v1, %v10121_v38  ;;  %v5657_v26 = vcombine.high %v5624_v57, %v5639_v16  ;;  %v5518_v48 = vpack.i.b16 %v5517_v2, %v5516_v31 }
 0xa11   :  { %v11286_v12 = vrot.slane %v5656_v44, %v10121_v38  ;;  %v5524_v19 = vshrl.u32 %v5487_v54, 16  ;;  %v5522_v0 = vpack.i.b16 %v5493_v43, %v5487_v54  ;;  %v5525_v59 = vshrl.u32 %v5493_v43, 16 }
 0xa12   :  { %v5940_v55 = vcombine.low %v11263_v11, %v11266_v62  ;;  %v8607_v23 = vcombine.high %v11263_v11, %v11266_v62  ;;  %v5683_v30 = vrot.slane %v5514_v28, %v10112_v20  ;;  %v4530_v16 = vcombine.low %v11155_v15, %v11158_v13 }
 0xa13   :  { %v5690_v63 = vrot.slane %v5676_v21, %v10112_v20  ;;  %v5526_v31 = vpack.i.b16 %v5525_v59, %v5524_v19  ;;  %v5691_v57 = vcombine.high %v5522_v0, %v10108_v18  ;;  %v5698_v1 = vrot.slane %v5522_v0, %v10112_v20 }
 0xa14   :  { %v5742_v2 = vcombine.high %v5518_v48, %v10108_v18  ;;  %v4634_v44 = vpack.i.b16 %v4530_v16, %v11152_v7  ;;  %v4635_v54 = vshrl.u32 %v11152_v7, 16  ;;  %v4636_v43 = vshrl.u32 %v4530_v16, 16 }
 0xa15   :  { %v5705_v11 = vrot.slane %v5691_v57, %v10112_v20  ;;  %v5706_v28 = vcombine.low %v5683_v30, %v5698_v1  ;;  %v5707_v62 = vcombine.high %v5683_v30, %v5698_v1  ;;  %v5757_v17 = vcombine.high %v5526_v31, %v10108_v18 }
 0xa16   :  { %v11304_v21 = vrot.slane %v5657_v26, %v10121_v38  ;;  %v5956_v59 = vcombine.low %v11271_v53, %v11278_v60  ;;  %v5764_v0 = vrot.slane %v5526_v31, %v10112_v20  ;;  %8998 = vmatmul.mubr.msk.bf16.vlgmr.msra.gmra.mrb[52].mxu1 %vm2144_vm1, %v4634_v44  ;;  %v4637_v19 = vpack.i.b16 %v4636_v43, %v4635_v54 }
 0xa17   :  { %v8608_v7 = vcombine.high %v11271_v53, %v11278_v60  ;;  %v5749_v16 = vrot.slane %v5518_v48, %v10112_v20  ;;  %v5722_v57 = vcombine.low %v5690_v63, %v5705_v11  ;;  %v5723_v30 = vcombine.high %v5690_v63, %v5705_v11  ;;  %9018 = vmatpush3.bf16.xpose.msra.mxu1 %v11111_v29 }
 0xa18   :  { %v5756_v26 = vrot.slane %v5742_v2, %v10112_v20  ;;  %v5771_v1 = vrot.slane %v5757_v17, %v10112_v20  ;;  %9006 = vmatmul.mubr.msk.bf16.vlgmr.msra.gmra.mrb[44].mxu0 %vm2144_vm1, %v4637_v19  ;;  %9019 = vmatprep.subr.bf16.mxu1 %v9740_v58  ;;  %v6453_v31 = vsel %vm2144_vm1, %v11021_v50, 0  ;;  %v5314_v53 = vcombine.low %v11163_v45, %v11169_v8 }
 0xa19   :  { %v5714_v60 = vrot.slane %v5706_v28, %v10121_v38  ;;  %v5721_v48 = vrot.slane %v5707_v62, %v10121_v38  ;;  %v11325_v29 = vrot.slane %v5722_v57, %v10121_v38  ;;  %v11328_v63 = vrot.slane %v5723_v30, %v10121_v38  ;;  %9010 = vmatpush3.bf16.xpose.msra.mxu0 %v11102_v5 }
 0xa1a   :  { %v5772_v17 = vcombine.low %v5749_v16, %v5764_v0  ;;  %v5773_v2 = vcombine.high %v5749_v16, %v5764_v0  ;;  %v5788_v44 = vcombine.low %v5756_v26, %v5771_v1  ;;  %v5789_v54 = vcombine.high %v5756_v26, %v5771_v1  ;;  %9011 = vmatprep.subr.bf16.mxu0 %v9740_v58 }
 0xa1b   :  { %v11333_v50 = vrot.slane %v5940_v55, %v10112_v20  ;;  %v5990_v45 = vcombine.low %v11274_v51, %v11281_v34  ;;  %v6090_v8 = vcombine.low %v11325_v29, %v11328_v63  ;;  %v8613_v43 = vcombine.high %v11325_v29, %v11328_v63  ;;  %9021 = vmatprep.mubr.msk.bf16.mxu1 %vm9741_vm0, %v9740_v58 }
 0xa1c   :  { %v11344_v5 = vrot.slane %v5788_v44, %v10121_v38  ;;  %v11347_v11 = vrot.slane %v5789_v54, %v10121_v38  ;;  %v4531_v55 = vcombine.high %v11155_v15, %v11158_v13  ;;  %9013 = vmatprep.mubr.msk.bf16.mxu0 %vm9741_vm0, %v9740_v58  ;;  %v5321_v28 = vrot.slane %v5314_v53, %v10121_v38 }
 0xa1d   :  { %v11355_v62 = vrot.slane %v8607_v23, %v10112_v20  ;;  %v6040_v0 = vcombine.low %v5714_v60, %v5721_v48  ;;  %v8611_v19 = vcombine.high %v5714_v60, %v5721_v48  ;;  %v4481_v16 = vcombine.high %v11137_v6, %v11131_v9 }
 0xa1e   :  { %v5780_v57 = vrot.slane %v5772_v17, %v10121_v38  ;;  %v5787_v30 = vrot.slane %v5773_v2, %v10121_v38  ;;  %v6140_v15 = vcombine.low %v11344_v5, %v11347_v11  ;;  %v8615_v13 = vcombine.high %v11344_v5, %v11347_v11 }
 0xa1f   :  { %v11366_v26 = vrot.slane %v5956_v59, %v10112_v20  ;;  %v11369_v23 = vrot.slane %v8608_v7, %v10112_v20  ;;  %v8609_v1 = vcombine.high %v11274_v51, %v11281_v34  ;;  %9020 = vmatpush3.bf16.xpose.msra.mxu1 %v6453_v31  ;;  %v5364_v9 = vcombine.low %v11208_v24, %v11247_v40 }
 0xa20   :  { %v4642_v6 = vshrl.u32 %v4531_v55, 16  ;;  %9033 = vmatprep.subr.bf16.mxu1 %v9740_v58  ;;  %v5322_v53 = vcombine.low %v11127_v22, %v5321_v28  ;;  %v5415_v60 = vcombine.low %v11250_v3, %v11253_v32  ;;  %v11380_v59 = vcombine.high %v11127_v22, %v5321_v28 }
 0xa21   :  { %v5997_v7 = vrot.slane %v5990_v45, %v10112_v20  ;;  %v6006_v51 = vcombine.low %v11286_v12, %v11304_v21  ;;  %v8610_v34 = vcombine.high %v11286_v12, %v11304_v21  ;;  %9012 = vmatpush3.bf16.xpose.msra.mxu0 %v11121_v41  ;;  %v5371_v24 = vrot.slane %v5364_v9, %v10121_v38 }
 0xa22   :  { %v6047_v40 = vrot.slane %v6040_v0, %v10112_v20  ;;  %v6055_v31 = vrot.slane %v8611_v19, %v10112_v20  ;;  %v6065_v3 = vcombine.low %v5780_v57, %v5787_v30  ;;  %v4641_v32 = vshrl.u32 %v4481_v16, 16  ;;  %9025 = vmatprep.subr.bf16.mxu0 %v9740_v58 }
 0xa23   :  { %v8612_v22 = vcombine.high %v5780_v57, %v5787_v30  ;;  %v5372_v48 = vcombine.low %v11148_v39, %v5371_v24  ;;  %v5390_v17 = vcombine.low %v11180_v27, %v11190_v46  ;;  %v11396_v12 = vcombine.high %v11148_v39, %v5371_v24 }
 0xa24   :  { %v4643_v41 = vpack.i.b16 %v4642_v6, %v4641_v32  ;;  %v5451_v21 = vshrl.u32 %v5322_v53, 16  ;;  %v11399_v2 = vrot.slane %v5415_v60, %v10121_v38  ;;  %v5457_v44 = vshrl.u32 %v11380_v59, 16 }
 0xa25   :  { %v5452_v54 = vshrl.u32 %v5372_v48, 16  ;;  %v5450_v45 = vpack.i.b16 %v5372_v48, %v5322_v53  ;;  %v5458_v28 = vshrl.u32 %v11396_v12, 16  ;;  %v5456_v0 = vpack.i.b16 %v11396_v12, %v11380_v59 }
 0xa26   :  { %v5972_v27 = vcombine.low %v11333_v50, %v11355_v62  ;;  %v6005_v39 = vrot.slane %v8609_v1, %v10112_v20  ;;  %v6013_v46 = vrot.slane %v6006_v51, %v10112_v20  ;;  %9022 = vmatmul.mubr.msk.bf16.vlgmr.msra.gmra.mrb[56].mxu1 %vm2144_vm1, %v4643_v41  ;;  %v4640_v19 = vpack.i.b16 %v4531_v55, %v4481_v16 }
 0xa27   :  { %v6021_v57 = vrot.slane %v8610_v34, %v10112_v20  ;;  %v5453_v30 = vpack.i.b16 %v5452_v54, %v5451_v21  ;;  %v5397_v9 = vrot.slane %v5390_v17, %v10121_v38  ;;  %9037 = vmatprep.mubr.msk.bf16.mxu1 %vm9741_vm0, %v9740_v58  ;;  %v11414_v6 = vpack.i.b16 %v5458_v28, %v5457_v44 }
 0xa28   :  { %v6056_v53 = vcombine.low %v6047_v40, %v6055_v31  ;;  %v6072_v50 = vrot.slane %v6065_v3, %v10112_v20  ;;  %v6080_v62 = vrot.slane %v8612_v22, %v10112_v20  ;;  %9014 = vmatmul.mubr.msk.bf16.vlgmr.msra.gmra.mrb[48].mxu0 %vm2144_vm1, %v4640_v19  ;;  %v6500_v1 = vsel %vm2144_vm1, %v5450_v45, 0 }
 0xa29   :  { %v11424_v55 = vrot.slane %v6090_v8, %v10112_v20  ;;  %v11430_v16 = vrot.slane %v8613_v43, %v10112_v20  ;;  %v6550_v60 = vsel %vm2144_vm1, %v5453_v30, 0  ;;  %9026 = vmatpush3.bf16.xpose.msra.mxu0 %v6500_v1  ;;  %v5464_v51 = vshrl.u32 %v11399_v2, 16  ;;  %9029 = vmatprep.mubr.msk.bf16.mxu0 %vm9741_vm0, %v9740_v58 }
 0xa2a   :  { %v12047_v34 = vcombine.low %v11232_v49, %v11235_v56  ;;  %9034 = vmatpush3.bf16.xpose.msra.mxu1 %v6550_v60  ;;  %9027 = vmatprep.subr.bf16.mxu0 %v9740_v58  ;;  %v12048_v29 = vcombine.low %v11240_v10, %v11243_v52  ;;  %v5980_v43 = vcombine.low %v11366_v26, %v11369_v23  ;;  %v5463_v24 = vshrl.u32 %v5397_v9, 16 }
 0xa2b   :  { %9035 = vmatprep.subr.bf16.mxu1 %v9740_v58  ;;  %v5462_v40 = vpack.i.b16 %v11399_v2, %v5397_v9  ;;  %v6022_v31 = vcombine.low %v5997_v7, %v6005_v39  ;;  %v6030_v49 = vcombine.low %v6013_v46, %v6021_v57  ;;  %v5979_v56 = vrot.slane %v5972_v27, %v10121_v38 }
 0xa2c   :  { %v11440_v8 = vrot.slane %v12047_v34, %v10121_v38  ;;  %v4629_v63 = vrot.slane %v12048_v29, %v10121_v38  ;;  %v5987_v3 = vrot.slane %v5980_v43, %v10121_v38  ;;  %v11454_v32 = vrot.slane %v6056_v53, %v10121_v38 }
 0xa2d   :  { %v6081_v22 = vcombine.low %v6072_v50, %v6080_v62  ;;  %v5465_v10 = vpack.i.b16 %v5464_v51, %v5463_v24  ;;  %v6029_v52 = vrot.slane %v6022_v31, %v10121_v38  ;;  %v6037_v26 = vrot.slane %v6030_v49, %v10121_v38 }
 0xa2e   :  { %v6122_v23 = vcombine.low %v11424_v55, %v11430_v16  ;;  %v11463_v7 = vcombine.high %v5979_v56, %v5987_v3  ;;  %v12049_v17 = vcombine.low %v11226_v61, %v11229_v42  ;;  %v4630_v21 = vcombine.low %v11440_v8, %v4629_v63 }
 0xa2f   :  { %v11461_v48 = vrot.slane %v6081_v22, %v10121_v38  ;;  %v11470_v44 = vcombine.high %v6029_v52, %v6037_v26  ;;  %v12050_v54 = vmov 0   ;;  %v6503_v28 = vsel %vm2144_vm1, %v5462_v40, 0 }
 0xa30   :  { %v4571_v41 = vrot.slane %v12049_v17, %v10121_v38  ;;  %v11474_v45 = vcombine.high %v11454_v32, %v12050_v54  ;;  %v6553_v39 = vsel %vm2144_vm1, %v5465_v10, 0  ;;  %v6252_v19 = vshrl.u32 %v11463_v7, 16 }
 0xa31   :  { %v11479_v27 = vcombine.high %v11461_v48, %v12050_v54  ;;  %9028 = vmatpush3.bf16.xpose.msra.mxu0 %v6503_v28  ;;  %v6250_v42 = vpack.i.b16 %v11470_v44, %v11463_v7  ;;  %v6253_v57 = vshrl.u32 %v11470_v44, 16  ;;  %v4648_v30 = vshrl.u32 %v4630_v21, 16 }
 0xa32   :  { %v4580_v61 = vcombine.low %v4571_v41, %v11258_v36  ;;  %9036 = vmatpush3.bf16.xpose.msra.mxu1 %v6553_v39  ;;  %9041 = vmatprep.subr.bf16.mxu0 %v9740_v58  ;;  %v6265_v53 = vshrl.u32 %v11474_v45, 16  ;;  %v11497_v62 = vrot.slane %v6140_v15, %v10112_v20  ;;  %v11505_v60 = vrot.slane %v8615_v13, %v10112_v20 }
 0xa33   :  { %v6264_v46 = vpack.i.b16 %v11479_v27, %v11474_v45  ;;  %9049 = vmatprep.subr.bf16.mxu1 %v9740_v58  ;;  %v6266_v50 = vshrl.u32 %v11479_v27, 16  ;;  %v11499_v1 = vpack.i.b16 %v6253_v57, %v6252_v19  ;;  %v5423_v34 = vcombine.high %v11399_v2, %v12050_v54  ;;  %v6697_v19 = vld [vmem:[#allocation8 + $0x8] sm:$0xff] }
 0xa34   :  { %v4647_v51 = vshrl.u32 %v4580_v61, 16  ;;  %v4646_v43 = vpack.i.b16 %v4630_v21, %v4580_v61  ;;  %v6172_v24 = vcombine.low %v11497_v62, %v11505_v60  ;;  %v5398_v40 = vcombine.high %v5397_v9, %v12050_v54 }
 0xa35   :  { %v11509_v29 = vpack.i.b16 %v6266_v50, %v6265_v53  ;;  %v6600_v5 = vsel %vm2144_vm1, %v5456_v0, 0  ;;  %v6650_v11 = vsel %vm2144_vm1, %v11414_v6, 0  ;;  %v5470_v13 = vshrl.u32 %v5423_v34, 16 }
 0xa36   :  { %v4649_v15 = vpack.i.b16 %v4648_v30, %v4647_v51  ;;  %v5469_v2 = vshrl.u32 %v5398_v40, 16  ;;  %v5468_v9 = vpack.i.b16 %v5423_v34, %v5398_v40  ;;  %v4631_v12 = vcombine.high %v11440_v8, %v4629_v63 }
 0xa37   :  { %v6038_v6 = vcombine.low %v6029_v52, %v6037_v26  ;;  %v4581_v49 = vcombine.high %v4571_v41, %v11258_v36  ;;  %v5988_v22 = vcombine.low %v5979_v56, %v5987_v3  ;;  %v6260_v28 = vshrl.u32 %v11461_v48, 16 }
 0xa38   :  { %9030 = vmatmul.mubr.msk.bf16.vlgmr.msra.gmra.mrb[52].mxu0 %vm2144_vm1, %v4646_v43  ;;  %v5471_v59 = vpack.i.b16 %v5470_v13, %v5469_v2  ;;  %v6603_v0 = vsel %vm2144_vm1, %v5468_v9, 0  ;;  %v4654_v10 = vshrl.u32 %v4631_v12, 16  ;;  %v6259_v26 = vshrl.u32 %v11454_v32, 16 }
 0xa39   :  { %9038 = vmatmul.mubr.msk.bf16.vlgmr.msra.gmra.mrb[60].mxu1 %vm2144_vm1, %v4649_v15  ;;  %9042 = vmatpush3.bf16.xpose.msra.mxu0 %v6600_v5  ;;  %v6245_v17 = vshrl.u32 %v6038_v6, 16  ;;  %v4653_v21 = vshrl.u32 %v4581_v49, 16  ;;  %v6244_v8 = vshrl.u32 %v5988_v22, 16  ;;  %v4652_v63 = vpack.i.b16 %v4631_v12, %v4581_v49 }
 0xa3a   :  { %9050 = vmatpush3.bf16.xpose.msra.mxu1 %v6650_v11  ;;  %9043 = vmatprep.subr.bf16.mxu0 %v9740_v58  ;;  %v6653_v31 = vsel %vm2144_vm1, %v5471_v59, 0  ;;  %v6242_v52 = vpack.i.b16 %v6038_v6, %v5988_v22  ;;  %v6258_v36 = vpack.i.b16 %v11461_v48, %v11454_v32  ;;  %v6261_v56 = vpack.i.b16 %v6260_v28, %v6259_v26  ;;  %v6696_v48 = vld [vmem:[#allocation8] sm:$0xff] }
 0xa3b   :  { %9051 = vmatprep.subr.bf16.mxu1 %v9740_v58  ;;  %9053 = vmatprep.mubr.msk.bf16.mxu1 %vm9741_vm0, %v9740_v58  ;;  %v4655_v39 = vpack.i.b16 %v4654_v10, %v4653_v21  ;;  %v6246_v61 = vpack.i.b16 %v6245_v17, %v6244_v8  ;;  %v7000_v7 = vsel %vm6904_vm5, %v6264_v46, 0  ;;  %v5532_v44 = vshrl.u32 %v10992_v4, 16 }
 0xa3c   :  { %9045 = vmatprep.mubr.msk.bf16.mxu0 %vm9741_vm0, %v9740_v58  ;;  %v6906_v3 = vsel %vm6904_vm5, %v6258_v36, 0  ;;  %v6953_v32 = vsel %vm6904_vm5, %v6261_v56, 0  ;;  %v6698_v36 = vld [vmem:[#allocation8 + $0x10] sm:$0xff] }
 0xa41   :  { %9044 = vmatpush3.bf16.xpose.msra.mxu0 %v6603_v0 }
 0xa42   :  { %9052 = vmatpush3.bf16.xpose.msra.mxu1 %v6653_v31  ;;  %9057 = vmatprep.subr.bf16.mxu0 %v9740_v58 }
 0xa43   :  { %9065 = vmatprep.subr.bf16.mxu1 %v9740_v58 }
 0xa48   :  { %9046 = vmatmul.mubr.msk.bf16.vlgmr.msra.gmra.mrb[56].mxu0 %vm2144_vm1, %v4652_v63 }
 0xa49   :  { %9054 = vmatmul.mubr.msk.bf16.vlgmr.msra.gmra.mrb[64].mxu1 %vm2144_vm1, %v4655_v39  ;;  %9058 = vmatpush3.bf16.msra.mxu0 %v6242_v52 }
 0xa4a   :  { %9066 = vmatpush3.bf16.msra.mxu1 %v6246_v61  ;;  %9059 = vmatprep.subr.bf16.mxu0 %v9740_v58 }
 0xa4b   :  { %9067 = vmatprep.subr.bf16.mxu1 %v9740_v58  ;;  %9061 = vmatprep.mubr.msk.bf16.mxu0 %vm9741_vm0, %v9740_v58 }
 0xa4c   :  { %9069 = vmatprep.mubr.msk.bf16.mxu1 %vm9741_vm0, %v9740_v58 }
 0xa4d   :  { %9060 = vmatpush3.bf16.msra.mxu0 %v6906_v3 }
 0xa4e   :  { %9068 = vmatpush3.bf16.msra.mxu1 %v6953_v32  ;;  %9073 = vmatprep.subr.bf16.mxu0 %v9740_v58  ;;  %v6699_v32 = vld [vmem:[#allocation8 + $0x18] sm:$0xff] }
 0xa4f   :  { %9081 = vmatprep.subr.bf16.mxu1 %v9740_v58 }
 0xae9   :  { %v6339_v41 = vpop.f32.mrb[52].mxu1 }
 0xaea   :  { %v11550_v57 = vadd.f32 %v6696_v48, %v6339_v41  ;;  %v8999_v30 = vpop.f32.mrb[53].mxu1 }
 0xaeb   :  { %v6342_v53 = vpop.f32.mrb[54].mxu1  ;;  %v6389_v50 = vpop.f32.mrb[44].mxu0 }
 0xaec   :  { %v11552_v51 = vadd.f32 %v6697_v19, %v6342_v53  ;;  %v9000_v34 = vpop.f32.mrb[55].mxu1  ;;  %v9007_v43 = vpop.f32.mrb[45].mxu0  ;;  %v6717_v15 = vsel %vm6716_vm6, %v11550_v57, -inf  ;;  %v11556_v5 = vadd.f32 %v6696_v48, %v6389_v50 }
 0xaed   :  { %v6392_v40 = vpop.f32.mrb[46].mxu0  ;;  %6718 = vmax.xlane.f32.xlu1 %v6717_v15 }
 0xaee   :  { %v11558_v11 = vadd.f32 %v6697_v19, %v6392_v40  ;;  %v9008_v13 = vpop.f32.mrb[47].mxu0  ;;  %v6720_v2 = vsel %vm6716_vm6, %v11552_v51, -inf  ;;  %v6723_v59 = vsel %vm6716_vm6, %v11556_v5, -inf }
 0xaef   :  { %6721 = vmax.xlane.f32.xlu0 %v6720_v2 }
 0xaf0   :  { %v6726_v9 = vsel %vm6716_vm6, %v11558_v11, -inf }
 0xaf1   :  { %6727 = vmax.xlane.f32.xlu1 %v6726_v9 }
 0xaf3   :  { %6724 = vmax.xlane.f32.xlu0 %v6723_v59 }
 0xaf9   :  { %v6489_v12 = vpop.f32.mrb[56].mxu1 }
 0xafa   :  { %v11566_v0 = vadd.f32 %v6696_v48, %v6489_v12  ;;  %v9023_v6 = vpop.f32.mrb[57].mxu1 }
 0xafb   :  { %v6439_v31 = vpop.f32.mrb[48].mxu0  ;;  %v6492_v49 = vpop.f32.mrb[58].mxu1 }
 0xafc   :  { %v11568_v22 = vadd.f32 %v6696_v48, %v6439_v31  ;;  %v11570_v10 = vadd.f32 %v6697_v19, %v6492_v49  ;;  %v9015_v17 = vpop.f32.mrb[49].mxu0  ;;  %v9024_v21 = vpop.f32.mrb[59].mxu1  ;;  %v6735_v28 = vsel %vm6716_vm6, %v11566_v0, -inf }
 0xafd   :  { %v6442_v8 = vpop.f32.mrb[50].mxu0  ;;  %6736 = vmax.xlane.f32.xlu0 %v6735_v28 }
 0xafe   :  { %v11574_v63 = vadd.f32 %v6697_v19, %v6442_v8  ;;  %v9016_v39 = vpop.f32.mrb[51].mxu0  ;;  %v6738_v52 = vsel %vm6716_vm6, %v11570_v10, -inf  ;;  %v6729_v26 = vsel %vm6716_vm6, %v11568_v22, -inf }
 0xaff   :  { %6739 = vmax.xlane.f32.xlu1 %v6738_v52 }
 0xb00   :  { %v6732_v61 = vsel %vm6716_vm6, %v11574_v63, -inf }
 0xb01   :  { %6730 = vmax.xlane.f32.xlu0 %v6729_v26 }
 0xb03   :  { %6733 = vmax.xlane.f32.xlu1 %v6732_v61 }
 0xb0b   :  { %v6539_v56 = vpop.f32.mrb[52].mxu0 }
 0xb0c   :  { %v6589_v3 = vpop.f32.mrb[60].mxu1  ;;  %v9031_v48 = vpop.f32.mrb[53].mxu0  ;;  %v11584_v34 = vadd.f32 %v6698_v36, %v6539_v56 }
 0xb0d   :  { %v11582_v41 = vadd.f32 %v6698_v36, %v6589_v3  ;;  %v9039_v19 = vpop.f32.mrb[61].mxu1  ;;  %v6542_v30 = vpop.f32.mrb[54].mxu0 }
 0xb0e   :  { %v6592_v53 = vpop.f32.mrb[62].mxu1  ;;  %v9032_v50 = vpop.f32.mrb[55].mxu0  ;;  %v11590_v13 = vadd.f32 %v6699_v32, %v6542_v30  ;;  %v6741_v9 = vsel %vm6716_vm6, %v11584_v34, -inf }
 0xb0f   :  { %v11586_v43 = vadd.f32 %v6699_v32, %v6592_v53  ;;  %v9040_v15 = vpop.f32.mrb[63].mxu1  ;;  %v6747_v40 = vsel %vm6716_vm6, %v11582_v41, -inf }
 0xb10   :  { %6748 = vmax.xlane.f32.xlu0 %v6747_v40  ;;  %v6744_v59 = vsel %vm6716_vm6, %v11590_v13, -inf }
 0xb11   :  { %v6750_v2 = vsel %vm6716_vm6, %v11586_v43, -inf }
 0xb12   :  { %6751 = vmax.xlane.f32.xlu1 %v6750_v2 }
 0xb14   :  { %6742 = vmax.xlane.f32.xlu0 %v6741_v9 }
 0xb16   :  { %6745 = vmax.xlane.f32.xlu1 %v6744_v59 }
 0xb1b   :  { %v6639_v12 = vpop.f32.mrb[56].mxu0 }
 0xb1c   :  { %v6689_v6 = vpop.f32.mrb[64].mxu1  ;;  %v9047_v31 = vpop.f32.mrb[57].mxu0  ;;  %v11600_v39 = vadd.f32 %v6698_v36, %v6639_v12 }
 0xb1d   :  { %v11598_v49 = vadd.f32 %v6698_v36, %v6689_v6  ;;  %v9055_v17 = vpop.f32.mrb[65].mxu1  ;;  %v6642_v21 = vpop.f32.mrb[58].mxu0 }
 0xb1e   :  { %v6692_v28 = vpop.f32.mrb[66].mxu1  ;;  %v9048_v8 = vpop.f32.mrb[59].mxu0  ;;  %v11606_v56 = vadd.f32 %v6699_v32, %v6642_v21  ;;  %v6753_v48 = vsel %vm6716_vm6, %v11600_v39, -inf }
 0xb1f   :  { %v11602_v52 = vadd.f32 %v6699_v32, %v6692_v28  ;;  %v9056_v26 = vpop.f32.mrb[67].mxu1  ;;  %v6759_v61 = vsel %vm6716_vm6, %v11598_v49, -inf }
 0xb20   :  { %6760 = vmax.xlane.f32.xlu0 %v6759_v61  ;;  %v6756_v36 = vsel %vm6716_vm6, %v11606_v56, -inf }
 0xb21   :  { %v6762_v3 = vsel %vm6716_vm6, %v11602_v52, -inf }
 0xb22   :  { %6763 = vmax.xlane.f32.xlu1 %v6762_v3 }
 0xb24   :  { %6754 = vmax.xlane.f32.xlu0 %v6753_v48 }
 0xb26   :  { %6757 = vmax.xlane.f32.xlu1 %v6756_v36 }
 0xb37   :  { %5488 = vrot.lane.b32.xlu1 %v10992_v4, %s12043_s2 }
 0xb3a   :  { %5482 = vrot.lane.b32.xlu0 %v10992_v4, %s9739_s1 }
 0xb7a   :  { %v6719_v32 = vpop.xlane.xlu1 %6718 }
 0xb7b   :  { %v6765_v19 = vsub.f32 %v11550_v57, %v6719_v32 }
 0xb7c   :  { %v6722_v30 = vpop.xlane.xlu0 %6721 }
 0xb7d   :  { %v6781_v53 = vmul.f32 1.442695, %v6765_v19  ;;  %v6766_v50 = vsub.f32 %v11552_v51, %v6722_v30 }
 0xb7e   :  { %v6728_v15 = vpop.xlane.xlu1 %6727 }
 0xb7f   :  { %9358 = vpow2.f32 %v6781_v53  ;;  %v6783_v40 = vmul.f32 1.442695, %v6766_v50  ;;  %v6768_v2 = vsub.f32 %v11558_v11, %v6728_v15 }
 0xb80   :  { %v6725_v9 = vpop.xlane.xlu0 %6724 }
 0xb81   :  { %9360 = vpow2.f32 %v6783_v40  ;;  %v6767_v59 = vsub.f32 %v11556_v5, %v6725_v9  ;;  %v6787_v12 = vmul.f32 1.442695, %v6768_v2 }
 0xb83   :  { %v6785_v6 = vmul.f32 1.442695, %v6767_v59 }
 0xb85   :  { %9362 = vpow2.f32 %v6785_v6 }
 0xb86   :  { %9364 = vpow2.f32 %v6787_v12 }
 0xb89   :  { %v11622_v31 = vpop.eup %9358 }
 0xb8a   :  { %v6737_v57 = vpop.xlane.xlu0 %6736  ;;  %v6813_v17 = vsel %vm6716_vm6, %v11622_v31, 0.0 }
 0xb8b   :  { %v11626_v51 = vpop.eup %9360  ;;  %v6771_v21 = vsub.f32 %v11566_v0, %v6737_v57  ;;  %6814 = vadd.xlane.f32.xlu0 %v6813_v17 }
 0xb8c   :  { %v6740_v11 = vpop.xlane.xlu1 %6739  ;;  %v6816_v28 = vsel %vm6716_vm6, %v11626_v51, 0.0 }
 0xb8d   :  { %v6793_v5 = vmul.f32 1.442695, %v6771_v21  ;;  %v6772_v8 = vsub.f32 %v11570_v10, %v6740_v11  ;;  %6817 = vadd.xlane.f32.xlu1 %v6816_v28 }
 0xb8e   :  { %v6731_v26 = vpop.xlane.xlu0 %6730 }
 0xb8f   :  { %v11632_v61 = vpop.eup %9362  ;;  %9366 = vpow2.f32 %v6793_v5  ;;  %v6769_v3 = vsub.f32 %v11568_v22, %v6731_v26  ;;  %v6795_v48 = vmul.f32 1.442695, %v6772_v8 }
 0xb90   :  { %v6734_v36 = vpop.xlane.xlu1 %6733  ;;  %v6819_v0 = vsel %vm6716_vm6, %v11632_v61, 0.0  ;;  %v11637_v32 = vpop.eup %9364 }
 0xb91   :  { %v6789_v19 = vmul.f32 1.442695, %v6769_v3  ;;  %v6770_v30 = vsub.f32 %v11574_v63, %v6734_v36  ;;  %6820 = vadd.xlane.f32.xlu0 %v6819_v0  ;;  %v6822_v53 = vsel %vm6716_vm6, %v11637_v32, 0.0 }
 0xb93   :  { %9368 = vpow2.f32 %v6789_v19  ;;  %v6791_v10 = vmul.f32 1.442695, %v6770_v30 }
 0xb94   :  { %9370 = vpow2.f32 %v6795_v48 }
 0xb95   :  { %9372 = vpow2.f32 %v6791_v10  ;;  %6823 = vadd.xlane.f32.xlu0 %v6822_v53 }
 0xb99   :  { %v11642_v22 = vpop.eup %9366 }
 0xb9a   :  { %v6831_v50 = vsel %vm6716_vm6, %v11642_v22, 0.0 }
 0xb9b   :  { %6832 = vadd.xlane.f32.xlu0 %v6831_v50 }
 0xb9d   :  { %v11646_v15 = vpop.eup %9368  ;;  %v6749_v40 = vpop.xlane.xlu0 %6748 }
 0xb9e   :  { %v11648_v2 = vpop.eup %9370  ;;  %v6775_v63 = vsub.f32 %v11582_v41, %v6749_v40  ;;  %v6825_v9 = vsel %vm6716_vm6, %v11646_v15, 0.0 }
 0xb9f   :  { %v11653_v59 = vpop.eup %9372  ;;  %v6752_v12 = vpop.xlane.xlu1 %6751  ;;  %6826 = vadd.xlane.f32.xlu1 %v6825_v9  ;;  %v6834_v41 = vsel %vm6716_vm6, %v11648_v2, 0.0 }
 0xba0   :  { %v6801_v6 = vmul.f32 1.442695, %v6775_v63  ;;  %v6776_v57 = vsub.f32 %v11586_v43, %v6752_v12  ;;  %v6828_v17 = vsel %vm6716_vm6, %v11653_v59, 0.0 }
 0xba1   :  { %v6743_v21 = vpop.xlane.xlu0 %6742  ;;  %6829 = vadd.xlane.f32.xlu0 %v6828_v17 }
 0xba2   :  { %9374 = vpow2.f32 %v6801_v6  ;;  %v6773_v11 = vsub.f32 %v11584_v34, %v6743_v21  ;;  %v6803_v28 = vmul.f32 1.442695, %v6776_v57 }
 0xba3   :  { %6835 = vadd.xlane.f32.xlu1 %v6834_v41  ;;  %v6746_v8 = vpop.xlane.xlu1 %6745 }
 0xba4   :  { %v6797_v5 = vmul.f32 1.442695, %v6773_v11 }
 0xba6   :  { %9376 = vpow2.f32 %v6797_v5 }
 0xba7   :  { %9378 = vpow2.f32 %v6803_v28 }
 0xbac   :  { %v11661_v26 = vpop.eup %9374 }
 0xbad   :  { %v6843_v43 = vsel %vm6716_vm6, %v11661_v26, 0.0  ;;  %v6761_v40 = vpop.xlane.xlu0 %6760 }
 0xbae   :  { %6844 = vadd.xlane.f32.xlu0 %v6843_v43  ;;  %v6779_v21 = vsub.f32 %v11598_v49, %v6761_v40 }
 0xbaf   :  { %v6764_v3 = vpop.xlane.xlu1 %6763 }
 0xbb0   :  { %v11665_v48 = vpop.eup %9376  ;;  %v6780_v0 = vsub.f32 %v11602_v52, %v6764_v3  ;;  %v6774_v52 = vsub.f32 %v11590_v13, %v6746_v8  ;;  %v6809_v41 = vmul.f32 1.442695, %v6779_v21 }
 0xbb1   :  { %v6837_v34 = vsel %vm6716_vm6, %v11665_v48, 0.0  ;;  %v11669_v36 = vpop.eup %9378  ;;  %v6755_v9 = vpop.xlane.xlu0 %6754 }
 0xbb2   :  { %6838 = vadd.xlane.f32.xlu0 %v6837_v34  ;;  %v6846_v10 = vsel %vm6716_vm6, %v11669_v36, 0.0  ;;  %v6811_v53 = vmul.f32 1.442695, %v6780_v0  ;;  %v6799_v6 = vmul.f32 1.442695, %v6774_v52  ;;  %v6777_v57 = vsub.f32 %v11600_v39, %v6755_v9 }
 0xbb3   :  { %v6758_v19 = vpop.xlane.xlu1 %6757 }
 0xbb4   :  { %v6778_v30 = vsub.f32 %v11606_v56, %v6758_v19  ;;  %5494 = vrot.lane.b32.xlu1 %v10992_v4, %s9738_s4  ;;  %v6805_v11 = vmul.f32 1.442695, %v6777_v57 }
 0xbb5   :  { %v5483_v43 = vpop.permute.xlu0 %5482 }
 0xbb6   :  { %v6807_v50 = vmul.f32 1.442695, %v6778_v30  ;;  %6847 = vadd.xlane.f32.xlu0 %v6846_v10 }
 0xbb7   :  { %v5489_v3 = vpop.permute.xlu1 %5488 }
 0xbb8   :  { %9380 = vpow2.f32 %v6807_v50 }
 0xbb9   :  { %9382 = vpow2.f32 %v6811_v53 }
 0xbba   :  { %9384 = vpow2.f32 %v6799_v6 }
 0xbbb   :  { %9386 = vpow2.f32 %v6805_v11 }
 0xbbc   :  { %9388 = vpow2.f32 %v6809_v41 }
 0xbc2   :  { %v11677_v63 = vpop.eup %9380 }
 0xbc3   :  { %v6852_v56 = vsel %vm6716_vm6, %v11677_v63, 0.0  ;;  %v11682_v12 = vpop.eup %9382 }
 0xbc4   :  { %6853 = vadd.xlane.f32.xlu0 %v6852_v56  ;;  %v6858_v17 = vsel %vm6716_vm6, %v11682_v12, 0.0  ;;  %v11688_v13 = vpop.eup %9384 }
 0xbc5   :  { %v6840_v28 = vsel %vm6716_vm6, %v11688_v13, 0.0  ;;  %v11692_v5 = vpop.eup %9386 }
 0xbc6   :  { %v6849_v39 = vsel %vm6716_vm6, %v11692_v5, 0.0  ;;  %v11696_v8 = vpop.eup %9388 }
 0xbc7   :  { %v6855_v49 = vsel %vm6716_vm6, %v11696_v8, 0.0 }
 0xbc8   :  { %6859 = vadd.xlane.f32.xlu0 %v6858_v17 }
 0xbd8   :  { %6841 = vadd.xlane.f32.xlu1 %v6840_v28 }
 0xbdc   :  { %6850 = vadd.xlane.f32.xlu1 %v6849_v39  ;;  %v7047_v39 = vsel %vm6904_vm5, %v11509_v29, 0 }
 0xbe0   :  { %6856 = vadd.xlane.f32.xlu1 %v6855_v49 }
 0xc18   :  { %v6815_v34 = vpop.xlane.xlu0 %6814 }
 0xc19   :  { %9390 = vrcp.f32 %v6815_v34 }
 0xc1a   :  { %v6818_v0 = vpop.xlane.xlu1 %6817 }
 0xc1b   :  { %9392 = vrcp.f32 %v6818_v0 }
 0xc1e   :  { %v6821_v19 = vpop.xlane.xlu0 %6820 }
 0xc1f   :  { %9394 = vrcp.f32 %v6821_v19 }
 0xc22   :  { %v6824_v30 = vpop.xlane.xlu0 %6823 }
 0xc23   :  { %v9391_v10 = vpop.eup %9390  ;;  %9396 = vrcp.f32 %v6824_v30 }
 0xc24   :  { %v6877_v50 = vmul.f32 %v9391_v10, %v11622_v31  ;;  %v5533_v31 = vshrl.u32 %v5483_v43, 16 }
 0xc25   :  { %v9393_v53 = vpop.eup %9392 }
 0xc26   :  { %v6878_v40 = vmul.f32 %v9393_v53, %v11626_v51 }
 0xc28   :  { %v6893_v52 = vpack.c.bf16 %v6878_v40, %v6877_v50  ;;  %v6833_v9 = vpop.xlane.xlu0 %6832 }
 0xc29   :  { %v9395_v56 = vpop.eup %9394 }
 0xc2a   :  { %9062 = vmatmul.mubr.msk.bf16.vlgmr.msra.gmra.mrb[60].mxu0 %vm6716_vm6, %v6893_v52  ;;  %v6879_v51 = vmul.f32 %v9395_v56, %v11632_v61  ;;  %v5534_v61 = vpack.i.b16 %v5533_v31, %v5532_v44 }
 0xc2b   :  { %9074 = vmatpush3.bf16.msra.mxu0 %v6250_v42  ;;  %9077 = vmatprep.mubr.msk.bf16.mxu0 %vm9741_vm0, %v9740_v58  ;;  %v5530_v42 = vpack.i.b16 %v5483_v43, %v10992_v4  ;;  %v5540_v4 = vshrl.u32 %v5489_v3, 16 }
 0xc2c   :  { %v6827_v6 = vpop.xlane.xlu1 %6826  ;;  %9075 = vmatprep.subr.bf16.mxu0 %v9740_v58  ;;  %v5874_v28 = vcombine.high %v5534_v61, %v10108_v18  ;;  %v5881_v30 = vrot.slane %v5534_v61, %v10112_v20 }
 0xc2d   :  { %v9397_v57 = vpop.eup %9396  ;;  %9398 = vrcp.f32 %v6827_v6  ;;  %v5808_v45 = vcombine.high %v5530_v42, %v10108_v18 }
 0xc2e   :  { %v6880_v17 = vmul.f32 %v9397_v57, %v11637_v32  ;;  %v6830_v21 = vpop.xlane.xlu0 %6829  ;;  %v5888_v40 = vrot.slane %v5874_v28, %v10112_v20 }
 0xc2f   :  { %9400 = vrcp.f32 %v6830_v21  ;;  %9076 = vmatpush3.bf16.msra.mxu0 %v7000_v7  ;;  %v5822_v19 = vrot.slane %v5808_v45, %v10112_v20 }
 0xc30   :  { %v6836_v11 = vpop.xlane.xlu1 %6835  ;;  %v6894_v41 = vpack.c.bf16 %v6880_v17, %v6879_v51  ;;  %9089 = vmatprep.subr.bf16.mxu0 %v9740_v58 }
 0xc31   :  { %9402 = vrcp.f32 %v6836_v11 }
 0xc32   :  { %9070 = vmatmul.mubr.msk.bf16.vlgmr.msra.gmra.mrb[68].mxu1 %vm6716_vm6, %v6894_v41  ;;  %9404 = vrcp.f32 %v6833_v9 }
 0xc33   :  { %9082 = vmatpush3.bf16.msra.mxu1 %v11499_v1  ;;  %9085 = vmatprep.mubr.msk.bf16.mxu1 %vm9741_vm0, %v9740_v58  ;;  %v5815_v1 = vrot.slane %v5530_v42, %v10112_v20 }
 0xc34   :  { %v5495_v27 = vpop.permute.xlu1 %5494  ;;  %9083 = vmatprep.subr.bf16.mxu1 %v9740_v58 }
 0xc35   :  { %v5538_v46 = vpack.i.b16 %v5495_v27, %v5489_v3  ;;  %v5541_v32 = vshrl.u32 %v5495_v27, 16 }
 0xc37   :  { %v9399_v49 = vpop.eup %9398  ;;  %v5542_v43 = vpack.i.b16 %v5541_v32, %v5540_v4  ;;  %v5823_v34 = vcombine.high %v5538_v46, %v10108_v18  ;;  %v5830_v0 = vrot.slane %v5538_v46, %v10112_v20  ;;  %9084 = vmatpush3.bf16.msra.mxu1 %v7047_v39 }
 0xc38   :  { %9097 = vmatprep.subr.bf16.mxu1 %v9740_v58  ;;  %v6881_v52 = vmul.f32 %v9399_v49, %v11646_v15 }
 0xc39   :  { %v9401_v3 = vpop.eup %9400  ;;  %v5837_v10 = vrot.slane %v5823_v34, %v10112_v20  ;;  %v5838_v53 = vcombine.low %v5815_v1, %v5830_v0  ;;  %v5839_v29 = vcombine.high %v5815_v1, %v5830_v0  ;;  %v5889_v50 = vcombine.high %v5542_v43, %v10108_v18 }
 0xc3a   :  { %v6882_v9 = vmul.f32 %v9401_v3, %v11653_v59  ;;  %v5896_v56 = vrot.slane %v5542_v43, %v10112_v20 }
 0xc3b   :  { %v9403_v6 = vpop.eup %9402  ;;  %v5846_v57 = vrot.slane %v5838_v53, %v10121_v38  ;;  %v5853_v31 = vrot.slane %v5839_v29, %v10121_v38  ;;  %v5854_v51 = vcombine.low %v5822_v19, %v5837_v10  ;;  %v5855_v17 = vcombine.high %v5822_v19, %v5837_v10  ;;  %v6845_v21 = vpop.xlane.xlu0 %6844 }
 0xc3c   :  { %v6884_v7 = vmul.f32 %v9403_v6, %v11648_v2  ;;  %v5903_v44 = vrot.slane %v5889_v50, %v10112_v20  ;;  %v5904_v42 = vcombine.low %v5881_v30, %v5896_v56  ;;  %v5905_v11 = vcombine.high %v5881_v30, %v5896_v56  ;;  %v9405_v45 = vpop.eup %9404 }
 0xc3d   :  { %v5862_v15 = vrot.slane %v5854_v51, %v10121_v38  ;;  %v5869_v59 = vrot.slane %v5855_v17, %v10121_v38  ;;  %v6106_v41 = vcombine.low %v5846_v57, %v5853_v31  ;;  %v8614_v61 = vcombine.high %v5846_v57, %v5853_v31 }
 0xc3e   :  { %v5912_v27 = vrot.slane %v5904_v42, %v10121_v38  ;;  %v5919_v4 = vrot.slane %v5905_v11, %v10121_v38  ;;  %v5920_v46 = vcombine.low %v5888_v40, %v5903_v44  ;;  %v5921_v32 = vcombine.high %v5888_v40, %v5903_v44 }
 0xc3f   :  { %v6113_v28 = vrot.slane %v6106_v41, %v10112_v20  ;;  %v6121_v2 = vrot.slane %v8614_v61, %v10112_v20  ;;  %v6190_v39 = vcombine.low %v5862_v15, %v5869_v59  ;;  %v8617_v49 = vcombine.high %v5862_v15, %v5869_v59  ;;  %v11749_v1 = vpop.xlane.xlu0 %6838 }
 0xc40   :  { %v5928_v43 = vrot.slane %v5920_v46, %v10121_v38  ;;  %v5935_v34 = vrot.slane %v5921_v32, %v10121_v38  ;;  %v6156_v0 = vcombine.low %v5912_v27, %v5919_v4  ;;  %v8616_v19 = vcombine.high %v5912_v27, %v5919_v4 }
 0xc41   :  { %v6883_v30 = vmul.f32 %v9405_v45, %v11642_v22  ;;  %v6197_v3 = vrot.slane %v6190_v39, %v10112_v20  ;;  %v6205_v10 = vrot.slane %v8617_v49, %v10112_v20  ;;  %v6895_v53 = vpack.c.bf16 %v6882_v9, %v6881_v52 }
 0xc42   :  { %v6163_v29 = vrot.slane %v6156_v0, %v10112_v20  ;;  %v6171_v50 = vrot.slane %v8616_v19, %v10112_v20  ;;  %v6215_v40 = vcombine.low %v5928_v43, %v5935_v34  ;;  %v8618_v56 = vcombine.high %v5928_v43, %v5935_v34 }
 0xc43   :  { %9406 = vrcp.f32 %v6845_v21  ;;  %9078 = vmatmul.mubr.msk.bf16.vlgmr.msra.gmra.mrb[64].mxu0 %vm6716_vm6, %v6895_v53  ;;  %v6896_v6 = vpack.c.bf16 %v6884_v7, %v6883_v30  ;;  %v6848_v57 = vpop.xlane.xlu0 %6847  ;;  %v6130_v31 = vcombine.low %v6113_v28, %v6121_v2  ;;  %v6206_v51 = vcombine.low %v6197_v3, %v6205_v10 }
 0xc44   :  { %9408 = vrcp.f32 %v6848_v57  ;;  %v6180_v22 = vcombine.low %v6163_v29, %v6171_v50  ;;  %v6222_v17 = vrot.slane %v6215_v40, %v10112_v20  ;;  %v6230_v44 = vrot.slane %v8618_v56, %v10112_v20  ;;  %9093 = vmatprep.mubr.msk.bf16.mxu0 %vm9741_vm0, %v9740_v58 }
 0xc45   :  { %9086 = vmatmul.mubr.msk.bf16.vlgmr.msra.gmra.mrb[72].mxu1 %vm6716_vm6, %v6896_v6  ;;  %v6129_v52 = vrot.slane %v6122_v23, %v10121_v38  ;;  %v6137_v9 = vrot.slane %v6130_v31, %v10121_v38  ;;  %v6213_v21 = vrot.slane %v6206_v51, %v10121_v38  ;;  %v6179_v7 = vrot.slane %v6172_v24, %v10121_v38 }
 0xc46   :  { %v6187_v42 = vrot.slane %v6180_v22, %v10121_v38  ;;  %v6231_v11 = vcombine.low %v6222_v17, %v6230_v44  ;;  %9101 = vmatprep.mubr.msk.bf16.mxu1 %vm9741_vm0, %v9740_v58  ;;  %9410 = vrcp.f32 %v11749_v1 }
 0xc47   :  { %v6138_v15 = vcombine.low %v6129_v52, %v6137_v9  ;;  %v11777_v59 = vcombine.high %v6129_v52, %v6137_v9  ;;  %v6287_v41 = vshrl.u32 %v6213_v21, 16  ;;  %v6214_v19 = vcombine.high %v6213_v21, %v12050_v54 }
 0xc48   :  { %v6188_v55 = vcombine.low %v6179_v7, %v6187_v42  ;;  %v6238_v16 = vrot.slane %v6231_v11, %v10121_v38  ;;  %v6189_v23 = vcombine.high %v6179_v7, %v6187_v42 }
 0xc49   :  { %v6272_v45 = vshrl.u32 %v6138_v15, 16  ;;  %v6280_v60 = vshrl.u32 %v11777_v59, 16  ;;  %v6293_v29 = vshrl.u32 %v6214_v19, 16 }
 0xc4a   :  { %v6270_v61 = vpack.i.b16 %v6188_v55, %v6138_v15  ;;  %v6273_v27 = vshrl.u32 %v6188_v55, 16  ;;  %v6288_v4 = vshrl.u32 %v6238_v16, 16  ;;  %v6286_v62 = vpack.i.b16 %v6238_v16, %v6213_v21 }
 0xc4b   :  { %v6281_v24 = vshrl.u32 %v6189_v23, 16  ;;  %v6278_v46 = vpack.i.b16 %v6189_v23, %v11777_v59  ;;  %v6239_v49 = vcombine.high %v6238_v16, %v12050_v54 }
 0xc4c   :  { %9090 = vmatpush3.bf16.msra.mxu0 %v6270_v61  ;;  %v6274_v32 = vpack.i.b16 %v6273_v27, %v6272_v45  ;;  %v6289_v2 = vpack.i.b16 %v6288_v4, %v6287_v41  ;;  %v7094_v0 = vsel %vm6904_vm5, %v6286_v62, 0 }
 0xc4d   :  { %v9407_v28 = vpop.eup %9406  ;;  %9091 = vmatprep.subr.bf16.mxu0 %v9740_v58  ;;  %v6282_v39 = vpack.i.b16 %v6281_v24, %v6280_v60  ;;  %v6294_v10 = vshrl.u32 %v6239_v49, 16  ;;  %v6292_v1 = vpack.i.b16 %v6239_v49, %v6214_v19 }
 0xc4e   :  { %v9409_v43 = vpop.eup %9408  ;;  %9098 = vmatpush3.bf16.msra.mxu1 %v6274_v32  ;;  %v6887_v30 = vmul.f32 %v9407_v28, %v11661_v26  ;;  %v7141_v3 = vsel %vm6904_vm5, %v6289_v2, 0 }
 0xc4f   :  { %v6888_v34 = vmul.f32 %v9409_v43, %v11669_v36  ;;  %9099 = vmatprep.subr.bf16.mxu1 %v9740_v58  ;;  %v6295_v36 = vpack.i.b16 %v6294_v10, %v6293_v29  ;;  %v7188_v15 = vsel %vm6904_vm5, %v6292_v1, 0 }
 0xc50   :  { %9092 = vmatpush3.bf16.msra.mxu0 %v7094_v0  ;;  %v9411_v31 = vpop.eup %9410 }
 0xc51   :  { %9105 = vmatprep.subr.bf16.mxu0 %v9740_v58  ;;  %v6898_v53 = vpack.c.bf16 %v6888_v34, %v6887_v30  ;;  %v7235_v26 = vsel %vm6904_vm5, %v6295_v36, 0  ;;  %v6854_v50 = vpop.xlane.xlu0 %6853  ;;  %v6885_v22 = vmul.f32 %v9411_v31, %v11665_v48 }
 0xc52   :  { %9100 = vmatpush3.bf16.msra.mxu1 %v7141_v3 }
 0xc53   :  { %9113 = vmatprep.subr.bf16.mxu1 %v9740_v58 }
 0xc55   :  { %9102 = vmatmul.mubr.msk.bf16.vlgmr.msra.gmra.mrb[76].mxu1 %vm6716_vm6, %v6898_v53  ;;  %v6860_v56 = vpop.xlane.xlu0 %6859 }
 0xc56   :  { %9114 = vmatpush3.bf16.msra.mxu1 %v6282_v39  ;;  %9117 = vmatprep.mubr.msk.bf16.mxu1 %vm9741_vm0, %v9740_v58 }
 0xc57   :  { %9115 = vmatprep.subr.bf16.mxu1 %v9740_v58 }
 0xc5a   :  { %9116 = vmatpush3.bf16.msra.mxu1 %v7235_v26 }
 0xc65   :  { %v6842_v40 = vpop.xlane.xlu1 %6841 }
 0xc66   :  { %9412 = vrcp.f32 %v6842_v40 }
 0xc69   :  { %v6851_v6 = vpop.xlane.xlu1 %6850 }
 0xc6a   :  { %9414 = vrcp.f32 %v6851_v6 }
 0xc6b   :  { %9416 = vrcp.f32 %v6854_v50 }
 0xc6c   :  { %9418 = vrcp.f32 %v6860_v56 }
 0xc6d   :  { %v6857_v57 = vpop.xlane.xlu1 %6856 }
 0xc6e   :  { %9420 = vrcp.f32 %v6857_v57 }
 0xc70   :  { %v9413_v51 = vpop.eup %9412 }
 0xc71   :  { %v6886_v17 = vmul.f32 %v9413_v51, %v11688_v13 }
 0xc73   :  { %v6897_v44 = vpack.c.bf16 %v6886_v17, %v6885_v22 }
 0xc74   :  { %v9415_v52 = vpop.eup %9414 }
 0xc75   :  { %v9417_v9 = vpop.eup %9416  ;;  %9094 = vmatmul.mubr.msk.bf16.vlgmr.msra.gmra.mrb[68].mxu0 %vm6716_vm6, %v6897_v44  ;;  %v6889_v7 = vmul.f32 %v9415_v52, %v11692_v5 }
 0xc76   :  { %v9419_v21 = vpop.eup %9418  ;;  %9106 = vmatpush3.bf16.msra.mxu0 %v6278_v46  ;;  %9109 = vmatprep.mubr.msk.bf16.mxu0 %vm9741_vm0, %v9740_v58  ;;  %v6890_v48 = vmul.f32 %v9417_v9, %v11677_v63 }
 0xc77   :  { %9107 = vmatprep.subr.bf16.mxu0 %v9740_v58  ;;  %v6892_v13 = vmul.f32 %v9419_v21, %v11682_v12 }
 0xc78   :  { %v9421_v42 = vpop.eup %9420  ;;  %v6899_v59 = vpack.c.bf16 %v6890_v48, %v6889_v7 }
 0xc79   :  { %v6891_v11 = vmul.f32 %v9421_v42, %v11696_v8 }
 0xc7a   :  { %9108 = vmatpush3.bf16.msra.mxu0 %v7188_v15 }
 0xc7b   :  { %v6900_v55 = vpack.c.bf16 %v6892_v13, %v6891_v11 }
 0xc7d   :  { %9110 = vmatmul.mubr.msk.bf16.vlgmr.msra.gmra.mrb[72].mxu0 %vm6716_vm6, %v6899_v59  ;;  %9118 = vmatmul.mubr.msk.bf16.vlgmr.msra.gmra.mrb[80].mxu1 %vm6716_vm6, %v6900_v55 }
 0xc7e   :  { %8166 = vmatprep.mubr.bf16.mxu1 %v12050_v54 }
 0xcfd   :  { %v6942_v5 = vpop.f32.mrb[60].mxu0 }
 0xcfe   :  { %v9063_v58 = vpop.f32.mrb[61].mxu0 }
 0xcff   :  { %v6945_v16 = vpop.f32.mrb[62].mxu0 }
 0xd00   :  { %v7278_v23 = vpack.c.bf16 %v6945_v16, %v6942_v5  ;;  %v9064_v63 = vpop.f32.mrb[63].mxu0 }
 0xd02   :  { %v7290_v27 = vshrl.u32 %v7278_v23, 16 }
 0xd05   :  { %v6989_v41 = vpop.f32.mrb[68].mxu1 }
 0xd06   :  { %v9071_v12 = vpop.f32.mrb[69].mxu1 }
 0xd07   :  { %v6992_v61 = vpop.f32.mrb[70].mxu1 }
 0xd08   :  { %v7279_v8 = vpack.c.bf16 %v6992_v61, %v6989_v41  ;;  %v9072_v45 = vpop.f32.mrb[71].mxu1 }
 0xd0a   :  { %v7288_v4 = vpack.i.b16 %v7279_v8, %v7278_v23  ;;  %v7291_v62 = vshrl.u32 %v7279_v8, 16 }
 0xd0c   :  { %v7292_v60 = vpack.i.b16 %v7291_v62, %v7290_v27  ;;  %v7318_v19 = vcombine.high %v7288_v4, %v10108_v18  ;;  %v7325_v53 = vrot.slane %v7288_v4, %v10112_v20 }
 0xd0e   :  { %v7332_v50 = vrot.slane %v7318_v19, %v10112_v20  ;;  %v7384_v40 = vcombine.high %v7292_v60, %v10108_v18  ;;  %v7391_v51 = vrot.slane %v7292_v60, %v10112_v20 }
 0xd10   :  { %v7398_v1 = vrot.slane %v7384_v40, %v10112_v20 }
 0xd16   :  { %v7036_v24 = vpop.f32.mrb[64].mxu0 }
 0xd17   :  { %v9079_v46 = vpop.f32.mrb[65].mxu0 }
 0xd18   :  { %v7039_v32 = vpop.f32.mrb[66].mxu0  ;;  %v7083_v28 = vpop.f32.mrb[72].mxu1 }
 0xd19   :  { %v7280_v2 = vpack.c.bf16 %v7039_v32, %v7036_v24  ;;  %v9080_v39 = vpop.f32.mrb[67].mxu0  ;;  %v9087_v49 = vpop.f32.mrb[73].mxu1 }
 0xd1a   :  { %v7086_v43 = vpop.f32.mrb[74].mxu1 }
 0xd1b   :  { %v7281_v34 = vpack.c.bf16 %v7086_v43, %v7083_v28  ;;  %v9088_v0 = vpop.f32.mrb[75].mxu1  ;;  %v7298_v30 = vshrl.u32 %v7280_v2, 16 }
 0xd1d   :  { %v7296_v3 = vpack.i.b16 %v7281_v34, %v7280_v2  ;;  %v7299_v10 = vshrl.u32 %v7281_v34, 16 }
 0xd1f   :  { %v7300_v29 = vpack.i.b16 %v7299_v10, %v7298_v30  ;;  %v7333_v36 = vcombine.high %v7296_v3, %v10108_v18  ;;  %v7340_v26 = vrot.slane %v7296_v3, %v10112_v20 }
 0xd21   :  { %v7347_v56 = vrot.slane %v7333_v36, %v10112_v20  ;;  %v7348_v6 = vcombine.low %v7325_v53, %v7340_v26  ;;  %v7349_v57 = vcombine.high %v7325_v53, %v7340_v26  ;;  %v7399_v31 = vcombine.high %v7300_v29, %v10108_v18  ;;  %v9238_v53 = vld [vmem:[#allocation16] sm:$0xff]  }
 0xd22   :  { %v7406_v22 = vrot.slane %v7300_v29, %v10112_v20  ;;  %v9239_v29 = vld [vmem:[#allocation16 + $0x8] sm:$0xff]   ;;  %9121 = vmatprep.subr.bf16.mxu0 %v9238_v53 }
 0xd23   :  { %v7356_v17 = vrot.slane %v7348_v6, %v10121_v38  ;;  %v7363_v44 = vrot.slane %v7349_v57, %v10121_v38  ;;  %v7364_v52 = vcombine.low %v7332_v50, %v7347_v56  ;;  %v7365_v9 = vcombine.high %v7332_v50, %v7347_v56  ;;  %9122 = vmatpush3.bf16.msra.mxu0 %v9238_v53  ;;  %v9240_v6 = vld [vmem:[#allocation16 + $0x10] sm:$0xff]  }
 0xd24   :  { %v7413_v21 = vrot.slane %v7399_v31, %v10112_v20  ;;  %v7414_v7 = vcombine.low %v7391_v51, %v7406_v22  ;;  %v7415_v42 = vcombine.high %v7391_v51, %v7406_v22  ;;  %9123 = vmatprep.subr.bf16.mxu0 %v9239_v29 }
 0xd25   :  { %v7372_v48 = vrot.slane %v7364_v52, %v10121_v38  ;;  %v7379_v13 = vrot.slane %v7365_v9, %v10121_v38  ;;  %v7582_v11 = vcombine.low %v7356_v17, %v7363_v44  ;;  %v8635_v15 = vcombine.high %v7356_v17, %v7363_v44 }
 0xd26   :  { %v7422_v59 = vrot.slane %v7414_v7, %v10121_v38  ;;  %v7429_v55 = vrot.slane %v7415_v42, %v10121_v38  ;;  %v7430_v5 = vcombine.low %v7398_v1, %v7413_v21  ;;  %v7431_v58 = vcombine.high %v7398_v1, %v7413_v21  ;;  %v9241_v1 = vld [vmem:[#allocation16 + $0x18] sm:$0xff]   ;;  %v9242_v42 = vld [vmem:[#allocation16 + $0x20] sm:$0xff]  }
 0xd27   :  { %v7598_v16 = vcombine.low %v7372_v48, %v7379_v13  ;;  %v8636_v23 = vcombine.high %v7372_v48, %v7379_v13  ;;  %v7589_v63 = vrot.slane %v7582_v11, %v10112_v20  ;;  %v7597_v41 = vrot.slane %v8635_v15, %v10112_v20  ;;  %9124 = vmatpush3.bf16.msra.mxu0 %v9239_v29  ;;  %v9243_v48 = vld [vmem:[#allocation16 + $0x28] sm:$0xff]  }
 0xd28   :  { %v7438_v12 = vrot.slane %v7430_v5, %v10121_v38  ;;  %v7445_v61 = vrot.slane %v7431_v58, %v10121_v38  ;;  %v7632_v8 = vcombine.low %v7422_v59, %v7429_v55  ;;  %v8637_v45 = vcombine.high %v7422_v59, %v7429_v55  ;;  %v7177_v27 = vpop.f32.mrb[76].mxu1  ;;  %9125 = vmatprep.subr.bf16.mxu0 %v9240_v6 }
 0xd29   :  { %v9103_v4 = vpop.f32.mrb[77].mxu1  ;;  %v7605_v62 = vrot.slane %v7598_v16, %v10112_v20  ;;  %v7613_v60 = vrot.slane %v8636_v23, %v10112_v20  ;;  %v7614_v24 = vcombine.low %v7589_v63, %v7597_v41 }
 0xd2a   :  { %v7180_v46 = vpop.f32.mrb[78].mxu1  ;;  %v7639_v32 = vrot.slane %v7632_v8, %v10112_v20  ;;  %v7647_v28 = vrot.slane %v8637_v45, %v10112_v20  ;;  %v7648_v2 = vcombine.low %v7438_v12, %v7445_v61  ;;  %v8638_v39 = vcombine.high %v7438_v12, %v7445_v61 }
 0xd2b   :  { %v7283_v49 = vpack.c.bf16 %v7180_v46, %v7177_v27  ;;  %v9104_v43 = vpop.f32.mrb[79].mxu1  ;;  %v7622_v34 = vcombine.low %v7605_v62, %v7613_v60  ;;  %v7621_v3 = vrot.slane %v7614_v24, %v10121_v38  ;;  %9126 = vmatpush3.bf16.msra.mxu0 %v9240_v6 }
 0xd2c   :  { %v7655_v0 = vrot.slane %v7648_v2, %v10112_v20  ;;  %v7663_v19 = vrot.slane %v8638_v39, %v10112_v20  ;;  %v7664_v30 = vcombine.low %v7639_v32, %v7647_v28  ;;  %9127 = vmatprep.subr.bf16.mxu0 %v9241_v1 }
 0xd2d   :  { %v7629_v10 = vrot.slane %v7622_v34, %v10121_v38  ;;  %v7307_v5 = vshrl.u32 %v7283_v49, 16 }
 0xd2e   :  { %v7672_v36 = vcombine.low %v7655_v0, %v7663_v19  ;;  %v7671_v40 = vrot.slane %v7664_v30, %v10121_v38 }
 0xd2f   :  { %v7631_v26 = vcombine.high %v7621_v3, %v7629_v10  ;;  %v11842_v50 = vcombine.low %v7621_v3, %v7629_v10  ;;  %9128 = vmatpush3.bf16.msra.mxu0 %v9241_v1 }
 0xd30   :  { %v7679_v56 = vrot.slane %v7672_v36, %v10121_v38  ;;  %9129 = vmatprep.subr.bf16.mxu0 %v9242_v42 }
 0xd31   :  { %v7791_v51 = vshrl.u32 %v7631_v26, 16  ;;  %v7785_v22 = vshrl.u32 %v11842_v50, 16 }
 0xd32   :  { %v11846_v57 = vcombine.low %v7671_v40, %v7679_v56  ;;  %v7681_v31 = vcombine.high %v7671_v40, %v7679_v56 }
 0xd33   :  { %9130 = vmatpush3.bf16.msra.mxu0 %v9242_v42 }
 0xd34   :  { %v7790_v17 = vpack.i.b16 %v7681_v31, %v7631_v26  ;;  %v7792_v44 = vshrl.u32 %v7681_v31, 16  ;;  %v7786_v52 = vshrl.u32 %v11846_v57, 16  ;;  %v7784_v9 = vpack.i.b16 %v11846_v57, %v11842_v50  ;;  %9131 = vmatprep.subr.bf16.mxu0 %v9243_v48  ;;  %v8643_v50 = vld [vmem:[%s11996_s15] ss:$0 sm:$0xff] }
 0xd36   :  { %7810 = vrot.lane.b32.xlu1 %v7790_v17, %s12043_s2  ;;  %v7787_v21 = vpack.i.b16 %v7786_v52, %v7785_v22  ;;  %v11853_v7 = vpack.i.b16 %v7792_v44, %v7791_v51 }
 0xd37   :  { %9132 = vmatpush3.bf16.msra.mxu0 %v9243_v48 }
 0xd3a   :  { %7806 = vrot.lane.b32.xlu1 %v7787_v21, %s9738_s4 }
 0xd48   :  { %v7130_v13 = vpop.f32.mrb[68].mxu0 }
 0xd49   :  { %v9095_v11 = vpop.f32.mrb[69].mxu0 }
 0xd4a   :  { %v7133_v15 = vpop.f32.mrb[70].mxu0 }
 0xd4b   :  { %v7282_v59 = vpack.c.bf16 %v7133_v15, %v7130_v13  ;;  %v9096_v55 = vpop.f32.mrb[71].mxu0 }
 0xd4d   :  { %v7304_v58 = vpack.i.b16 %v7283_v49, %v7282_v59  ;;  %v7306_v16 = vshrl.u32 %v7282_v59, 16 }
 0xd4f   :  { %v7308_v23 = vpack.i.b16 %v7307_v5, %v7306_v16  ;;  %v7450_v24 = vcombine.high %v7304_v58, %v10108_v18  ;;  %v7457_v2 = vrot.slane %v7304_v58, %v10112_v20 }
 0xd50   :  { %v7224_v63 = vpop.f32.mrb[72].mxu0  ;;  %v7271_v41 = vpop.f32.mrb[80].mxu1 }
 0xd51   :  { %v9111_v12 = vpop.f32.mrb[73].mxu0  ;;  %v9119_v61 = vpop.f32.mrb[81].mxu1  ;;  %v7464_v34 = vrot.slane %v7450_v24, %v10112_v20  ;;  %v7516_v0 = vcombine.high %v7308_v23, %v10108_v18  ;;  %v7523_v53 = vrot.slane %v7308_v23, %v10112_v20  ;;  %v9244_v23 = vld [vmem:[#allocation16 + $0x30] sm:$0xff]  }
 0xd52   :  { %v7227_v8 = vpop.f32.mrb[74].mxu0  ;;  %v7274_v45 = vpop.f32.mrb[82].mxu1  ;;  %9133 = vmatprep.subr.bf16.mxu0 %v9244_v23 }
 0xd53   :  { %v7284_v27 = vpack.c.bf16 %v7227_v8, %v7224_v63  ;;  %v7285_v4 = vpack.c.bf16 %v7274_v45, %v7271_v41  ;;  %v9112_v62 = vpop.f32.mrb[75].mxu0  ;;  %v9120_v60 = vpop.f32.mrb[83].mxu1  ;;  %v7530_v6 = vrot.slane %v7516_v0, %v10112_v20  ;;  %9134 = vmatpush3.bf16.msra.mxu0 %v9244_v23  ;;  %v9251_v23 = vld [vmem:[#allocation17 + $0x14] ss:$8 sps:$4 sm:$0xff]  }
 0xd55   :  { %v7314_v46 = vshrl.u32 %v7284_v27, 16  ;;  %v7312_v32 = vpack.i.b16 %v7285_v4, %v7284_v27  ;;  %v7315_v28 = vshrl.u32 %v7285_v4, 16 }
 0xd57   :  { %v7316_v39 = vpack.i.b16 %v7315_v28, %v7314_v46  ;;  %v7465_v49 = vcombine.high %v7312_v32, %v10108_v18  ;;  %v7472_v43 = vrot.slane %v7312_v32, %v10112_v20  ;;  %v9245_v28 = vld [vmem:[#allocation16 + $0x38] sm:$0xff]  }
 0xd58   :  { %9135 = vmatprep.subr.bf16.mxu0 %v9245_v28 }
 0xd59   :  { %v7479_v19 = vrot.slane %v7465_v49, %v10112_v20  ;;  %v7480_v30 = vcombine.low %v7457_v2, %v7472_v43  ;;  %v7481_v3 = vcombine.high %v7457_v2, %v7472_v43  ;;  %v7531_v10 = vcombine.high %v7316_v39, %v10108_v18  ;;  %9136 = vmatpush3.bf16.msra.mxu0 %v9245_v28  ;;  %v9252_v28 = vld [vmem:[#allocation17 + $0x20] ss:$8 sps:$4 sm:$0xff]  }
 0xd5a   :  { %v7538_v29 = vrot.slane %v7316_v39, %v10112_v20 }
 0xd5b   :  { %v7488_v36 = vrot.slane %v7480_v30, %v10121_v38  ;;  %v7495_v26 = vrot.slane %v7481_v3, %v10121_v38  ;;  %v7496_v40 = vcombine.low %v7464_v34, %v7479_v19  ;;  %v7497_v56 = vcombine.high %v7464_v34, %v7479_v19 }
 0xd5c   :  { %v7545_v31 = vrot.slane %v7531_v10, %v10112_v20  ;;  %v7546_v51 = vcombine.low %v7523_v53, %v7538_v29  ;;  %v7547_v22 = vcombine.high %v7523_v53, %v7538_v29 }
 0xd5d   :  { %v7504_v17 = vrot.slane %v7496_v40, %v10121_v38  ;;  %v7511_v18 = vrot.slane %v7497_v56, %v10121_v38  ;;  %v7682_v44 = vcombine.low %v7488_v36, %v7495_v26  ;;  %v8639_v52 = vcombine.high %v7488_v36, %v7495_v26 }
 0xd5e   :  { %v7554_v1 = vrot.slane %v7546_v51, %v10121_v38  ;;  %v7561_v21 = vrot.slane %v7547_v22, %v10121_v38  ;;  %v7562_v42 = vcombine.low %v7530_v6, %v7545_v31  ;;  %v7563_v48 = vcombine.high %v7530_v6, %v7545_v31 }
 0xd5f   :  { %v7698_v13 = vcombine.low %v7504_v17, %v7511_v18  ;;  %v8640_v11 = vcombine.high %v7504_v17, %v7511_v18  ;;  %v7689_v15 = vrot.slane %v7682_v44, %v10112_v20  ;;  %v7697_v59 = vrot.slane %v8639_v52, %v10112_v20 }
 0xd60   :  { %v7570_v55 = vrot.slane %v7562_v42, %v10121_v38  ;;  %v7577_v5 = vrot.slane %v7563_v48, %v10121_v38  ;;  %v7732_v58 = vcombine.low %v7554_v1, %v7561_v21  ;;  %v8641_v16 = vcombine.high %v7554_v1, %v7561_v21 }
 0xd61   :  { %v7705_v63 = vrot.slane %v7698_v13, %v10112_v20  ;;  %v7713_v41 = vrot.slane %v8640_v11, %v10112_v20  ;;  %v7714_v12 = vcombine.low %v7689_v15, %v7697_v59 }
 0xd62   :  { %v7739_v61 = vrot.slane %v7732_v58, %v10112_v20  ;;  %v7747_v8 = vrot.slane %v8641_v16, %v10112_v20  ;;  %v7748_v45 = vcombine.low %v7570_v55, %v7577_v5  ;;  %v8642_v27 = vcombine.high %v7570_v55, %v7577_v5  ;;  %v9246_v58 = vld [vmem:[#allocation17] ss:$8 sps:$4 sm:$0xff]   ;;  %v9248_v16 = vld [vmem:[#allocation17 + $0x4] ss:$8 sps:$4 sm:$0xff]  }
 0xd63   :  { %v7722_v4 = vcombine.low %v7705_v63, %v7713_v41  ;;  %v7721_v46 = vrot.slane %v7714_v12, %v10121_v38  ;;  %8134 = vmatprep.subr.bf16.mxu1 %v9248_v16  ;;  %v9249_v63 = vld [vmem:[#allocation17 + $0x10] ss:$8 sps:$4 sm:$0xff]  }
 0xd64   :  { %v7755_v62 = vrot.slane %v7748_v45, %v10112_v20  ;;  %v7763_v60 = vrot.slane %v8642_v27, %v10112_v20  ;;  %v7764_v24 = vcombine.low %v7739_v61, %v7747_v8  ;;  %8135 = vmatpush1.bf16.msra.mxu1 %v9246_v58  ;;  %v8653_v16 = vld [vmem:[%s11998_s17] ss:$0 sm:$0xff] }
 0xd65   :  { %v7729_v32 = vrot.slane %v7722_v4, %v10121_v38  ;;  %8136 = vmatprep.subr.bf16.mxu1 %v9251_v23 }
 0xd66   :  { %v7772_v2 = vcombine.low %v7755_v62, %v7763_v60  ;;  %v7771_v43 = vrot.slane %v7764_v24, %v10121_v38 }
 0xd67   :  { %v7731_v39 = vcombine.high %v7721_v46, %v7729_v32  ;;  %v7730_v49 = vcombine.low %v7721_v46, %v7729_v32 }
 0xd68   :  { %v7779_v34 = vrot.slane %v7772_v2, %v10121_v38  ;;  %8137 = vmatpush1.bf16.msra.mxu1 %v9249_v63  ;;  %v9254_v2 = vld [vmem:[#allocation17 + $0x24] ss:$8 sps:$4 sm:$0xff]  }
 0xd69   :  { %v7803_v30 = vshrl.u32 %v7731_v39, 16  ;;  %v7797_v3 = vshrl.u32 %v7730_v49, 16  ;;  %8138 = vmatprep.subr.bf16.mxu1 %v9254_v2 }
 0xd6a   :  { %v7780_v0 = vcombine.low %v7771_v43, %v7779_v34  ;;  %v7781_v19 = vcombine.high %v7771_v43, %v7779_v34  ;;  %v9260_v43 = vld [vmem:[#allocation17 + $0x44] ss:$8 sps:$4 sm:$0xff]   ;;  %v9258_v34 = vld [vmem:[#allocation17 + $0x40] ss:$8 sps:$4 sm:$0xff]  }
 0xd6c   :  { %v7802_v20 = vpack.i.b16 %v7781_v19, %v7731_v39  ;;  %v7804_v10 = vshrl.u32 %v7781_v19, 16  ;;  %v7798_v53 = vshrl.u32 %v7780_v0, 16  ;;  %v7796_v29 = vpack.i.b16 %v7780_v0, %v7730_v49  ;;  %v9257_v39 = vld [vmem:[#allocation17 + $0x34] ss:$8 sps:$4 sm:$0xff]   ;;  %8139 = vmatpush1.bf16.msra.mxu1 %v9252_v28  ;;  %v9255_v49 = vld [vmem:[#allocation17 + $0x30] ss:$8 sps:$4 sm:$0xff]  }
 0xd6d   :  { %8140 = vmatprep.subr.bf16.mxu1 %v9257_v39  ;;  %v9263_v0 = vld [vmem:[#allocation17 + $0x54] ss:$8 sps:$4 sm:$0xff]   ;;  %v9261_v19 = vld [vmem:[#allocation17 + $0x50] ss:$8 sps:$4 sm:$0xff]  }
 0xd6e   :  { %7812 = vrot.lane.b32.xlu1 %v7802_v20, %s12043_s2  ;;  %v7799_v36 = vpack.i.b16 %v7798_v53, %v7797_v3  ;;  %v7805_v26 = vpack.i.b16 %v7804_v10, %v7803_v30  ;;  %v9266_v30 = vld [vmem:[#allocation17 + $0x64] ss:$8 sps:$4 sm:$0xff]   ;;  %v9264_v3 = vld [vmem:[#allocation17 + $0x60] ss:$8 sps:$4 sm:$0xff]   ;;  %v9269_v20 = vld [vmem:[#allocation17 + $0x74] ss:$8 sps:$4 sm:$0xff]  }
 0xd6f   :  { %v9270_v10 = vld [vmem:[#allocation19 + $0x40] sm:$0xff]  }
 0xd70   :  { %7808 = vrot.lane.b32.xlu0 %v7799_v36, %s9738_s4  ;;  %8141 = vmatpush1.bf16.msra.mxu1 %v9255_v49  ;;  %v9271_v53 = vld [vmem:[#allocation19] sm:$0xff]   ;;  %v9267_v36 = vld [vmem:[#allocation17 + $0x70] ss:$8 sps:$4 sm:$0xff]   ;;  %s12051_s4 = sld [smem:[#allocation37_spill]] }
 0xd71   :  { %8142 = vmatprep.subr.bf16.mxu1 %v9260_v43  ;;  %8809 = vmatprep.subr.bf16.mxu0 %v9270_v10 }
 0xd72   :  { %7816 = vrot.lane.b32.xlu1 %v7805_v26, %s9739_s1  ;;  %v9273_v26 = vld [vmem:[#allocation19 + $0x8] sm:$0xff]  }
 0xd74   :  { %7814 = vrot.lane.b32.xlu0 %v11853_v7, %s9739_s1  ;;  %8143 = vmatpush1.bf16.msra.mxu1 %v9258_v34  ;;  %s9744_s1 = smov [#allocation20]  }
 0xd75   :  { %8144 = vmatprep.subr.bf16.mxu1 %v9263_v0 }
 0xd78   :  { %8145 = vmatpush1.bf16.msra.mxu1 %v9261_v19 }
 0xd79   :  { %8146 = vmatprep.subr.bf16.mxu1 %v9266_v30 }
 0xd7c   :  { %8147 = vmatpush1.bf16.msra.mxu1 %v9264_v3 }
 0xd7d   :  { %8148 = vmatprep.subr.bf16.mxu1 %v9269_v20 }
 0xd80   :  { %8149 = vmatpush1.bf16.msra.mxu1 %v9267_v36 }
 0xda8   :  { %v7811_v38 = vpop.permute.xlu1 %7810 }
 0xdac   :  { %v7807_v40 = vpop.permute.xlu1 %7806 }
 0xdad   :  { %v7820_v31 = vsel %vm2144_vm1, %v7784_v9, %v7807_v40  ;;  %v9275_v40 = vld [vmem:[#allocation19 + $0x10] sm:$0xff]  }
 0xdae   :  { %v7825_v44 = vsel %vm3624_vm3, %v7820_v31, %v7811_v38  ;;  %v9274_v38 = vld [vmem:[#allocation19 + $0x50] sm:$0xff]   ;;  %v9278_v31 = vld [vmem:[#allocation19 + $0x60] sm:$0xff]  }
 0xde0   :  { %v7813_v56 = vpop.permute.xlu1 %7812 }
 0xde2   :  { %v7809_v6 = vpop.permute.xlu0 %7808 }
 0xde3   :  { %v7823_v51 = vsel %vm2144_vm1, %v7796_v29, %v7809_v6  ;;  %v9272_v29 = vld [vmem:[#allocation19 + $0x48] sm:$0xff]   ;;  %v9277_v6 = vld [vmem:[#allocation19 + $0x18] sm:$0xff]  }
 0xde4   :  { %v7817_v22 = vpop.permute.xlu1 %7816  ;;  %v7827_v17 = vsel %vm3624_vm3, %v7823_v51, %v7813_v56  ;;  %v9276_v56 = vld [vmem:[#allocation19 + $0x58] sm:$0xff]   ;;  %v9279_v51 = vld [vmem:[#allocation19 + $0x20] sm:$0xff]  }
 0xde5   :  { %v7832_v7 = vsel %vm3629_vm4, %v7827_v17, %v7817_v22  ;;  %v9280_v22 = vld [vmem:[#allocation19 + $0x68] sm:$0xff]  }
 0xde6   :  { %v7815_v18 = vpop.permute.xlu0 %7814 }
 0xde7   :  { %v7829_v52 = vsel %vm3629_vm4, %v7825_v44, %v7815_v18 }
 0xde8   :  { %9137 = vmatprep.mubr.bf16.mxu0 %v7829_v52 }
 0xde9   :  { %9138 = vmatmul.mubr.bf16.vlgmr.msra.gmra.mrb[76].mxu0 %v7832_v7 }
 0xdea   :  { %8810 = vmatpush3.bf16.msra.mxu0 %v9271_v53 }
 0xdeb   :  { %8811 = vmatprep.subr.bf16.mxu0 %v9272_v29 }
 0xdee   :  { %8812 = vmatpush3.bf16.msra.mxu0 %v9273_v26 }
 0xdef   :  { %8813 = vmatprep.subr.bf16.mxu0 %v9274_v38 }
 0xdf2   :  { %8814 = vmatpush3.bf16.msra.mxu0 %v9275_v40 }
 0xdf3   :  { %8815 = vmatprep.subr.bf16.mxu0 %v9276_v56 }
 0xdf6   :  { %8816 = vmatpush3.bf16.msra.mxu0 %v9277_v6 }
 0xdf7   :  { %8817 = vmatprep.subr.bf16.mxu0 %v9278_v31 }
 0xdfa   :  { %8818 = vmatpush3.bf16.msra.mxu0 %v9279_v51 }
 0xdfb   :  { %8819 = vmatprep.subr.bf16.mxu0 %v9280_v22 }
 0xebc   :  { %v9139_v57 = vpop.f32.mrb[76].mxu0 }
 0xebd   :  { %v7939_v9 = vpop.f32.mrb[77].mxu0  ;;  %v7948_v48 = vadd.f32 %v9139_v57, %v8643_v50 }
 0xebe   :  { %v7940_v1 = vadd.f32 %v8643_v50, %v7939_v9  ;;  %v9140_v21 = vpop.f32.mrb[78].mxu0 }
 0xebf   :  { %v7942_v42 = vpop.f32.mrb[79].mxu0  ;;  %v7956_v59 = vadd.f32 %v7948_v48, %v10901_v25  ;;  %v7951_v55 = vadd.f32 %v9140_v21, %v8643_v50 }
 0xec0   :  { %v7954_v13 = vadd.f32 %v7940_v1, %v10894_v14  ;;  %v7943_v11 = vadd.f32 %v8643_v50, %v7942_v42 }
 0xec1   :  { %v7957_v5 = vadd.f32 %v7951_v55, %v10903_v37 }
 0xec2   :  { %v7955_v15 = vadd.f32 %v7943_v11, %v10896_v47  ;;  %7960 = vadd.xlane.f32.xlu0 %v7954_v13  ;;  %v8652_v11 = vld [vmem:[%s11997_s16] ss:$0 sm:$0xff] }
 0xec4   :  { %7962 = vadd.xlane.f32.xlu1 %v7955_v15 }
 0xec6   :  { %7964 = vadd.xlane.f32.xlu0 %v7956_v59 }
 0xeca   :  { %7966 = vadd.xlane.f32.xlu0 %v7957_v5 }
 0xf4f   :  { %v7961_v14 = vpop.xlane.xlu0 %7960 }
 0xf50   :  { %v7968_v41 = vmul.f32 0.0078125, %v7961_v14 }
 0xf51   :  { %v7963_v47 = vpop.xlane.xlu1 %7962 }
 0xf52   :  { %v11909_v12 = vsub.f32 %v7954_v13, %v7968_v41  ;;  %v7969_v25 = vmul.f32 0.0078125, %v7963_v47 }
 0xf53   :  { %v7965_v61 = vpop.xlane.xlu0 %7964 }
 0xf54   :  { %v11911_v8 = vsub.f32 %v7955_v15, %v7969_v25  ;;  %v7970_v45 = vmul.f32 0.0078125, %v7965_v61  ;;  %v7976_v37 = vmul.f32 %v11909_v12, %v11909_v12 }
 0xf56   :  { %v11915_v27 = vsub.f32 %v7956_v59, %v7970_v45  ;;  %7980 = vadd.xlane.f32.xlu1 %v7976_v37  ;;  %v7977_v4 = vmul.f32 %v11911_v8, %v11911_v8 }
 0xf57   :  { %v7967_v62 = vpop.xlane.xlu0 %7966 }
 0xf58   :  { %v7971_v60 = vmul.f32 0.0078125, %v7967_v62  ;;  %7982 = vadd.xlane.f32.xlu0 %v7977_v4  ;;  %v7978_v24 = vmul.f32 %v11915_v27, %v11915_v27  ;;  %v9282_v62 = vld [vmem:[#allocation19 + $0x70] sm:$0xff]  }
 0xf5a   :  { %v11921_v46 = vsub.f32 %v7957_v5, %v7971_v60  ;;  %7984 = vadd.xlane.f32.xlu1 %v7978_v24  ;;  %v9283_v60 = vld [vmem:[#allocation19 + $0x30] sm:$0xff]   ;;  %v9284_v24 = vld [vmem:[#allocation19 + $0x78] sm:$0xff]  }
 0xf5c   :  { %v7979_v32 = vmul.f32 %v11921_v46, %v11921_v46 }
 0xf5e   :  { %7986 = vadd.xlane.f32.xlu0 %v7979_v32 }
 0xfe3   :  { %v7981_v17 = vpop.xlane.xlu1 %7980 }
 0xfe4   :  { %v7988_v18 = vmul.f32 0.0078125, %v7981_v17 }
 0xfe5   :  { %v7983_v44 = vpop.xlane.xlu0 %7982 }
 0xfe6   :  { %v7992_v52 = vadd.f32 1e-05, %v7988_v18  ;;  %v7989_v7 = vmul.f32 0.0078125, %v7983_v44 }
 0xfe7   :  { %v7985_v50 = vpop.xlane.xlu1 %7984 }
 0xfe8   :  { %9422 = vrsqrt.f32 %v7992_v52  ;;  %v7993_v57 = vadd.f32 1e-05, %v7989_v7  ;;  %v7990_v9 = vmul.f32 0.0078125, %v7985_v50  ;;  %v8670_v50 = vld [vmem:[%s12002_s21] ss:$0 sm:$0xff] }
 0xfea   :  { %9424 = vrsqrt.f32 %v7993_v57  ;;  %v7994_v1 = vadd.f32 1e-05, %v7990_v9 }
 0xfeb   :  { %v7987_v21 = vpop.xlane.xlu0 %7986 }
 0xfec   :  { %9426 = vrsqrt.f32 %v7994_v1  ;;  %v7991_v42 = vmul.f32 0.0078125, %v7987_v21 }
 0xfee   :  { %v7995_v48 = vadd.f32 1e-05, %v7991_v42 }
 0xff0   :  { %9428 = vrsqrt.f32 %v7995_v48 }
 0xff2   :  { %v9423_v13 = vpop.eup %9422 }
 0xff3   :  { %v8000_v15 = vmul.f32 %v9423_v13, %v11909_v12 }
 0xff4   :  { %v9425_v59 = vpop.eup %9424 }
 0xff5   :  { %v8001_v55 = vmul.f32 %v9425_v59, %v11911_v8  ;;  %v8010_v5 = vmul.f32 %v8652_v11, %v8000_v15 }
 0xff6   :  { %v9427_v58 = vpop.eup %9426 }
 0xff7   :  { %v8011_v23 = vmul.f32 %v8652_v11, %v8001_v55  ;;  %v11933_v63 = vadd.f32 %v8653_v16, %v8010_v5  ;;  %v8002_v41 = vmul.f32 %v9427_v58, %v11915_v27  ;;  %v9281_v27 = vld [vmem:[#allocation19 + $0x28] sm:$0xff]  }
 0xff8   :  { %8820 = vmatpush3.bf16.msra.mxu0 %v9281_v27 }
 0xff9   :  { %v11935_v14 = vadd.f32 %v8653_v16, %v8011_v23  ;;  %v8012_v61 = vmul.f32 %v8652_v11, %v8002_v41  ;;  %8821 = vmatprep.subr.bf16.mxu0 %v9282_v62 }
 0xffa   :  { %v9429_v47 = vpop.eup %9428 }
 0xffb   :  { %v8024_v12 = vpack.c.bf16 %v11935_v14, %v11933_v63  ;;  %v8003_v25 = vmul.f32 %v9429_v47, %v11921_v46  ;;  %v11944_v37 = vadd.f32 %v8653_v16, %v8012_v61  ;;  %v9285_v46 = vld [vmem:[#allocation19 + $0x38] sm:$0xff]  }
 0xffc   :  { %8822 = vmatpush3.bf16.msra.mxu0 %v9283_v60 }
 0xffd   :  { %8167 = vmatmul.mubr.bf16.vlgmr.msra.gmra.mrb[84].mxu1 %v8024_v12  ;;  %v8013_v8 = vmul.f32 %v8652_v11, %v8003_v25  ;;  %8823 = vmatprep.subr.bf16.mxu0 %v9284_v24 }
 0xffe   :  { %8176 = vmatprep.mubr.bf16.mxu1 %v12050_v54  ;;  %v8042_v54 = vld [vmem:[%s12000_s19] sm:$0x3] }
 0xfff   :  { %v11942_v45 = vadd.f32 %v8653_v16, %v8013_v8  ;;  %v8047_v32 = vrot.slane %v8042_v54, %v10051_v33  ;;  %v8051_v28 = vrot.slane %v8042_v54, %v10057_v35 }
0x1000   :  { %8824 = vmatpush3.bf16.msra.mxu0 %v9285_v46 }
0x1001   :  { %v8025_v4 = vpack.c.bf16 %v11942_v45, %v11944_v37 }
0x1005   :  { %8177 = vmatmul.mubr.bf16.gmra.mrb[88].mxu1 %v8025_v4 }
0x10d0   :  { %v8168_v2 = vpop.f32.mrb[84].mxu1 }
0x10d1   :  { %v8169_v39 = vadd.f32 %v8168_v2, %v8047_v32  ;;  %v8170_v49 = vpop.f32.mrb[85].mxu1 }
0x10d2   :  { %v8171_v43 = vadd.f32 %v8170_v49, %v8051_v28  ;;  %v8172_v34 = vpop.f32.mrb[86].mxu1 }
0x10d3   :  { %v8173_v0 = vadd.f32 %v8172_v34, %v8047_v32  ;;  %v8174_v19 = vpop.f32.mrb[87].mxu1  ;;  %v8187_v3 = vmax.f32 %v8169_v39, 0.0 }
0x10d4   :  { %v8175_v30 = vadd.f32 %v8174_v19, %v8051_v28  ;;  %v8188_v10 = vmax.f32 %v8171_v43, 0.0 }
0x10d5   :  { %v8189_v20 = vmax.f32 %v8173_v0, 0.0 }
0x10d6   :  { %v8190_v53 = vmax.f32 %v8175_v30, 0.0 }
0x10d7   :  { %v8195_v29 = vpack.c.bf16 %v8189_v20, %v8187_v3 }
0x10d8   :  { %v8196_v36 = vpack.c.bf16 %v8190_v53, %v8188_v10  ;;  %v8178_v26 = vpop.f32.mrb[88].mxu1 }
0x10d9   :  { %v8179_v38 = vadd.f32 %v8178_v26, %v8047_v32  ;;  %v8180_v40 = vpop.f32.mrb[89].mxu1  ;;  %v8687_v26 = vld [vmem:[%s12003_s22] ss:$0 sm:$0xff]  ;;  %s8462_s22 = sshll.u32 %s9744_s1, 4  ;;  %s8463_s22 = int_to_ptr.vmem [resolvable:$true] %s8462_s22 }
0x10da   :  { %v8181_v33 = vadd.f32 %v8180_v40, %v8051_v28  ;;  %v8182_v56 = vpop.f32.mrb[90].mxu1  ;;  %8366 = vmatprep.mubr.bf16.mxu0 %v8196_v36  ;;  %s9684_s10 = scalar_lea.vmem %s8463_s22, 512  ;;  %p9689_p5 = scmp.lt.s32.totalorder %s8463_s22, %s8463_s22 }
0x10db   :  { %v8183_v35 = vadd.f32 %v8182_v56, %v8047_v32  ;;  %v8184_v6 = vpop.f32.mrb[91].mxu1  ;;  %8367 = vmatmul.mubr.bf16.vlgmr.msra.gmra.mrb[80].mxu0 %v8195_v29  ;;  %v8191_v51 = vmax.f32 %v8179_v38, 0.0  ;;  %p9685_p4 = scmp.ne.s32.totalorder %s8463_s22, %s9684_s10  ;;  %p9690_p6 = scmp.lt.s32.totalorder %s9684_s10, %s9684_s10 }
0x10dc   :  { %v8185_v31 = vadd.f32 %v8184_v6, %v8051_v28  ;;  %v8192_v17 = vmax.f32 %v8181_v33, 0.0  ;;  %v8688_v33 = vld [vmem:[%s12051_s4] ss:$0 sm:$0xff] }
0x10dd   :  { %v8193_v22 = vmax.f32 %v8183_v35, 0.0  ;;  %p9691_p7 = por %p9690_p6, %p9689_p5 }
0x10de   :  { %v8194_v18 = vmax.f32 %v8185_v31, 0.0 }
0x10df   :  { %v8197_v44 = vpack.c.bf16 %v8193_v22, %v8191_v51  ;;  %p9692_p8 = pnand %p9691_p7, %p9685_p4 }
0x10e0   :  { %v8198_v52 = vpack.c.bf16 %v8194_v18, %v8192_v17 }
0x10e2   :  { %8374 = vmatprep.mubr.bf16.mxu0 %v8198_v52 }
0x10e3   :  { %8375 = vmatmul.mubr.bf16.gmra.mrb[84].mxu0 %v8197_v44 }
0x11ae   :  { %v8825_v7 = vpop.f32.mrb[80].mxu0 }
0x11af   :  { %v8826_v57 = vpop.f32.mrb[81].mxu0 }
0x11b0   :  { %v8827_v9 = vadd.f32 %v8826_v57, %v8825_v7  ;;  %v8828_v1 = vpop.f32.mrb[82].mxu0 }
0x11b1   :  { %v8829_v21 = vpop.f32.mrb[83].mxu0 }
0x11b2   :  { %v8369_v42 = vadd.f32 %v8827_v9, %v8670_v50  ;;  %v8830_v48 = vadd.f32 %v8829_v21, %v8828_v1 }
0x11b4   :  { %v8372_v13 = vadd.f32 %v8830_v48, %v8670_v50  ;;  %v8383_v11 = vadd.f32 %v8369_v42, %v11933_v63 }
0x11b6   :  { %v8831_v15 = vpop.f32.mrb[84].mxu0  ;;  %8389 = vadd.xlane.f32.xlu1 %v8383_v11  ;;  %v8384_v59 = vadd.f32 %v8372_v13, %v11935_v14 }
0x11b7   :  { %v8832_v55 = vpop.f32.mrb[85].mxu0 }
0x11b8   :  { %v8833_v5 = vadd.f32 %v8832_v55, %v8831_v15  ;;  %v8834_v58 = vpop.f32.mrb[86].mxu0  ;;  %8391 = vadd.xlane.f32.xlu0 %v8384_v59 }
0x11b9   :  { %v8835_v16 = vpop.f32.mrb[87].mxu0 }
0x11ba   :  { %v8377_v23 = vadd.f32 %v8833_v5, %v8670_v50  ;;  %v8836_v41 = vadd.f32 %v8835_v16, %v8834_v58 }
0x11bc   :  { %v8380_v47 = vadd.f32 %v8836_v41, %v8670_v50  ;;  %v8385_v12 = vadd.f32 %v8377_v23, %v11944_v37 }
0x11be   :  { %8393 = vadd.xlane.f32.xlu1 %v8385_v12  ;;  %v8386_v25 = vadd.f32 %v8380_v47, %v11942_v45 }
0x11c0   :  { %8395 = vadd.xlane.f32.xlu0 %v8386_v25 }
0x1243   :  { %v8390_v61 = vpop.xlane.xlu1 %8389 }
0x1244   :  { %v8397_v63 = vmul.f32 0.0078125, %v8390_v61 }
0x1245   :  { %v8392_v8 = vpop.xlane.xlu0 %8391 }
0x1246   :  { %v8401_v4 = vsub.f32 %v8383_v11, %v8397_v63  ;;  %v8398_v27 = vmul.f32 0.0078125, %v8392_v8 }
0x1248   :  { %v8402_v14 = vsub.f32 %v8384_v59, %v8398_v27  ;;  %v8405_v62 = vmul.f32 %v8401_v4, %v8401_v4 }
0x124a   :  { %8409 = vadd.xlane.f32.xlu1 %v8405_v62  ;;  %v8406_v60 = vmul.f32 %v8402_v14, %v8402_v14 }
0x124b   :  { %v8394_v24 = vpop.xlane.xlu1 %8393 }
0x124c   :  { %v8399_v46 = vmul.f32 0.0078125, %v8394_v24  ;;  %8411 = vadd.xlane.f32.xlu0 %v8406_v60 }
0x124d   :  { %v8396_v54 = vpop.xlane.xlu0 %8395 }
0x124e   :  { %v8403_v32 = vsub.f32 %v8385_v12, %v8399_v46  ;;  %v8400_v28 = vmul.f32 0.0078125, %v8396_v54 }
0x1250   :  { %v8404_v37 = vsub.f32 %v8386_v25, %v8400_v28  ;;  %v8407_v2 = vmul.f32 %v8403_v32, %v8403_v32 }
0x1252   :  { %8413 = vadd.xlane.f32.xlu1 %v8407_v2  ;;  %v8408_v45 = vmul.f32 %v8404_v37, %v8404_v37 }
0x1254   :  { %8415 = vadd.xlane.f32.xlu0 %v8408_v45 }
0x12d7   :  { %v8410_v39 = vpop.xlane.xlu1 %8409 }
0x12d8   :  { %v8417_v49 = vmul.f32 0.0078125, %v8410_v39 }
0x12d9   :  { %v8412_v43 = vpop.xlane.xlu0 %8411 }
0x12da   :  { %v8421_v34 = vadd.f32 1e-05, %v8417_v49  ;;  %v8418_v0 = vmul.f32 0.0078125, %v8412_v43 }
0x12dc   :  { %9430 = vrsqrt.f32 %v8421_v34  ;;  %v8422_v19 = vadd.f32 1e-05, %v8418_v0 }
0x12de   :  { %9432 = vrsqrt.f32 %v8422_v19 }
0x12df   :  { %v8414_v30 = vpop.xlane.xlu1 %8413 }
0x12e0   :  { %v8419_v3 = vmul.f32 0.0078125, %v8414_v30 }
0x12e1   :  { %v8416_v20 = vpop.xlane.xlu0 %8415 }
0x12e2   :  { %v8423_v10 = vadd.f32 1e-05, %v8419_v3  ;;  %v8420_v53 = vmul.f32 0.0078125, %v8416_v20 }
0x12e4   :  { %9434 = vrsqrt.f32 %v8423_v10  ;;  %v8424_v29 = vadd.f32 1e-05, %v8420_v53 }
0x12e6   :  { %v9431_v36 = vpop.eup %9430  ;;  %9436 = vrsqrt.f32 %v8424_v29 }
0x12e7   :  { %v8429_v38 = vmul.f32 %v9431_v36, %v8401_v4 }
0x12e8   :  { %v9433_v40 = vpop.eup %9432 }
0x12e9   :  { %v8430_v56 = vmul.f32 %v9433_v40, %v8402_v14  ;;  %v8439_v35 = vmul.f32 %v8687_v26, %v8429_v38 }
0x12eb   :  { %v8440_v6 = vmul.f32 %v8687_v26, %v8430_v56  ;;  %v8449_v31 = vadd.f32 %v8688_v33, %v8439_v35 }
0x12ed   :  { %v8450_v51 = vadd.f32 %v8688_v33, %v8440_v6  ;;  %8453 = vst [vmem:[#allocation20] sm:$0xff] %v8449_v31 }
0x12ee   :  { %v9435_v22 = vpop.eup %9434 }
0x12ef   :  { %v8431_v17 = vmul.f32 %v9435_v22, %v8403_v32  ;;  %8454 = vst [vmem:[#allocation20 + $0x8] sm:$0xff] %v8450_v51 }
0x12f0   :  { %v9437_v18 = vpop.eup %9436 }
0x12f1   :  { %v8432_v44 = vmul.f32 %v9437_v18, %v8404_v37  ;;  %v8441_v52 = vmul.f32 %v8687_v26, %v8431_v17 }
0x12f3   :  { %v8442_v7 = vmul.f32 %v8687_v26, %v8432_v44  ;;  %v8451_v50 = vadd.f32 %v8688_v33, %v8441_v52 }
0x12f5   :  { %v8452_v57 = vadd.f32 %v8688_v33, %v8442_v7  ;;  %8455 = vst [vmem:[#allocation20 + $0x10] sm:$0xff] %v8451_v50 }
0x12f7   :  { %8456 = vst [vmem:[#allocation20 + $0x18] sm:$0xff] %v8452_v57 }
0x12f8   :  { %9695 = shalt.err (!%p9692_p8)
}
0x12f9   :  { %s12052_s23 = sld [smem:[#allocation38_spill]] }
0x12ff   :  { %s9696_s18 = scalar_lea.hbm %s12052_s23, 512 }
0x1300   :  { %p9697_p9 = scmp.ne.s32.totalorder %s12052_s23, %s9696_s18  ;;  %p9700_p10 = scmp.lt.u32.totalorder %s9696_s18, %s12052_s23 }
0x1302   :  { %p9702_p11 = pnand %p9700_p10, %p9697_p9 }
0x1304   :  { %9705 = shalt.err (!%p9702_p11)
}
0x1305   :  { %8468 = dma.vmem_to_hbm [thread:$0]  %s8463_s22, 512, %s12052_s23, [#allocation4], %s12038_s26, %s12038_s26, %s12037_s7  }
0x1306   :  { %9718 = dma.done.wait [#allocation4], 512  }
0x1307   :  { %9719 = vsyncadd [#allocation4], 4294966784 }
0x1308   :  { %8472 = vsyncpa [#allocation3], 1 }
0x1309   :  { %8473 = vsyncpa [#allocation6], 1 }
0x130a   :  { %8474 = vsyncpa [#allocation9], 1 }
0x130b   :  { %8475 = vsyncpa [#allocation12], 1 }
0x130c   :  { %8476 = vsyncpa [#allocation15], 1 }
0x130d   :  { %8477 = vsyncpa [#allocation18], 1 }
0x130e   :  { %8478 = vsyncpa [#allocation4], 1 }

</bundles_post_ra>
